<compile_context>
chip_gen: v5e
topology: v5e:2x2
jax: 0.10.0
libtpu: 0.0.40
codegen_flags: <defaults>
</compile_context>

<pallas_src>
import functools

import jax
import jax.numpy as jnp
from jax.experimental import pallas as pl
from jax.experimental.pallas import tpu as pltpu

KSIZE = 7
PAD = (KSIZE - 1) // 2  # 3


def _attention_gate_kernel(bn_ref, w_ref, idx_ref, x_ref, o_ref, *, H, W):
    """One (Nb, C, H*W) block of batch elements per grid step.

    bn_ref : SMEM (2,)      folded eval-mode BatchNorm [scale, shift]
    w_ref  : SMEM (98,)     conv weight flattened as (c, ki, kj) row-major
    idx_ref: VMEM (2, HW)   int32 [row index, col index] of each flat pixel
    x_ref  : VMEM (Nb, C, HW)
    o_ref  : VMEM (Nb, C, HW)
    """
    Nb, C, HW = x_ref.shape

    xf = x_ref[...].astype(jnp.float32)                     # (Nb, C, HW)

    # ---- ZPool: channel-wise max & mean -> two (Nb, HW) maps ----
    m_max = jnp.max(xf, axis=1)                             # (Nb, HW)
    m_mean = jnp.mean(xf, axis=1)                           # (Nb, HW)
    maps = jnp.concatenate([m_max, m_mean], axis=0)         # (2*Nb, HW)

    # ---- boundary masks for the "same"-padded conv (computed once) ----
    row = idx_ref[0:1, :]                                   # (1, HW) int32
    col = idx_ref[1:2, :]
    vmask = [jnp.logical_and(row + di >= 0, row + di < H)
             for di in range(-PAD, PAD + 1)]
    hmask = [jnp.logical_and(col + dj >= 0, col + dj < W)
             for dj in range(-PAD, PAD + 1)]

    # ---- 7x7 conv, 2 -> 1 channels, no bias, on the flattened maps ----
    # out[y, x] = sum_{di,dj} w[c, di+3, dj+3] * map_c[y+di, x+dj] (zero pad).
    # Flattened: map_c[y+di, x+dj] == map_c_flat[k + di*W + dj] when in-bounds;
    # out-of-bounds positions are zeroed by the masks, so a modular lane
    # rotation (register-resident, no VMEM traffic) is exact.
    acc = jnp.zeros((Nb, HW), dtype=jnp.float32)
    for di in range(-PAD, PAD + 1):
        for dj in range(-PAD, PAD + 1):
            t = (di * W + dj) % HW                          # static python int
            if t == 0:
                sh = maps
            else:
                sh = jnp.concatenate([maps[:, t:], maps[:, :t]], axis=1)
            wi = (di + PAD) * KSIZE + (dj + PAD)
            contrib = (sh[:Nb] * w_ref[wi]
                       + sh[Nb:] * w_ref[KSIZE * KSIZE + wi])
            mask = jnp.logical_and(vmask[di + PAD], hmask[dj + PAD])
            acc = acc + jnp.where(mask, contrib, 0.0)

    # ---- BatchNorm (eval mode, folded to scale/shift) + sigmoid ----
    # TODO(synk): BatchNorm is implemented in inference mode (running stats),
    #             not training-mode batch statistics.
    y = acc * bn_ref[0] + bn_ref[1]
    scale = jax.nn.sigmoid(y)                               # (Nb, HW)

    # ---- gate the input (lane-dense load/store) ----
    o_ref[...] = (xf * scale[:, None, :]).astype(o_ref.dtype)


def _pick_batch_block(N, bytes_per_batch):
    """Largest divisor of N such that each grid step moves <= ~512 KiB of x
    and, when N >= 2, at least 2 grid steps remain (keeps both v7x TCs busy)."""
    target = 512 * 1024
    cap = max(1, min(N, target // max(bytes_per_batch, 1)))
    if N >= 2:
        cap = min(cap, max(1, N // 2))
    nb = 1
    for d in range(1, cap + 1):
        if N % d == 0:
            nb = d
    return nb


def attention_gate(x, conv_w, bn_gamma, bn_beta, bn_mean, bn_var, eps=1e-5):
    """x: (N, C, H, W); conv_w: (1, 2, 7, 7); BN params: shape (1,)."""
    N, C, H, W = x.shape
    HW = H * W
    out_dtype = x.dtype

    # Fold eval-mode BatchNorm (out_planes == 1) into a scalar scale/shift.
    s = (bn_gamma.astype(jnp.float32) /
         jnp.sqrt(bn_var.astype(jnp.float32) + eps)).reshape(())
    t = (bn_beta.astype(jnp.float32) -
         bn_mean.astype(jnp.float32) * s).reshape(())
    bn_params = jnp.stack([s, t])                           # (2,) f32, SMEM

    w_flat = conv_w.reshape(-1).astype(jnp.float32)         # (2*7*7,) = (98,)

    # Flat (row, col) indices of every pixel -> conv boundary masks in-kernel.
    flat = jnp.arange(HW, dtype=jnp.int32)
    idx = jnp.stack([flat // W, flat % W], axis=0)          # (2, HW) int32

    # Lane-dense view of x for the gate path (free reshape, row-major).
    x2 = x.reshape(N, C, HW)

    Nb = _pick_batch_block(N, C * HW * x.dtype.itemsize)
    grid = (N // Nb,)

    kernel = functools.partial(_attention_gate_kernel, H=H, W=W)

    out = pl.pallas_call(
        kernel,
        out_shape=jax.ShapeDtypeStruct((N, C, HW), out_dtype),
        grid=grid,
        in_specs=[
            pl.BlockSpec(memory_space=pltpu.MemorySpace.SMEM),    # bn params
            pl.BlockSpec(memory_space=pltpu.MemorySpace.SMEM),    # conv weights
            pl.BlockSpec((2, HW), lambda n: (0, 0)),              # row/col idx
            pl.BlockSpec((Nb, C, HW), lambda n: (n, 0, 0)),       # x
        ],
        out_specs=pl.BlockSpec((Nb, C, HW), lambda n: (n, 0, 0)),
        compiler_params=pltpu.CompilerParams(
            dimension_semantics=("parallel",)),
    )(bn_params, w_flat, idx, x2)

    return out.reshape(N, C, H, W)


def _reference(x, conv_w, bn_gamma, bn_beta, bn_mean, bn_var, eps=1e-5):
    x_max = jnp.max(x, axis=1, keepdims=True)
    x_mean = jnp.mean(x, axis=1, keepdims=True)
    z = jnp.concatenate([x_max, x_mean], axis=1)
    y = jax.lax.conv_general_dilated(
        z, conv_w, window_strides=(1, 1), padding=((PAD, PAD), (PAD, PAD)),
        dimension_numbers=("NCHW", "OIHW", "NCHW"))
    s = bn_gamma / jnp.sqrt(bn_var + eps)
    t = bn_beta - bn_mean * s
    y = y * s.reshape(1, 1, 1, 1) + t.reshape(1, 1, 1, 1)
    return x * jax.nn.sigmoid(y)


if __name__ == "__main__":
    key = jax.random.PRNGKey(0)
    k_x, k_w, k_g, k_b, k_m, k_v = jax.random.split(key, 6)

    N, C, H, W = 2, 4, 16, 16
    x = jax.random.normal(k_x, (N, C, H, W), dtype=jnp.float32)

    # Deterministic synthetic parameters (Conv2d(2, 1, 7, bias=False) + BN(1)).
    conv_w = jax.random.normal(k_w, (1, 2, KSIZE, KSIZE), dtype=jnp.float32) * 0.1
    bn_gamma = 1.0 + 0.1 * jax.random.normal(k_g, (1,), dtype=jnp.float32)
    bn_beta = 0.1 * jax.random.normal(k_b, (1,), dtype=jnp.float32)
    bn_mean = 0.1 * jax.random.normal(k_m, (1,), dtype=jnp.float32)
    bn_var = 1.0 + 0.1 * jnp.abs(jax.random.normal(k_v, (1,), dtype=jnp.float32))

    out = attention_gate(x, conv_w, bn_gamma, bn_beta, bn_mean, bn_var)
    out = jax.block_until_ready(out)

    ref = _reference(x, conv_w, bn_gamma, bn_beta, bn_mean, bn_var)
    assert out.shape == (N, C, H, W)
    assert jnp.max(jnp.abs(out - ref)) < 1e-4, "mismatch vs reference"

    print("KERNEL_OK")
</pallas_src>

<mosaic_0001>
module attributes {stable_mosaic.version = 11 : i64} {
  func.func @_attention_gate_kernel(%arg0: i32, %arg1: memref<2xf32, #tpu.memory_space<smem>>, %arg2: memref<98xf32, #tpu.memory_space<smem>>, %arg3: memref<2x256xi32, #tpu.memory_space<vmem>>, %arg4: memref<1x4x256xf32, #tpu.memory_space<vmem>>, %arg5: memref<1x4x256xf32, #tpu.memory_space<vmem>>) attributes {dimension_semantics = [#tpu.dimension_semantics<parallel>], iteration_bounds = array<i64: 2>, scalar_prefetch = 0 : i64, scratch_operands = 0 : i64, tpu.core_type = #tpu.core_type<tc>, window_params = [{transform_indices = @transform_0, window_bounds = array<i64: 2>}, {transform_indices = @transform_1, window_bounds = array<i64: 98>}, {pipeline_mode = #tpu.pipeline_mode<synchronous>, transform_indices = @transform_2, window_bounds = array<i64: 2, 256>}, {transform_indices = @transform_3, window_bounds = array<i64: 1, 4, 256>}, {transform_indices = @transform_4, window_bounds = array<i64: 1, 4, 256>}]} {
    %c0 = arith.constant 0 : index
    %c0_0 = arith.constant 0 : index
    %c0_1 = arith.constant 0 : index
    %0 = vector.load %arg4[%c0, %c0_0, %c0_1] : memref<1x4x256xf32, #tpu.memory_space<vmem>>, vector<1x4x256xf32>
    %cst = arith.constant dense<0xFF800000> : vector<1x256xf32>
    %1 = vector.multi_reduction <maximumf>, %0, %cst [1] : vector<1x4x256xf32> to vector<1x256xf32>
    %cst_2 = arith.constant dense<0.000000e+00> : vector<1x256xf32>
    %2 = vector.multi_reduction <add>, %0, %cst_2 [1] : vector<1x4x256xf32> to vector<1x256xf32>
    %cst_3 = arith.constant 4.000000e+00 : f32
    %3 = vector.broadcast %cst_3 : f32 to vector<1x256xf32>
    %4 = arith.divf %2, %3 : vector<1x256xf32>
    %5 = tpu.concatenate %1, %4 in 0 : vector<1x256xf32>, vector<1x256xf32> -> vector<2x256xf32>
    %c0_4 = arith.constant 0 : index
    %c0_5 = arith.constant 0 : index
    %6 = vector.load %arg3[%c0_4, %c0_5] : memref<2x256xi32, #tpu.memory_space<vmem>>, vector<1x256xi32>
    %c1 = arith.constant 1 : index
    %c0_6 = arith.constant 0 : index
    %7 = vector.load %arg3[%c1, %c0_6] : memref<2x256xi32, #tpu.memory_space<vmem>>, vector<1x256xi32>
    %c-3_i32 = arith.constant -3 : i32
    %8 = vector.broadcast %c-3_i32 : i32 to vector<1x256xi32>
    %9 = arith.addi %6, %8 : vector<1x256xi32>
    %c0_i32 = arith.constant 0 : i32
    %10 = vector.broadcast %c0_i32 : i32 to vector<1x256xi32>
    %11 = arith.cmpi sge, %9, %10 : vector<1x256xi32>
    %c-3_i32_7 = arith.constant -3 : i32
    %12 = vector.broadcast %c-3_i32_7 : i32 to vector<1x256xi32>
    %13 = arith.addi %6, %12 : vector<1x256xi32>
    %c16_i32 = arith.constant 16 : i32
    %14 = vector.broadcast %c16_i32 : i32 to vector<1x256xi32>
    %15 = arith.cmpi slt, %13, %14 : vector<1x256xi32>
    %16 = arith.andi %11, %15 : vector<1x256xi1>
    %c-2_i32 = arith.constant -2 : i32
    %17 = vector.broadcast %c-2_i32 : i32 to vector<1x256xi32>
    %18 = arith.addi %6, %17 : vector<1x256xi32>
    %c0_i32_8 = arith.constant 0 : i32
    %19 = vector.broadcast %c0_i32_8 : i32 to vector<1x256xi32>
    %20 = arith.cmpi sge, %18, %19 : vector<1x256xi32>
    %c-2_i32_9 = arith.constant -2 : i32
    %21 = vector.broadcast %c-2_i32_9 : i32 to vector<1x256xi32>
    %22 = arith.addi %6, %21 : vector<1x256xi32>
    %c16_i32_10 = arith.constant 16 : i32
    %23 = vector.broadcast %c16_i32_10 : i32 to vector<1x256xi32>
    %24 = arith.cmpi slt, %22, %23 : vector<1x256xi32>
    %25 = arith.andi %20, %24 : vector<1x256xi1>
    %c-1_i32 = arith.constant -1 : i32
    %26 = vector.broadcast %c-1_i32 : i32 to vector<1x256xi32>
    %27 = arith.addi %6, %26 : vector<1x256xi32>
    %c0_i32_11 = arith.constant 0 : i32
    %28 = vector.broadcast %c0_i32_11 : i32 to vector<1x256xi32>
    %29 = arith.cmpi sge, %27, %28 : vector<1x256xi32>
    %c-1_i32_12 = arith.constant -1 : i32
    %30 = vector.broadcast %c-1_i32_12 : i32 to vector<1x256xi32>
    %31 = arith.addi %6, %30 : vector<1x256xi32>
    %c16_i32_13 = arith.constant 16 : i32
    %32 = vector.broadcast %c16_i32_13 : i32 to vector<1x256xi32>
    %33 = arith.cmpi slt, %31, %32 : vector<1x256xi32>
    %34 = arith.andi %29, %33 : vector<1x256xi1>
    %c0_i32_14 = arith.constant 0 : i32
    %35 = vector.broadcast %c0_i32_14 : i32 to vector<1x256xi32>
    %36 = arith.addi %6, %35 : vector<1x256xi32>
    %c0_i32_15 = arith.constant 0 : i32
    %37 = vector.broadcast %c0_i32_15 : i32 to vector<1x256xi32>
    %38 = arith.cmpi sge, %36, %37 : vector<1x256xi32>
    %c0_i32_16 = arith.constant 0 : i32
    %39 = vector.broadcast %c0_i32_16 : i32 to vector<1x256xi32>
    %40 = arith.addi %6, %39 : vector<1x256xi32>
    %c16_i32_17 = arith.constant 16 : i32
    %41 = vector.broadcast %c16_i32_17 : i32 to vector<1x256xi32>
    %42 = arith.cmpi slt, %40, %41 : vector<1x256xi32>
    %43 = arith.andi %38, %42 : vector<1x256xi1>
    %c1_i32 = arith.constant 1 : i32
    %44 = vector.broadcast %c1_i32 : i32 to vector<1x256xi32>
    %45 = arith.addi %6, %44 : vector<1x256xi32>
    %c0_i32_18 = arith.constant 0 : i32
    %46 = vector.broadcast %c0_i32_18 : i32 to vector<1x256xi32>
    %47 = arith.cmpi sge, %45, %46 : vector<1x256xi32>
    %c1_i32_19 = arith.constant 1 : i32
    %48 = vector.broadcast %c1_i32_19 : i32 to vector<1x256xi32>
    %49 = arith.addi %6, %48 : vector<1x256xi32>
    %c16_i32_20 = arith.constant 16 : i32
    %50 = vector.broadcast %c16_i32_20 : i32 to vector<1x256xi32>
    %51 = arith.cmpi slt, %49, %50 : vector<1x256xi32>
    %52 = arith.andi %47, %51 : vector<1x256xi1>
    %c2_i32 = arith.constant 2 : i32
    %53 = vector.broadcast %c2_i32 : i32 to vector<1x256xi32>
    %54 = arith.addi %6, %53 : vector<1x256xi32>
    %c0_i32_21 = arith.constant 0 : i32
    %55 = vector.broadcast %c0_i32_21 : i32 to vector<1x256xi32>
    %56 = arith.cmpi sge, %54, %55 : vector<1x256xi32>
    %c2_i32_22 = arith.constant 2 : i32
    %57 = vector.broadcast %c2_i32_22 : i32 to vector<1x256xi32>
    %58 = arith.addi %6, %57 : vector<1x256xi32>
    %c16_i32_23 = arith.constant 16 : i32
    %59 = vector.broadcast %c16_i32_23 : i32 to vector<1x256xi32>
    %60 = arith.cmpi slt, %58, %59 : vector<1x256xi32>
    %61 = arith.andi %56, %60 : vector<1x256xi1>
    %c3_i32 = arith.constant 3 : i32
    %62 = vector.broadcast %c3_i32 : i32 to vector<1x256xi32>
    %63 = arith.addi %6, %62 : vector<1x256xi32>
    %c0_i32_24 = arith.constant 0 : i32
    %64 = vector.broadcast %c0_i32_24 : i32 to vector<1x256xi32>
    %65 = arith.cmpi sge, %63, %64 : vector<1x256xi32>
    %c3_i32_25 = arith.constant 3 : i32
    %66 = vector.broadcast %c3_i32_25 : i32 to vector<1x256xi32>
    %67 = arith.addi %6, %66 : vector<1x256xi32>
    %c16_i32_26 = arith.constant 16 : i32
    %68 = vector.broadcast %c16_i32_26 : i32 to vector<1x256xi32>
    %69 = arith.cmpi slt, %67, %68 : vector<1x256xi32>
    %70 = arith.andi %65, %69 : vector<1x256xi1>
    %c-3_i32_27 = arith.constant -3 : i32
    %71 = vector.broadcast %c-3_i32_27 : i32 to vector<1x256xi32>
    %72 = arith.addi %7, %71 : vector<1x256xi32>
    %c0_i32_28 = arith.constant 0 : i32
    %73 = vector.broadcast %c0_i32_28 : i32 to vector<1x256xi32>
    %74 = arith.cmpi sge, %72, %73 : vector<1x256xi32>
    %c-3_i32_29 = arith.constant -3 : i32
    %75 = vector.broadcast %c-3_i32_29 : i32 to vector<1x256xi32>
    %76 = arith.addi %7, %75 : vector<1x256xi32>
    %c16_i32_30 = arith.constant 16 : i32
    %77 = vector.broadcast %c16_i32_30 : i32 to vector<1x256xi32>
    %78 = arith.cmpi slt, %76, %77 : vector<1x256xi32>
    %79 = arith.andi %74, %78 : vector<1x256xi1>
    %c-2_i32_31 = arith.constant -2 : i32
    %80 = vector.broadcast %c-2_i32_31 : i32 to vector<1x256xi32>
    %81 = arith.addi %7, %80 : vector<1x256xi32>
    %c0_i32_32 = arith.constant 0 : i32
    %82 = vector.broadcast %c0_i32_32 : i32 to vector<1x256xi32>
    %83 = arith.cmpi sge, %81, %82 : vector<1x256xi32>
    %c-2_i32_33 = arith.constant -2 : i32
    %84 = vector.broadcast %c-2_i32_33 : i32 to vector<1x256xi32>
    %85 = arith.addi %7, %84 : vector<1x256xi32>
    %c16_i32_34 = arith.constant 16 : i32
    %86 = vector.broadcast %c16_i32_34 : i32 to vector<1x256xi32>
    %87 = arith.cmpi slt, %85, %86 : vector<1x256xi32>
    %88 = arith.andi %83, %87 : vector<1x256xi1>
    %c-1_i32_35 = arith.constant -1 : i32
    %89 = vector.broadcast %c-1_i32_35 : i32 to vector<1x256xi32>
    %90 = arith.addi %7, %89 : vector<1x256xi32>
    %c0_i32_36 = arith.constant 0 : i32
    %91 = vector.broadcast %c0_i32_36 : i32 to vector<1x256xi32>
    %92 = arith.cmpi sge, %90, %91 : vector<1x256xi32>
    %c-1_i32_37 = arith.constant -1 : i32
    %93 = vector.broadcast %c-1_i32_37 : i32 to vector<1x256xi32>
    %94 = arith.addi %7, %93 : vector<1x256xi32>
    %c16_i32_38 = arith.constant 16 : i32
    %95 = vector.broadcast %c16_i32_38 : i32 to vector<1x256xi32>
    %96 = arith.cmpi slt, %94, %95 : vector<1x256xi32>
    %97 = arith.andi %92, %96 : vector<1x256xi1>
    %c0_i32_39 = arith.constant 0 : i32
    %98 = vector.broadcast %c0_i32_39 : i32 to vector<1x256xi32>
    %99 = arith.addi %7, %98 : vector<1x256xi32>
    %c0_i32_40 = arith.constant 0 : i32
    %100 = vector.broadcast %c0_i32_40 : i32 to vector<1x256xi32>
    %101 = arith.cmpi sge, %99, %100 : vector<1x256xi32>
    %c0_i32_41 = arith.constant 0 : i32
    %102 = vector.broadcast %c0_i32_41 : i32 to vector<1x256xi32>
    %103 = arith.addi %7, %102 : vector<1x256xi32>
    %c16_i32_42 = arith.constant 16 : i32
    %104 = vector.broadcast %c16_i32_42 : i32 to vector<1x256xi32>
    %105 = arith.cmpi slt, %103, %104 : vector<1x256xi32>
    %106 = arith.andi %101, %105 : vector<1x256xi1>
    %c1_i32_43 = arith.constant 1 : i32
    %107 = vector.broadcast %c1_i32_43 : i32 to vector<1x256xi32>
    %108 = arith.addi %7, %107 : vector<1x256xi32>
    %c0_i32_44 = arith.constant 0 : i32
    %109 = vector.broadcast %c0_i32_44 : i32 to vector<1x256xi32>
    %110 = arith.cmpi sge, %108, %109 : vector<1x256xi32>
    %c1_i32_45 = arith.constant 1 : i32
    %111 = vector.broadcast %c1_i32_45 : i32 to vector<1x256xi32>
    %112 = arith.addi %7, %111 : vector<1x256xi32>
    %c16_i32_46 = arith.constant 16 : i32
    %113 = vector.broadcast %c16_i32_46 : i32 to vector<1x256xi32>
    %114 = arith.cmpi slt, %112, %113 : vector<1x256xi32>
    %115 = arith.andi %110, %114 : vector<1x256xi1>
    %c2_i32_47 = arith.constant 2 : i32
    %116 = vector.broadcast %c2_i32_47 : i32 to vector<1x256xi32>
    %117 = arith.addi %7, %116 : vector<1x256xi32>
    %c0_i32_48 = arith.constant 0 : i32
    %118 = vector.broadcast %c0_i32_48 : i32 to vector<1x256xi32>
    %119 = arith.cmpi sge, %117, %118 : vector<1x256xi32>
    %c2_i32_49 = arith.constant 2 : i32
    %120 = vector.broadcast %c2_i32_49 : i32 to vector<1x256xi32>
    %121 = arith.addi %7, %120 : vector<1x256xi32>
    %c16_i32_50 = arith.constant 16 : i32
    %122 = vector.broadcast %c16_i32_50 : i32 to vector<1x256xi32>
    %123 = arith.cmpi slt, %121, %122 : vector<1x256xi32>
    %124 = arith.andi %119, %123 : vector<1x256xi1>
    %c3_i32_51 = arith.constant 3 : i32
    %125 = vector.broadcast %c3_i32_51 : i32 to vector<1x256xi32>
    %126 = arith.addi %7, %125 : vector<1x256xi32>
    %c0_i32_52 = arith.constant 0 : i32
    %127 = vector.broadcast %c0_i32_52 : i32 to vector<1x256xi32>
    %128 = arith.cmpi sge, %126, %127 : vector<1x256xi32>
    %c3_i32_53 = arith.constant 3 : i32
    %129 = vector.broadcast %c3_i32_53 : i32 to vector<1x256xi32>
    %130 = arith.addi %7, %129 : vector<1x256xi32>
    %c16_i32_54 = arith.constant 16 : i32
    %131 = vector.broadcast %c16_i32_54 : i32 to vector<1x256xi32>
    %132 = arith.cmpi slt, %130, %131 : vector<1x256xi32>
    %133 = arith.andi %128, %132 : vector<1x256xi1>
    %cst_55 = arith.constant 0.000000e+00 : f32
    %134 = vector.broadcast %cst_55 : f32 to vector<1x256xf32>
    %135 = vector.extract_strided_slice %5 {offsets = [0, 205], sizes = [2, 51], strides = [1, 1]} : vector<2x256xf32> to vector<2x51xf32>
    %136 = vector.extract_strided_slice %5 {offsets = [0, 0], sizes = [2, 205], strides = [1, 1]} : vector<2x256xf32> to vector<2x205xf32>
    %137 = tpu.concatenate %135, %136 in 1 : vector<2x51xf32>, vector<2x205xf32> -> vector<2x256xf32>
    %138 = vector.extract_strided_slice %137 {offsets = [0, 0], sizes = [1, 256], strides = [1, 1]} : vector<2x256xf32> to vector<1x256xf32>
    %c0_56 = arith.constant 0 : index
    %139 = memref.load %arg2[%c0_56] : memref<98xf32, #tpu.memory_space<smem>>
    %140 = vector.broadcast %139 : f32 to vector<1x256xf32>
    %141 = arith.mulf %138, %140 : vector<1x256xf32>
    %142 = vector.extract_strided_slice %137 {offsets = [1, 0], sizes = [1, 256], strides = [1, 1]} : vector<2x256xf32> to vector<1x256xf32>
    %c49 = arith.constant 49 : index
    %143 = memref.load %arg2[%c49] : memref<98xf32, #tpu.memory_space<smem>>
    %144 = vector.broadcast %143 : f32 to vector<1x256xf32>
    %145 = arith.mulf %142, %144 : vector<1x256xf32>
    %146 = arith.addf %141, %145 : vector<1x256xf32>
    %147 = arith.andi %16, %79 : vector<1x256xi1>
    %cst_57 = arith.constant 0.000000e+00 : f32
    %148 = vector.broadcast %cst_57 : f32 to vector<1x256xf32>
    %149 = arith.select %147, %146, %148 : vector<1x256xi1>, vector<1x256xf32>
    %150 = arith.addf %134, %149 : vector<1x256xf32>
    %151 = vector.extract_strided_slice %5 {offsets = [0, 206], sizes = [2, 50], strides = [1, 1]} : vector<2x256xf32> to vector<2x50xf32>
    %152 = vector.extract_strided_slice %5 {offsets = [0, 0], sizes = [2, 206], strides = [1, 1]} : vector<2x256xf32> to vector<2x206xf32>
    %153 = tpu.concatenate %151, %152 in 1 : vector<2x50xf32>, vector<2x206xf32> -> vector<2x256xf32>
    %154 = vector.extract_strided_slice %153 {offsets = [0, 0], sizes = [1, 256], strides = [1, 1]} : vector<2x256xf32> to vector<1x256xf32>
    %c1_58 = arith.constant 1 : index
    %155 = memref.load %arg2[%c1_58] : memref<98xf32, #tpu.memory_space<smem>>
    %156 = vector.broadcast %155 : f32 to vector<1x256xf32>
    %157 = arith.mulf %154, %156 : vector<1x256xf32>
    %158 = vector.extract_strided_slice %153 {offsets = [1, 0], sizes = [1, 256], strides = [1, 1]} : vector<2x256xf32> to vector<1x256xf32>
    %c50 = arith.constant 50 : index
    %159 = memref.load %arg2[%c50] : memref<98xf32, #tpu.memory_space<smem>>
    %160 = vector.broadcast %159 : f32 to vector<1x256xf32>
    %161 = arith.mulf %158, %160 : vector<1x256xf32>
    %162 = arith.addf %157, %161 : vector<1x256xf32>
    %163 = arith.andi %16, %88 : vector<1x256xi1>
    %cst_59 = arith.constant 0.000000e+00 : f32
    %164 = vector.broadcast %cst_59 : f32 to vector<1x256xf32>
    %165 = arith.select %163, %162, %164 : vector<1x256xi1>, vector<1x256xf32>
    %166 = arith.addf %150, %165 : vector<1x256xf32>
    %167 = vector.extract_strided_slice %5 {offsets = [0, 207], sizes = [2, 49], strides = [1, 1]} : vector<2x256xf32> to vector<2x49xf32>
    %168 = vector.extract_strided_slice %5 {offsets = [0, 0], sizes = [2, 207], strides = [1, 1]} : vector<2x256xf32> to vector<2x207xf32>
    %169 = tpu.concatenate %167, %168 in 1 : vector<2x49xf32>, vector<2x207xf32> -> vector<2x256xf32>
    %170 = vector.extract_strided_slice %169 {offsets = [0, 0], sizes = [1, 256], strides = [1, 1]} : vector<2x256xf32> to vector<1x256xf32>
    %c2 = arith.constant 2 : index
    %171 = memref.load %arg2[%c2] : memref<98xf32, #tpu.memory_space<smem>>
    %172 = vector.broadcast %171 : f32 to vector<1x256xf32>
    %173 = arith.mulf %170, %172 : vector<1x256xf32>
    %174 = vector.extract_strided_slice %169 {offsets = [1, 0], sizes = [1, 256], strides = [1, 1]} : vector<2x256xf32> to vector<1x256xf32>
    %c51 = arith.constant 51 : index
    %175 = memref.load %arg2[%c51] : memref<98xf32, #tpu.memory_space<smem>>
    %176 = vector.broadcast %175 : f32 to vector<1x256xf32>
    %177 = arith.mulf %174, %176 : vector<1x256xf32>
    %178 = arith.addf %173, %177 : vector<1x256xf32>
    %179 = arith.andi %16, %97 : vector<1x256xi1>
    %cst_60 = arith.constant 0.000000e+00 : f32
    %180 = vector.broadcast %cst_60 : f32 to vector<1x256xf32>
    %181 = arith.select %179, %178, %180 : vector<1x256xi1>, vector<1x256xf32>
    %182 = arith.addf %166, %181 : vector<1x256xf32>
    %183 = vector.extract_strided_slice %5 {offsets = [0, 208], sizes = [2, 48], strides = [1, 1]} : vector<2x256xf32> to vector<2x48xf32>
    %184 = vector.extract_strided_slice %5 {offsets = [0, 0], sizes = [2, 208], strides = [1, 1]} : vector<2x256xf32> to vector<2x208xf32>
    %185 = tpu.concatenate %183, %184 in 1 : vector<2x48xf32>, vector<2x208xf32> -> vector<2x256xf32>
    %186 = vector.extract_strided_slice %185 {offsets = [0, 0], sizes = [1, 256], strides = [1, 1]} : vector<2x256xf32> to vector<1x256xf32>
    %c3 = arith.constant 3 : index
    %187 = memref.load %arg2[%c3] : memref<98xf32, #tpu.memory_space<smem>>
    %188 = vector.broadcast %187 : f32 to vector<1x256xf32>
    %189 = arith.mulf %186, %188 : vector<1x256xf32>
    %190 = vector.extract_strided_slice %185 {offsets = [1, 0], sizes = [1, 256], strides = [1, 1]} : vector<2x256xf32> to vector<1x256xf32>
    %c52 = arith.constant 52 : index
    %191 = memref.load %arg2[%c52] : memref<98xf32, #tpu.memory_space<smem>>
    %192 = vector.broadcast %191 : f32 to vector<1x256xf32>
    %193 = arith.mulf %190, %192 : vector<1x256xf32>
    %194 = arith.addf %189, %193 : vector<1x256xf32>
    %195 = arith.andi %16, %106 : vector<1x256xi1>
    %cst_61 = arith.constant 0.000000e+00 : f32
    %196 = vector.broadcast %cst_61 : f32 to vector<1x256xf32>
    %197 = arith.select %195, %194, %196 : vector<1x256xi1>, vector<1x256xf32>
    %198 = arith.addf %182, %197 : vector<1x256xf32>
    %199 = vector.extract_strided_slice %5 {offsets = [0, 209], sizes = [2, 47], strides = [1, 1]} : vector<2x256xf32> to vector<2x47xf32>
    %200 = vector.extract_strided_slice %5 {offsets = [0, 0], sizes = [2, 209], strides = [1, 1]} : vector<2x256xf32> to vector<2x209xf32>
    %201 = tpu.concatenate %199, %200 in 1 : vector<2x47xf32>, vector<2x209xf32> -> vector<2x256xf32>
    %202 = vector.extract_strided_slice %201 {offsets = [0, 0], sizes = [1, 256], strides = [1, 1]} : vector<2x256xf32> to vector<1x256xf32>
    %c4 = arith.constant 4 : index
    %203 = memref.load %arg2[%c4] : memref<98xf32, #tpu.memory_space<smem>>
    %204 = vector.broadcast %203 : f32 to vector<1x256xf32>
    %205 = arith.mulf %202, %204 : vector<1x256xf32>
    %206 = vector.extract_strided_slice %201 {offsets = [1, 0], sizes = [1, 256], strides = [1, 1]} : vector<2x256xf32> to vector<1x256xf32>
    %c53 = arith.constant 53 : index
    %207 = memref.load %arg2[%c53] : memref<98xf32, #tpu.memory_space<smem>>
    %208 = vector.broadcast %207 : f32 to vector<1x256xf32>
    %209 = arith.mulf %206, %208 : vector<1x256xf32>
    %210 = arith.addf %205, %209 : vector<1x256xf32>
    %211 = arith.andi %16, %115 : vector<1x256xi1>
    %cst_62 = arith.constant 0.000000e+00 : f32
    %212 = vector.broadcast %cst_62 : f32 to vector<1x256xf32>
    %213 = arith.select %211, %210, %212 : vector<1x256xi1>, vector<1x256xf32>
    %214 = arith.addf %198, %213 : vector<1x256xf32>
    %215 = vector.extract_strided_slice %5 {offsets = [0, 210], sizes = [2, 46], strides = [1, 1]} : vector<2x256xf32> to vector<2x46xf32>
    %216 = vector.extract_strided_slice %5 {offsets = [0, 0], sizes = [2, 210], strides = [1, 1]} : vector<2x256xf32> to vector<2x210xf32>
    %217 = tpu.concatenate %215, %216 in 1 : vector<2x46xf32>, vector<2x210xf32> -> vector<2x256xf32>
    %218 = vector.extract_strided_slice %217 {offsets = [0, 0], sizes = [1, 256], strides = [1, 1]} : vector<2x256xf32> to vector<1x256xf32>
    %c5 = arith.constant 5 : index
    %219 = memref.load %arg2[%c5] : memref<98xf32, #tpu.memory_space<smem>>
    %220 = vector.broadcast %219 : f32 to vector<1x256xf32>
    %221 = arith.mulf %218, %220 : vector<1x256xf32>
    %222 = vector.extract_strided_slice %217 {offsets = [1, 0], sizes = [1, 256], strides = [1, 1]} : vector<2x256xf32> to vector<1x256xf32>
    %c54 = arith.constant 54 : index
    %223 = memref.load %arg2[%c54] : memref<98xf32, #tpu.memory_space<smem>>
    %224 = vector.broadcast %223 : f32 to vector<1x256xf32>
    %225 = arith.mulf %222, %224 : vector<1x256xf32>
    %226 = arith.addf %221, %225 : vector<1x256xf32>
    %227 = arith.andi %16, %124 : vector<1x256xi1>
    %cst_63 = arith.constant 0.000000e+00 : f32
    %228 = vector.broadcast %cst_63 : f32 to vector<1x256xf32>
    %229 = arith.select %227, %226, %228 : vector<1x256xi1>, vector<1x256xf32>
    %230 = arith.addf %214, %229 : vector<1x256xf32>
    %231 = vector.extract_strided_slice %5 {offsets = [0, 211], sizes = [2, 45], strides = [1, 1]} : vector<2x256xf32> to vector<2x45xf32>
    %232 = vector.extract_strided_slice %5 {offsets = [0, 0], sizes = [2, 211], strides = [1, 1]} : vector<2x256xf32> to vector<2x211xf32>
    %233 = tpu.concatenate %231, %232 in 1 : vector<2x45xf32>, vector<2x211xf32> -> vector<2x256xf32>
    %234 = vector.extract_strided_slice %233 {offsets = [0, 0], sizes = [1, 256], strides = [1, 1]} : vector<2x256xf32> to vector<1x256xf32>
    %c6 = arith.constant 6 : index
    %235 = memref.load %arg2[%c6] : memref<98xf32, #tpu.memory_space<smem>>
    %236 = vector.broadcast %235 : f32 to vector<1x256xf32>
    %237 = arith.mulf %234, %236 : vector<1x256xf32>
    %238 = vector.extract_strided_slice %233 {offsets = [1, 0], sizes = [1, 256], strides = [1, 1]} : vector<2x256xf32> to vector<1x256xf32>
    %c55 = arith.constant 55 : index
    %239 = memref.load %arg2[%c55] : memref<98xf32, #tpu.memory_space<smem>>
    %240 = vector.broadcast %239 : f32 to vector<1x256xf32>
    %241 = arith.mulf %238, %240 : vector<1x256xf32>
    %242 = arith.addf %237, %241 : vector<1x256xf32>
    %243 = arith.andi %16, %133 : vector<1x256xi1>
    %cst_64 = arith.constant 0.000000e+00 : f32
    %244 = vector.broadcast %cst_64 : f32 to vector<1x256xf32>
    %245 = arith.select %243, %242, %244 : vector<1x256xi1>, vector<1x256xf32>
    %246 = arith.addf %230, %245 : vector<1x256xf32>
    %247 = vector.extract_strided_slice %5 {offsets = [0, 221], sizes = [2, 35], strides = [1, 1]} : vector<2x256xf32> to vector<2x35xf32>
    %248 = vector.extract_strided_slice %5 {offsets = [0, 0], sizes = [2, 221], strides = [1, 1]} : vector<2x256xf32> to vector<2x221xf32>
    %249 = tpu.concatenate %247, %248 in 1 : vector<2x35xf32>, vector<2x221xf32> -> vector<2x256xf32>
    %250 = vector.extract_strided_slice %249 {offsets = [0, 0], sizes = [1, 256], strides = [1, 1]} : vector<2x256xf32> to vector<1x256xf32>
    %c7 = arith.constant 7 : index
    %251 = memref.load %arg2[%c7] : memref<98xf32, #tpu.memory_space<smem>>
    %252 = vector.broadcast %251 : f32 to vector<1x256xf32>
    %253 = arith.mulf %250, %252 : vector<1x256xf32>
    %254 = vector.extract_strided_slice %249 {offsets = [1, 0], sizes = [1, 256], strides = [1, 1]} : vector<2x256xf32> to vector<1x256xf32>
    %c56 = arith.constant 56 : index
    %255 = memref.load %arg2[%c56] : memref<98xf32, #tpu.memory_space<smem>>
    %256 = vector.broadcast %255 : f32 to vector<1x256xf32>
    %257 = arith.mulf %254, %256 : vector<1x256xf32>
    %258 = arith.addf %253, %257 : vector<1x256xf32>
    %259 = arith.andi %25, %79 : vector<1x256xi1>
    %cst_65 = arith.constant 0.000000e+00 : f32
    %260 = vector.broadcast %cst_65 : f32 to vector<1x256xf32>
    %261 = arith.select %259, %258, %260 : vector<1x256xi1>, vector<1x256xf32>
    %262 = arith.addf %246, %261 : vector<1x256xf32>
    %263 = vector.extract_strided_slice %5 {offsets = [0, 222], sizes = [2, 34], strides = [1, 1]} : vector<2x256xf32> to vector<2x34xf32>
    %264 = vector.extract_strided_slice %5 {offsets = [0, 0], sizes = [2, 222], strides = [1, 1]} : vector<2x256xf32> to vector<2x222xf32>
    %265 = tpu.concatenate %263, %264 in 1 : vector<2x34xf32>, vector<2x222xf32> -> vector<2x256xf32>
    %266 = vector.extract_strided_slice %265 {offsets = [0, 0], sizes = [1, 256], strides = [1, 1]} : vector<2x256xf32> to vector<1x256xf32>
    %c8 = arith.constant 8 : index
    %267 = memref.load %arg2[%c8] : memref<98xf32, #tpu.memory_space<smem>>
    %268 = vector.broadcast %267 : f32 to vector<1x256xf32>
    %269 = arith.mulf %266, %268 : vector<1x256xf32>
    %270 = vector.extract_strided_slice %265 {offsets = [1, 0], sizes = [1, 256], strides = [1, 1]} : vector<2x256xf32> to vector<1x256xf32>
    %c57 = arith.constant 57 : index
    %271 = memref.load %arg2[%c57] : memref<98xf32, #tpu.memory_space<smem>>
    %272 = vector.broadcast %271 : f32 to vector<1x256xf32>
    %273 = arith.mulf %270, %272 : vector<1x256xf32>
    %274 = arith.addf %269, %273 : vector<1x256xf32>
    %275 = arith.andi %25, %88 : vector<1x256xi1>
    %cst_66 = arith.constant 0.000000e+00 : f32
    %276 = vector.broadcast %cst_66 : f32 to vector<1x256xf32>
    %277 = arith.select %275, %274, %276 : vector<1x256xi1>, vector<1x256xf32>
    %278 = arith.addf %262, %277 : vector<1x256xf32>
    %279 = vector.extract_strided_slice %5 {offsets = [0, 223], sizes = [2, 33], strides = [1, 1]} : vector<2x256xf32> to vector<2x33xf32>
    %280 = vector.extract_strided_slice %5 {offsets = [0, 0], sizes = [2, 223], strides = [1, 1]} : vector<2x256xf32> to vector<2x223xf32>
    %281 = tpu.concatenate %279, %280 in 1 : vector<2x33xf32>, vector<2x223xf32> -> vector<2x256xf32>
    %282 = vector.extract_strided_slice %281 {offsets = [0, 0], sizes = [1, 256], strides = [1, 1]} : vector<2x256xf32> to vector<1x256xf32>
    %c9 = arith.constant 9 : index
    %283 = memref.load %arg2[%c9] : memref<98xf32, #tpu.memory_space<smem>>
    %284 = vector.broadcast %283 : f32 to vector<1x256xf32>
    %285 = arith.mulf %282, %284 : vector<1x256xf32>
    %286 = vector.extract_strided_slice %281 {offsets = [1, 0], sizes = [1, 256], strides = [1, 1]} : vector<2x256xf32> to vector<1x256xf32>
    %c58 = arith.constant 58 : index
    %287 = memref.load %arg2[%c58] : memref<98xf32, #tpu.memory_space<smem>>
    %288 = vector.broadcast %287 : f32 to vector<1x256xf32>
    %289 = arith.mulf %286, %288 : vector<1x256xf32>
    %290 = arith.addf %285, %289 : vector<1x256xf32>
    %291 = arith.andi %25, %97 : vector<1x256xi1>
    %cst_67 = arith.constant 0.000000e+00 : f32
    %292 = vector.broadcast %cst_67 : f32 to vector<1x256xf32>
    %293 = arith.select %291, %290, %292 : vector<1x256xi1>, vector<1x256xf32>
    %294 = arith.addf %278, %293 : vector<1x256xf32>
    %295 = vector.extract_strided_slice %5 {offsets = [0, 224], sizes = [2, 32], strides = [1, 1]} : vector<2x256xf32> to vector<2x32xf32>
    %296 = vector.extract_strided_slice %5 {offsets = [0, 0], sizes = [2, 224], strides = [1, 1]} : vector<2x256xf32> to vector<2x224xf32>
    %297 = tpu.concatenate %295, %296 in 1 : vector<2x32xf32>, vector<2x224xf32> -> vector<2x256xf32>
    %298 = vector.extract_strided_slice %297 {offsets = [0, 0], sizes = [1, 256], strides = [1, 1]} : vector<2x256xf32> to vector<1x256xf32>
    %c10 = arith.constant 10 : index
    %299 = memref.load %arg2[%c10] : memref<98xf32, #tpu.memory_space<smem>>
    %300 = vector.broadcast %299 : f32 to vector<1x256xf32>
    %301 = arith.mulf %298, %300 : vector<1x256xf32>
    %302 = vector.extract_strided_slice %297 {offsets = [1, 0], sizes = [1, 256], strides = [1, 1]} : vector<2x256xf32> to vector<1x256xf32>
    %c59 = arith.constant 59 : index
    %303 = memref.load %arg2[%c59] : memref<98xf32, #tpu.memory_space<smem>>
    %304 = vector.broadcast %303 : f32 to vector<1x256xf32>
    %305 = arith.mulf %302, %304 : vector<1x256xf32>
    %306 = arith.addf %301, %305 : vector<1x256xf32>
    %307 = arith.andi %25, %106 : vector<1x256xi1>
    %cst_68 = arith.constant 0.000000e+00 : f32
    %308 = vector.broadcast %cst_68 : f32 to vector<1x256xf32>
    %309 = arith.select %307, %306, %308 : vector<1x256xi1>, vector<1x256xf32>
    %310 = arith.addf %294, %309 : vector<1x256xf32>
    %311 = vector.extract_strided_slice %5 {offsets = [0, 225], sizes = [2, 31], strides = [1, 1]} : vector<2x256xf32> to vector<2x31xf32>
    %312 = vector.extract_strided_slice %5 {offsets = [0, 0], sizes = [2, 225], strides = [1, 1]} : vector<2x256xf32> to vector<2x225xf32>
    %313 = tpu.concatenate %311, %312 in 1 : vector<2x31xf32>, vector<2x225xf32> -> vector<2x256xf32>
    %314 = vector.extract_strided_slice %313 {offsets = [0, 0], sizes = [1, 256], strides = [1, 1]} : vector<2x256xf32> to vector<1x256xf32>
    %c11 = arith.constant 11 : index
    %315 = memref.load %arg2[%c11] : memref<98xf32, #tpu.memory_space<smem>>
    %316 = vector.broadcast %315 : f32 to vector<1x256xf32>
    %317 = arith.mulf %314, %316 : vector<1x256xf32>
    %318 = vector.extract_strided_slice %313 {offsets = [1, 0], sizes = [1, 256], strides = [1, 1]} : vector<2x256xf32> to vector<1x256xf32>
    %c60 = arith.constant 60 : index
    %319 = memref.load %arg2[%c60] : memref<98xf32, #tpu.memory_space<smem>>
    %320 = vector.broadcast %319 : f32 to vector<1x256xf32>
    %321 = arith.mulf %318, %320 : vector<1x256xf32>
    %322 = arith.addf %317, %321 : vector<1x256xf32>
    %323 = arith.andi %25, %115 : vector<1x256xi1>
    %cst_69 = arith.constant 0.000000e+00 : f32
    %324 = vector.broadcast %cst_69 : f32 to vector<1x256xf32>
    %325 = arith.select %323, %322, %324 : vector<1x256xi1>, vector<1x256xf32>
    %326 = arith.addf %310, %325 : vector<1x256xf32>
    %327 = vector.extract_strided_slice %5 {offsets = [0, 226], sizes = [2, 30], strides = [1, 1]} : vector<2x256xf32> to vector<2x30xf32>
    %328 = vector.extract_strided_slice %5 {offsets = [0, 0], sizes = [2, 226], strides = [1, 1]} : vector<2x256xf32> to vector<2x226xf32>
    %329 = tpu.concatenate %327, %328 in 1 : vector<2x30xf32>, vector<2x226xf32> -> vector<2x256xf32>
    %330 = vector.extract_strided_slice %329 {offsets = [0, 0], sizes = [1, 256], strides = [1, 1]} : vector<2x256xf32> to vector<1x256xf32>
    %c12 = arith.constant 12 : index
    %331 = memref.load %arg2[%c12] : memref<98xf32, #tpu.memory_space<smem>>
    %332 = vector.broadcast %331 : f32 to vector<1x256xf32>
    %333 = arith.mulf %330, %332 : vector<1x256xf32>
    %334 = vector.extract_strided_slice %329 {offsets = [1, 0], sizes = [1, 256], strides = [1, 1]} : vector<2x256xf32> to vector<1x256xf32>
    %c61 = arith.constant 61 : index
    %335 = memref.load %arg2[%c61] : memref<98xf32, #tpu.memory_space<smem>>
    %336 = vector.broadcast %335 : f32 to vector<1x256xf32>
    %337 = arith.mulf %334, %336 : vector<1x256xf32>
    %338 = arith.addf %333, %337 : vector<1x256xf32>
    %339 = arith.andi %25, %124 : vector<1x256xi1>
    %cst_70 = arith.constant 0.000000e+00 : f32
    %340 = vector.broadcast %cst_70 : f32 to vector<1x256xf32>
    %341 = arith.select %339, %338, %340 : vector<1x256xi1>, vector<1x256xf32>
    %342 = arith.addf %326, %341 : vector<1x256xf32>
    %343 = vector.extract_strided_slice %5 {offsets = [0, 227], sizes = [2, 29], strides = [1, 1]} : vector<2x256xf32> to vector<2x29xf32>
    %344 = vector.extract_strided_slice %5 {offsets = [0, 0], sizes = [2, 227], strides = [1, 1]} : vector<2x256xf32> to vector<2x227xf32>
    %345 = tpu.concatenate %343, %344 in 1 : vector<2x29xf32>, vector<2x227xf32> -> vector<2x256xf32>
    %346 = vector.extract_strided_slice %345 {offsets = [0, 0], sizes = [1, 256], strides = [1, 1]} : vector<2x256xf32> to vector<1x256xf32>
    %c13 = arith.constant 13 : index
    %347 = memref.load %arg2[%c13] : memref<98xf32, #tpu.memory_space<smem>>
    %348 = vector.broadcast %347 : f32 to vector<1x256xf32>
    %349 = arith.mulf %346, %348 : vector<1x256xf32>
    %350 = vector.extract_strided_slice %345 {offsets = [1, 0], sizes = [1, 256], strides = [1, 1]} : vector<2x256xf32> to vector<1x256xf32>
    %c62 = arith.constant 62 : index
    %351 = memref.load %arg2[%c62] : memref<98xf32, #tpu.memory_space<smem>>
    %352 = vector.broadcast %351 : f32 to vector<1x256xf32>
    %353 = arith.mulf %350, %352 : vector<1x256xf32>
    %354 = arith.addf %349, %353 : vector<1x256xf32>
    %355 = arith.andi %25, %133 : vector<1x256xi1>
    %cst_71 = arith.constant 0.000000e+00 : f32
    %356 = vector.broadcast %cst_71 : f32 to vector<1x256xf32>
    %357 = arith.select %355, %354, %356 : vector<1x256xi1>, vector<1x256xf32>
    %358 = arith.addf %342, %357 : vector<1x256xf32>
    %359 = vector.extract_strided_slice %5 {offsets = [0, 237], sizes = [2, 19], strides = [1, 1]} : vector<2x256xf32> to vector<2x19xf32>
    %360 = vector.extract_strided_slice %5 {offsets = [0, 0], sizes = [2, 237], strides = [1, 1]} : vector<2x256xf32> to vector<2x237xf32>
    %361 = tpu.concatenate %359, %360 in 1 : vector<2x19xf32>, vector<2x237xf32> -> vector<2x256xf32>
    %362 = vector.extract_strided_slice %361 {offsets = [0, 0], sizes = [1, 256], strides = [1, 1]} : vector<2x256xf32> to vector<1x256xf32>
    %c14 = arith.constant 14 : index
    %363 = memref.load %arg2[%c14] : memref<98xf32, #tpu.memory_space<smem>>
    %364 = vector.broadcast %363 : f32 to vector<1x256xf32>
    %365 = arith.mulf %362, %364 : vector<1x256xf32>
    %366 = vector.extract_strided_slice %361 {offsets = [1, 0], sizes = [1, 256], strides = [1, 1]} : vector<2x256xf32> to vector<1x256xf32>
    %c63 = arith.constant 63 : index
    %367 = memref.load %arg2[%c63] : memref<98xf32, #tpu.memory_space<smem>>
    %368 = vector.broadcast %367 : f32 to vector<1x256xf32>
    %369 = arith.mulf %366, %368 : vector<1x256xf32>
    %370 = arith.addf %365, %369 : vector<1x256xf32>
    %371 = arith.andi %34, %79 : vector<1x256xi1>
    %cst_72 = arith.constant 0.000000e+00 : f32
    %372 = vector.broadcast %cst_72 : f32 to vector<1x256xf32>
    %373 = arith.select %371, %370, %372 : vector<1x256xi1>, vector<1x256xf32>
    %374 = arith.addf %358, %373 : vector<1x256xf32>
    %375 = vector.extract_strided_slice %5 {offsets = [0, 238], sizes = [2, 18], strides = [1, 1]} : vector<2x256xf32> to vector<2x18xf32>
    %376 = vector.extract_strided_slice %5 {offsets = [0, 0], sizes = [2, 238], strides = [1, 1]} : vector<2x256xf32> to vector<2x238xf32>
    %377 = tpu.concatenate %375, %376 in 1 : vector<2x18xf32>, vector<2x238xf32> -> vector<2x256xf32>
    %378 = vector.extract_strided_slice %377 {offsets = [0, 0], sizes = [1, 256], strides = [1, 1]} : vector<2x256xf32> to vector<1x256xf32>
    %c15 = arith.constant 15 : index
    %379 = memref.load %arg2[%c15] : memref<98xf32, #tpu.memory_space<smem>>
    %380 = vector.broadcast %379 : f32 to vector<1x256xf32>
    %381 = arith.mulf %378, %380 : vector<1x256xf32>
    %382 = vector.extract_strided_slice %377 {offsets = [1, 0], sizes = [1, 256], strides = [1, 1]} : vector<2x256xf32> to vector<1x256xf32>
    %c64 = arith.constant 64 : index
    %383 = memref.load %arg2[%c64] : memref<98xf32, #tpu.memory_space<smem>>
    %384 = vector.broadcast %383 : f32 to vector<1x256xf32>
    %385 = arith.mulf %382, %384 : vector<1x256xf32>
    %386 = arith.addf %381, %385 : vector<1x256xf32>
    %387 = arith.andi %34, %88 : vector<1x256xi1>
    %cst_73 = arith.constant 0.000000e+00 : f32
    %388 = vector.broadcast %cst_73 : f32 to vector<1x256xf32>
    %389 = arith.select %387, %386, %388 : vector<1x256xi1>, vector<1x256xf32>
    %390 = arith.addf %374, %389 : vector<1x256xf32>
    %391 = vector.extract_strided_slice %5 {offsets = [0, 239], sizes = [2, 17], strides = [1, 1]} : vector<2x256xf32> to vector<2x17xf32>
    %392 = vector.extract_strided_slice %5 {offsets = [0, 0], sizes = [2, 239], strides = [1, 1]} : vector<2x256xf32> to vector<2x239xf32>
    %393 = tpu.concatenate %391, %392 in 1 : vector<2x17xf32>, vector<2x239xf32> -> vector<2x256xf32>
    %394 = vector.extract_strided_slice %393 {offsets = [0, 0], sizes = [1, 256], strides = [1, 1]} : vector<2x256xf32> to vector<1x256xf32>
    %c16 = arith.constant 16 : index
    %395 = memref.load %arg2[%c16] : memref<98xf32, #tpu.memory_space<smem>>
    %396 = vector.broadcast %395 : f32 to vector<1x256xf32>
    %397 = arith.mulf %394, %396 : vector<1x256xf32>
    %398 = vector.extract_strided_slice %393 {offsets = [1, 0], sizes = [1, 256], strides = [1, 1]} : vector<2x256xf32> to vector<1x256xf32>
    %c65 = arith.constant 65 : index
    %399 = memref.load %arg2[%c65] : memref<98xf32, #tpu.memory_space<smem>>
    %400 = vector.broadcast %399 : f32 to vector<1x256xf32>
    %401 = arith.mulf %398, %400 : vector<1x256xf32>
    %402 = arith.addf %397, %401 : vector<1x256xf32>
    %403 = arith.andi %34, %97 : vector<1x256xi1>
    %cst_74 = arith.constant 0.000000e+00 : f32
    %404 = vector.broadcast %cst_74 : f32 to vector<1x256xf32>
    %405 = arith.select %403, %402, %404 : vector<1x256xi1>, vector<1x256xf32>
    %406 = arith.addf %390, %405 : vector<1x256xf32>
    %407 = vector.extract_strided_slice %5 {offsets = [0, 240], sizes = [2, 16], strides = [1, 1]} : vector<2x256xf32> to vector<2x16xf32>
    %408 = vector.extract_strided_slice %5 {offsets = [0, 0], sizes = [2, 240], strides = [1, 1]} : vector<2x256xf32> to vector<2x240xf32>
    %409 = tpu.concatenate %407, %408 in 1 : vector<2x16xf32>, vector<2x240xf32> -> vector<2x256xf32>
    %410 = vector.extract_strided_slice %409 {offsets = [0, 0], sizes = [1, 256], strides = [1, 1]} : vector<2x256xf32> to vector<1x256xf32>
    %c17 = arith.constant 17 : index
    %411 = memref.load %arg2[%c17] : memref<98xf32, #tpu.memory_space<smem>>
    %412 = vector.broadcast %411 : f32 to vector<1x256xf32>
    %413 = arith.mulf %410, %412 : vector<1x256xf32>
    %414 = vector.extract_strided_slice %409 {offsets = [1, 0], sizes = [1, 256], strides = [1, 1]} : vector<2x256xf32> to vector<1x256xf32>
    %c66 = arith.constant 66 : index
    %415 = memref.load %arg2[%c66] : memref<98xf32, #tpu.memory_space<smem>>
    %416 = vector.broadcast %415 : f32 to vector<1x256xf32>
    %417 = arith.mulf %414, %416 : vector<1x256xf32>
    %418 = arith.addf %413, %417 : vector<1x256xf32>
    %419 = arith.andi %34, %106 : vector<1x256xi1>
    %cst_75 = arith.constant 0.000000e+00 : f32
    %420 = vector.broadcast %cst_75 : f32 to vector<1x256xf32>
    %421 = arith.select %419, %418, %420 : vector<1x256xi1>, vector<1x256xf32>
    %422 = arith.addf %406, %421 : vector<1x256xf32>
    %423 = vector.extract_strided_slice %5 {offsets = [0, 241], sizes = [2, 15], strides = [1, 1]} : vector<2x256xf32> to vector<2x15xf32>
    %424 = vector.extract_strided_slice %5 {offsets = [0, 0], sizes = [2, 241], strides = [1, 1]} : vector<2x256xf32> to vector<2x241xf32>
    %425 = tpu.concatenate %423, %424 in 1 : vector<2x15xf32>, vector<2x241xf32> -> vector<2x256xf32>
    %426 = vector.extract_strided_slice %425 {offsets = [0, 0], sizes = [1, 256], strides = [1, 1]} : vector<2x256xf32> to vector<1x256xf32>
    %c18 = arith.constant 18 : index
    %427 = memref.load %arg2[%c18] : memref<98xf32, #tpu.memory_space<smem>>
    %428 = vector.broadcast %427 : f32 to vector<1x256xf32>
    %429 = arith.mulf %426, %428 : vector<1x256xf32>
    %430 = vector.extract_strided_slice %425 {offsets = [1, 0], sizes = [1, 256], strides = [1, 1]} : vector<2x256xf32> to vector<1x256xf32>
    %c67 = arith.constant 67 : index
    %431 = memref.load %arg2[%c67] : memref<98xf32, #tpu.memory_space<smem>>
    %432 = vector.broadcast %431 : f32 to vector<1x256xf32>
    %433 = arith.mulf %430, %432 : vector<1x256xf32>
    %434 = arith.addf %429, %433 : vector<1x256xf32>
    %435 = arith.andi %34, %115 : vector<1x256xi1>
    %cst_76 = arith.constant 0.000000e+00 : f32
    %436 = vector.broadcast %cst_76 : f32 to vector<1x256xf32>
    %437 = arith.select %435, %434, %436 : vector<1x256xi1>, vector<1x256xf32>
    %438 = arith.addf %422, %437 : vector<1x256xf32>
    %439 = vector.extract_strided_slice %5 {offsets = [0, 242], sizes = [2, 14], strides = [1, 1]} : vector<2x256xf32> to vector<2x14xf32>
    %440 = vector.extract_strided_slice %5 {offsets = [0, 0], sizes = [2, 242], strides = [1, 1]} : vector<2x256xf32> to vector<2x242xf32>
    %441 = tpu.concatenate %439, %440 in 1 : vector<2x14xf32>, vector<2x242xf32> -> vector<2x256xf32>
    %442 = vector.extract_strided_slice %441 {offsets = [0, 0], sizes = [1, 256], strides = [1, 1]} : vector<2x256xf32> to vector<1x256xf32>
    %c19 = arith.constant 19 : index
    %443 = memref.load %arg2[%c19] : memref<98xf32, #tpu.memory_space<smem>>
    %444 = vector.broadcast %443 : f32 to vector<1x256xf32>
    %445 = arith.mulf %442, %444 : vector<1x256xf32>
    %446 = vector.extract_strided_slice %441 {offsets = [1, 0], sizes = [1, 256], strides = [1, 1]} : vector<2x256xf32> to vector<1x256xf32>
    %c68 = arith.constant 68 : index
    %447 = memref.load %arg2[%c68] : memref<98xf32, #tpu.memory_space<smem>>
    %448 = vector.broadcast %447 : f32 to vector<1x256xf32>
    %449 = arith.mulf %446, %448 : vector<1x256xf32>
    %450 = arith.addf %445, %449 : vector<1x256xf32>
    %451 = arith.andi %34, %124 : vector<1x256xi1>
    %cst_77 = arith.constant 0.000000e+00 : f32
    %452 = vector.broadcast %cst_77 : f32 to vector<1x256xf32>
    %453 = arith.select %451, %450, %452 : vector<1x256xi1>, vector<1x256xf32>
    %454 = arith.addf %438, %453 : vector<1x256xf32>
    %455 = vector.extract_strided_slice %5 {offsets = [0, 243], sizes = [2, 13], strides = [1, 1]} : vector<2x256xf32> to vector<2x13xf32>
    %456 = vector.extract_strided_slice %5 {offsets = [0, 0], sizes = [2, 243], strides = [1, 1]} : vector<2x256xf32> to vector<2x243xf32>
    %457 = tpu.concatenate %455, %456 in 1 : vector<2x13xf32>, vector<2x243xf32> -> vector<2x256xf32>
    %458 = vector.extract_strided_slice %457 {offsets = [0, 0], sizes = [1, 256], strides = [1, 1]} : vector<2x256xf32> to vector<1x256xf32>
    %c20 = arith.constant 20 : index
    %459 = memref.load %arg2[%c20] : memref<98xf32, #tpu.memory_space<smem>>
    %460 = vector.broadcast %459 : f32 to vector<1x256xf32>
    %461 = arith.mulf %458, %460 : vector<1x256xf32>
    %462 = vector.extract_strided_slice %457 {offsets = [1, 0], sizes = [1, 256], strides = [1, 1]} : vector<2x256xf32> to vector<1x256xf32>
    %c69 = arith.constant 69 : index
    %463 = memref.load %arg2[%c69] : memref<98xf32, #tpu.memory_space<smem>>
    %464 = vector.broadcast %463 : f32 to vector<1x256xf32>
    %465 = arith.mulf %462, %464 : vector<1x256xf32>
    %466 = arith.addf %461, %465 : vector<1x256xf32>
    %467 = arith.andi %34, %133 : vector<1x256xi1>
    %cst_78 = arith.constant 0.000000e+00 : f32
    %468 = vector.broadcast %cst_78 : f32 to vector<1x256xf32>
    %469 = arith.select %467, %466, %468 : vector<1x256xi1>, vector<1x256xf32>
    %470 = arith.addf %454, %469 : vector<1x256xf32>
    %471 = vector.extract_strided_slice %5 {offsets = [0, 253], sizes = [2, 3], strides = [1, 1]} : vector<2x256xf32> to vector<2x3xf32>
    %472 = vector.extract_strided_slice %5 {offsets = [0, 0], sizes = [2, 253], strides = [1, 1]} : vector<2x256xf32> to vector<2x253xf32>
    %473 = tpu.concatenate %471, %472 in 1 : vector<2x3xf32>, vector<2x253xf32> -> vector<2x256xf32>
    %474 = vector.extract_strided_slice %473 {offsets = [0, 0], sizes = [1, 256], strides = [1, 1]} : vector<2x256xf32> to vector<1x256xf32>
    %c21 = arith.constant 21 : index
    %475 = memref.load %arg2[%c21] : memref<98xf32, #tpu.memory_space<smem>>
    %476 = vector.broadcast %475 : f32 to vector<1x256xf32>
    %477 = arith.mulf %474, %476 : vector<1x256xf32>
    %478 = vector.extract_strided_slice %473 {offsets = [1, 0], sizes = [1, 256], strides = [1, 1]} : vector<2x256xf32> to vector<1x256xf32>
    %c70 = arith.constant 70 : index
    %479 = memref.load %arg2[%c70] : memref<98xf32, #tpu.memory_space<smem>>
    %480 = vector.broadcast %479 : f32 to vector<1x256xf32>
    %481 = arith.mulf %478, %480 : vector<1x256xf32>
    %482 = arith.addf %477, %481 : vector<1x256xf32>
    %483 = arith.andi %43, %79 : vector<1x256xi1>
    %cst_79 = arith.constant 0.000000e+00 : f32
    %484 = vector.broadcast %cst_79 : f32 to vector<1x256xf32>
    %485 = arith.select %483, %482, %484 : vector<1x256xi1>, vector<1x256xf32>
    %486 = arith.addf %470, %485 : vector<1x256xf32>
    %487 = vector.extract_strided_slice %5 {offsets = [0, 254], sizes = [2, 2], strides = [1, 1]} : vector<2x256xf32> to vector<2x2xf32>
    %488 = vector.extract_strided_slice %5 {offsets = [0, 0], sizes = [2, 254], strides = [1, 1]} : vector<2x256xf32> to vector<2x254xf32>
    %489 = tpu.concatenate %487, %488 in 1 : vector<2x2xf32>, vector<2x254xf32> -> vector<2x256xf32>
    %490 = vector.extract_strided_slice %489 {offsets = [0, 0], sizes = [1, 256], strides = [1, 1]} : vector<2x256xf32> to vector<1x256xf32>
    %c22 = arith.constant 22 : index
    %491 = memref.load %arg2[%c22] : memref<98xf32, #tpu.memory_space<smem>>
    %492 = vector.broadcast %491 : f32 to vector<1x256xf32>
    %493 = arith.mulf %490, %492 : vector<1x256xf32>
    %494 = vector.extract_strided_slice %489 {offsets = [1, 0], sizes = [1, 256], strides = [1, 1]} : vector<2x256xf32> to vector<1x256xf32>
    %c71 = arith.constant 71 : index
    %495 = memref.load %arg2[%c71] : memref<98xf32, #tpu.memory_space<smem>>
    %496 = vector.broadcast %495 : f32 to vector<1x256xf32>
    %497 = arith.mulf %494, %496 : vector<1x256xf32>
    %498 = arith.addf %493, %497 : vector<1x256xf32>
    %499 = arith.andi %43, %88 : vector<1x256xi1>
    %cst_80 = arith.constant 0.000000e+00 : f32
    %500 = vector.broadcast %cst_80 : f32 to vector<1x256xf32>
    %501 = arith.select %499, %498, %500 : vector<1x256xi1>, vector<1x256xf32>
    %502 = arith.addf %486, %501 : vector<1x256xf32>
    %503 = vector.extract_strided_slice %5 {offsets = [0, 255], sizes = [2, 1], strides = [1, 1]} : vector<2x256xf32> to vector<2x1xf32>
    %504 = vector.extract_strided_slice %5 {offsets = [0, 0], sizes = [2, 255], strides = [1, 1]} : vector<2x256xf32> to vector<2x255xf32>
    %505 = tpu.concatenate %503, %504 in 1 : vector<2x1xf32>, vector<2x255xf32> -> vector<2x256xf32>
    %506 = vector.extract_strided_slice %505 {offsets = [0, 0], sizes = [1, 256], strides = [1, 1]} : vector<2x256xf32> to vector<1x256xf32>
    %c23 = arith.constant 23 : index
    %507 = memref.load %arg2[%c23] : memref<98xf32, #tpu.memory_space<smem>>
    %508 = vector.broadcast %507 : f32 to vector<1x256xf32>
    %509 = arith.mulf %506, %508 : vector<1x256xf32>
    %510 = vector.extract_strided_slice %505 {offsets = [1, 0], sizes = [1, 256], strides = [1, 1]} : vector<2x256xf32> to vector<1x256xf32>
    %c72 = arith.constant 72 : index
    %511 = memref.load %arg2[%c72] : memref<98xf32, #tpu.memory_space<smem>>
    %512 = vector.broadcast %511 : f32 to vector<1x256xf32>
    %513 = arith.mulf %510, %512 : vector<1x256xf32>
    %514 = arith.addf %509, %513 : vector<1x256xf32>
    %515 = arith.andi %43, %97 : vector<1x256xi1>
    %cst_81 = arith.constant 0.000000e+00 : f32
    %516 = vector.broadcast %cst_81 : f32 to vector<1x256xf32>
    %517 = arith.select %515, %514, %516 : vector<1x256xi1>, vector<1x256xf32>
    %518 = arith.addf %502, %517 : vector<1x256xf32>
    %519 = vector.extract_strided_slice %5 {offsets = [0, 0], sizes = [1, 256], strides = [1, 1]} : vector<2x256xf32> to vector<1x256xf32>
    %c24 = arith.constant 24 : index
    %520 = memref.load %arg2[%c24] : memref<98xf32, #tpu.memory_space<smem>>
    %521 = vector.broadcast %520 : f32 to vector<1x256xf32>
    %522 = arith.mulf %519, %521 : vector<1x256xf32>
    %523 = vector.extract_strided_slice %5 {offsets = [1, 0], sizes = [1, 256], strides = [1, 1]} : vector<2x256xf32> to vector<1x256xf32>
    %c73 = arith.constant 73 : index
    %524 = memref.load %arg2[%c73] : memref<98xf32, #tpu.memory_space<smem>>
    %525 = vector.broadcast %524 : f32 to vector<1x256xf32>
    %526 = arith.mulf %523, %525 : vector<1x256xf32>
    %527 = arith.addf %522, %526 : vector<1x256xf32>
    %528 = arith.andi %43, %106 : vector<1x256xi1>
    %cst_82 = arith.constant 0.000000e+00 : f32
    %529 = vector.broadcast %cst_82 : f32 to vector<1x256xf32>
    %530 = arith.select %528, %527, %529 : vector<1x256xi1>, vector<1x256xf32>
    %531 = arith.addf %518, %530 : vector<1x256xf32>
    %532 = vector.extract_strided_slice %5 {offsets = [0, 1], sizes = [2, 255], strides = [1, 1]} : vector<2x256xf32> to vector<2x255xf32>
    %533 = vector.extract_strided_slice %5 {offsets = [0, 0], sizes = [2, 1], strides = [1, 1]} : vector<2x256xf32> to vector<2x1xf32>
    %534 = tpu.concatenate %532, %533 in 1 : vector<2x255xf32>, vector<2x1xf32> -> vector<2x256xf32>
    %535 = vector.extract_strided_slice %534 {offsets = [0, 0], sizes = [1, 256], strides = [1, 1]} : vector<2x256xf32> to vector<1x256xf32>
    %c25 = arith.constant 25 : index
    %536 = memref.load %arg2[%c25] : memref<98xf32, #tpu.memory_space<smem>>
    %537 = vector.broadcast %536 : f32 to vector<1x256xf32>
    %538 = arith.mulf %535, %537 : vector<1x256xf32>
    %539 = vector.extract_strided_slice %534 {offsets = [1, 0], sizes = [1, 256], strides = [1, 1]} : vector<2x256xf32> to vector<1x256xf32>
    %c74 = arith.constant 74 : index
    %540 = memref.load %arg2[%c74] : memref<98xf32, #tpu.memory_space<smem>>
    %541 = vector.broadcast %540 : f32 to vector<1x256xf32>
    %542 = arith.mulf %539, %541 : vector<1x256xf32>
    %543 = arith.addf %538, %542 : vector<1x256xf32>
    %544 = arith.andi %43, %115 : vector<1x256xi1>
    %cst_83 = arith.constant 0.000000e+00 : f32
    %545 = vector.broadcast %cst_83 : f32 to vector<1x256xf32>
    %546 = arith.select %544, %543, %545 : vector<1x256xi1>, vector<1x256xf32>
    %547 = arith.addf %531, %546 : vector<1x256xf32>
    %548 = vector.extract_strided_slice %5 {offsets = [0, 2], sizes = [2, 254], strides = [1, 1]} : vector<2x256xf32> to vector<2x254xf32>
    %549 = vector.extract_strided_slice %5 {offsets = [0, 0], sizes = [2, 2], strides = [1, 1]} : vector<2x256xf32> to vector<2x2xf32>
    %550 = tpu.concatenate %548, %549 in 1 : vector<2x254xf32>, vector<2x2xf32> -> vector<2x256xf32>
    %551 = vector.extract_strided_slice %550 {offsets = [0, 0], sizes = [1, 256], strides = [1, 1]} : vector<2x256xf32> to vector<1x256xf32>
    %c26 = arith.constant 26 : index
    %552 = memref.load %arg2[%c26] : memref<98xf32, #tpu.memory_space<smem>>
    %553 = vector.broadcast %552 : f32 to vector<1x256xf32>
    %554 = arith.mulf %551, %553 : vector<1x256xf32>
    %555 = vector.extract_strided_slice %550 {offsets = [1, 0], sizes = [1, 256], strides = [1, 1]} : vector<2x256xf32> to vector<1x256xf32>
    %c75 = arith.constant 75 : index
    %556 = memref.load %arg2[%c75] : memref<98xf32, #tpu.memory_space<smem>>
    %557 = vector.broadcast %556 : f32 to vector<1x256xf32>
    %558 = arith.mulf %555, %557 : vector<1x256xf32>
    %559 = arith.addf %554, %558 : vector<1x256xf32>
    %560 = arith.andi %43, %124 : vector<1x256xi1>
    %cst_84 = arith.constant 0.000000e+00 : f32
    %561 = vector.broadcast %cst_84 : f32 to vector<1x256xf32>
    %562 = arith.select %560, %559, %561 : vector<1x256xi1>, vector<1x256xf32>
    %563 = arith.addf %547, %562 : vector<1x256xf32>
    %564 = vector.extract_strided_slice %5 {offsets = [0, 3], sizes = [2, 253], strides = [1, 1]} : vector<2x256xf32> to vector<2x253xf32>
    %565 = vector.extract_strided_slice %5 {offsets = [0, 0], sizes = [2, 3], strides = [1, 1]} : vector<2x256xf32> to vector<2x3xf32>
    %566 = tpu.concatenate %564, %565 in 1 : vector<2x253xf32>, vector<2x3xf32> -> vector<2x256xf32>
    %567 = vector.extract_strided_slice %566 {offsets = [0, 0], sizes = [1, 256], strides = [1, 1]} : vector<2x256xf32> to vector<1x256xf32>
    %c27 = arith.constant 27 : index
    %568 = memref.load %arg2[%c27] : memref<98xf32, #tpu.memory_space<smem>>
    %569 = vector.broadcast %568 : f32 to vector<1x256xf32>
    %570 = arith.mulf %567, %569 : vector<1x256xf32>
    %571 = vector.extract_strided_slice %566 {offsets = [1, 0], sizes = [1, 256], strides = [1, 1]} : vector<2x256xf32> to vector<1x256xf32>
    %c76 = arith.constant 76 : index
    %572 = memref.load %arg2[%c76] : memref<98xf32, #tpu.memory_space<smem>>
    %573 = vector.broadcast %572 : f32 to vector<1x256xf32>
    %574 = arith.mulf %571, %573 : vector<1x256xf32>
    %575 = arith.addf %570, %574 : vector<1x256xf32>
    %576 = arith.andi %43, %133 : vector<1x256xi1>
    %cst_85 = arith.constant 0.000000e+00 : f32
    %577 = vector.broadcast %cst_85 : f32 to vector<1x256xf32>
    %578 = arith.select %576, %575, %577 : vector<1x256xi1>, vector<1x256xf32>
    %579 = arith.addf %563, %578 : vector<1x256xf32>
    %580 = vector.extract_strided_slice %5 {offsets = [0, 13], sizes = [2, 243], strides = [1, 1]} : vector<2x256xf32> to vector<2x243xf32>
    %581 = vector.extract_strided_slice %5 {offsets = [0, 0], sizes = [2, 13], strides = [1, 1]} : vector<2x256xf32> to vector<2x13xf32>
    %582 = tpu.concatenate %580, %581 in 1 : vector<2x243xf32>, vector<2x13xf32> -> vector<2x256xf32>
    %583 = vector.extract_strided_slice %582 {offsets = [0, 0], sizes = [1, 256], strides = [1, 1]} : vector<2x256xf32> to vector<1x256xf32>
    %c28 = arith.constant 28 : index
    %584 = memref.load %arg2[%c28] : memref<98xf32, #tpu.memory_space<smem>>
    %585 = vector.broadcast %584 : f32 to vector<1x256xf32>
    %586 = arith.mulf %583, %585 : vector<1x256xf32>
    %587 = vector.extract_strided_slice %582 {offsets = [1, 0], sizes = [1, 256], strides = [1, 1]} : vector<2x256xf32> to vector<1x256xf32>
    %c77 = arith.constant 77 : index
    %588 = memref.load %arg2[%c77] : memref<98xf32, #tpu.memory_space<smem>>
    %589 = vector.broadcast %588 : f32 to vector<1x256xf32>
    %590 = arith.mulf %587, %589 : vector<1x256xf32>
    %591 = arith.addf %586, %590 : vector<1x256xf32>
    %592 = arith.andi %52, %79 : vector<1x256xi1>
    %cst_86 = arith.constant 0.000000e+00 : f32
    %593 = vector.broadcast %cst_86 : f32 to vector<1x256xf32>
    %594 = arith.select %592, %591, %593 : vector<1x256xi1>, vector<1x256xf32>
    %595 = arith.addf %579, %594 : vector<1x256xf32>
    %596 = vector.extract_strided_slice %5 {offsets = [0, 14], sizes = [2, 242], strides = [1, 1]} : vector<2x256xf32> to vector<2x242xf32>
    %597 = vector.extract_strided_slice %5 {offsets = [0, 0], sizes = [2, 14], strides = [1, 1]} : vector<2x256xf32> to vector<2x14xf32>
    %598 = tpu.concatenate %596, %597 in 1 : vector<2x242xf32>, vector<2x14xf32> -> vector<2x256xf32>
    %599 = vector.extract_strided_slice %598 {offsets = [0, 0], sizes = [1, 256], strides = [1, 1]} : vector<2x256xf32> to vector<1x256xf32>
    %c29 = arith.constant 29 : index
    %600 = memref.load %arg2[%c29] : memref<98xf32, #tpu.memory_space<smem>>
    %601 = vector.broadcast %600 : f32 to vector<1x256xf32>
    %602 = arith.mulf %599, %601 : vector<1x256xf32>
    %603 = vector.extract_strided_slice %598 {offsets = [1, 0], sizes = [1, 256], strides = [1, 1]} : vector<2x256xf32> to vector<1x256xf32>
    %c78 = arith.constant 78 : index
    %604 = memref.load %arg2[%c78] : memref<98xf32, #tpu.memory_space<smem>>
    %605 = vector.broadcast %604 : f32 to vector<1x256xf32>
    %606 = arith.mulf %603, %605 : vector<1x256xf32>
    %607 = arith.addf %602, %606 : vector<1x256xf32>
    %608 = arith.andi %52, %88 : vector<1x256xi1>
    %cst_87 = arith.constant 0.000000e+00 : f32
    %609 = vector.broadcast %cst_87 : f32 to vector<1x256xf32>
    %610 = arith.select %608, %607, %609 : vector<1x256xi1>, vector<1x256xf32>
    %611 = arith.addf %595, %610 : vector<1x256xf32>
    %612 = vector.extract_strided_slice %5 {offsets = [0, 15], sizes = [2, 241], strides = [1, 1]} : vector<2x256xf32> to vector<2x241xf32>
    %613 = vector.extract_strided_slice %5 {offsets = [0, 0], sizes = [2, 15], strides = [1, 1]} : vector<2x256xf32> to vector<2x15xf32>
    %614 = tpu.concatenate %612, %613 in 1 : vector<2x241xf32>, vector<2x15xf32> -> vector<2x256xf32>
    %615 = vector.extract_strided_slice %614 {offsets = [0, 0], sizes = [1, 256], strides = [1, 1]} : vector<2x256xf32> to vector<1x256xf32>
    %c30 = arith.constant 30 : index
    %616 = memref.load %arg2[%c30] : memref<98xf32, #tpu.memory_space<smem>>
    %617 = vector.broadcast %616 : f32 to vector<1x256xf32>
    %618 = arith.mulf %615, %617 : vector<1x256xf32>
    %619 = vector.extract_strided_slice %614 {offsets = [1, 0], sizes = [1, 256], strides = [1, 1]} : vector<2x256xf32> to vector<1x256xf32>
    %c79 = arith.constant 79 : index
    %620 = memref.load %arg2[%c79] : memref<98xf32, #tpu.memory_space<smem>>
    %621 = vector.broadcast %620 : f32 to vector<1x256xf32>
    %622 = arith.mulf %619, %621 : vector<1x256xf32>
    %623 = arith.addf %618, %622 : vector<1x256xf32>
    %624 = arith.andi %52, %97 : vector<1x256xi1>
    %cst_88 = arith.constant 0.000000e+00 : f32
    %625 = vector.broadcast %cst_88 : f32 to vector<1x256xf32>
    %626 = arith.select %624, %623, %625 : vector<1x256xi1>, vector<1x256xf32>
    %627 = arith.addf %611, %626 : vector<1x256xf32>
    %628 = vector.extract_strided_slice %5 {offsets = [0, 16], sizes = [2, 240], strides = [1, 1]} : vector<2x256xf32> to vector<2x240xf32>
    %629 = vector.extract_strided_slice %5 {offsets = [0, 0], sizes = [2, 16], strides = [1, 1]} : vector<2x256xf32> to vector<2x16xf32>
    %630 = tpu.concatenate %628, %629 in 1 : vector<2x240xf32>, vector<2x16xf32> -> vector<2x256xf32>
    %631 = vector.extract_strided_slice %630 {offsets = [0, 0], sizes = [1, 256], strides = [1, 1]} : vector<2x256xf32> to vector<1x256xf32>
    %c31 = arith.constant 31 : index
    %632 = memref.load %arg2[%c31] : memref<98xf32, #tpu.memory_space<smem>>
    %633 = vector.broadcast %632 : f32 to vector<1x256xf32>
    %634 = arith.mulf %631, %633 : vector<1x256xf32>
    %635 = vector.extract_strided_slice %630 {offsets = [1, 0], sizes = [1, 256], strides = [1, 1]} : vector<2x256xf32> to vector<1x256xf32>
    %c80 = arith.constant 80 : index
    %636 = memref.load %arg2[%c80] : memref<98xf32, #tpu.memory_space<smem>>
    %637 = vector.broadcast %636 : f32 to vector<1x256xf32>
    %638 = arith.mulf %635, %637 : vector<1x256xf32>
    %639 = arith.addf %634, %638 : vector<1x256xf32>
    %640 = arith.andi %52, %106 : vector<1x256xi1>
    %cst_89 = arith.constant 0.000000e+00 : f32
    %641 = vector.broadcast %cst_89 : f32 to vector<1x256xf32>
    %642 = arith.select %640, %639, %641 : vector<1x256xi1>, vector<1x256xf32>
    %643 = arith.addf %627, %642 : vector<1x256xf32>
    %644 = vector.extract_strided_slice %5 {offsets = [0, 17], sizes = [2, 239], strides = [1, 1]} : vector<2x256xf32> to vector<2x239xf32>
    %645 = vector.extract_strided_slice %5 {offsets = [0, 0], sizes = [2, 17], strides = [1, 1]} : vector<2x256xf32> to vector<2x17xf32>
    %646 = tpu.concatenate %644, %645 in 1 : vector<2x239xf32>, vector<2x17xf32> -> vector<2x256xf32>
    %647 = vector.extract_strided_slice %646 {offsets = [0, 0], sizes = [1, 256], strides = [1, 1]} : vector<2x256xf32> to vector<1x256xf32>
    %c32 = arith.constant 32 : index
    %648 = memref.load %arg2[%c32] : memref<98xf32, #tpu.memory_space<smem>>
    %649 = vector.broadcast %648 : f32 to vector<1x256xf32>
    %650 = arith.mulf %647, %649 : vector<1x256xf32>
    %651 = vector.extract_strided_slice %646 {offsets = [1, 0], sizes = [1, 256], strides = [1, 1]} : vector<2x256xf32> to vector<1x256xf32>
    %c81 = arith.constant 81 : index
    %652 = memref.load %arg2[%c81] : memref<98xf32, #tpu.memory_space<smem>>
    %653 = vector.broadcast %652 : f32 to vector<1x256xf32>
    %654 = arith.mulf %651, %653 : vector<1x256xf32>
    %655 = arith.addf %650, %654 : vector<1x256xf32>
    %656 = arith.andi %52, %115 : vector<1x256xi1>
    %cst_90 = arith.constant 0.000000e+00 : f32
    %657 = vector.broadcast %cst_90 : f32 to vector<1x256xf32>
    %658 = arith.select %656, %655, %657 : vector<1x256xi1>, vector<1x256xf32>
    %659 = arith.addf %643, %658 : vector<1x256xf32>
    %660 = vector.extract_strided_slice %5 {offsets = [0, 18], sizes = [2, 238], strides = [1, 1]} : vector<2x256xf32> to vector<2x238xf32>
    %661 = vector.extract_strided_slice %5 {offsets = [0, 0], sizes = [2, 18], strides = [1, 1]} : vector<2x256xf32> to vector<2x18xf32>
    %662 = tpu.concatenate %660, %661 in 1 : vector<2x238xf32>, vector<2x18xf32> -> vector<2x256xf32>
    %663 = vector.extract_strided_slice %662 {offsets = [0, 0], sizes = [1, 256], strides = [1, 1]} : vector<2x256xf32> to vector<1x256xf32>
    %c33 = arith.constant 33 : index
    %664 = memref.load %arg2[%c33] : memref<98xf32, #tpu.memory_space<smem>>
    %665 = vector.broadcast %664 : f32 to vector<1x256xf32>
    %666 = arith.mulf %663, %665 : vector<1x256xf32>
    %667 = vector.extract_strided_slice %662 {offsets = [1, 0], sizes = [1, 256], strides = [1, 1]} : vector<2x256xf32> to vector<1x256xf32>
    %c82 = arith.constant 82 : index
    %668 = memref.load %arg2[%c82] : memref<98xf32, #tpu.memory_space<smem>>
    %669 = vector.broadcast %668 : f32 to vector<1x256xf32>
    %670 = arith.mulf %667, %669 : vector<1x256xf32>
    %671 = arith.addf %666, %670 : vector<1x256xf32>
    %672 = arith.andi %52, %124 : vector<1x256xi1>
    %cst_91 = arith.constant 0.000000e+00 : f32
    %673 = vector.broadcast %cst_91 : f32 to vector<1x256xf32>
    %674 = arith.select %672, %671, %673 : vector<1x256xi1>, vector<1x256xf32>
    %675 = arith.addf %659, %674 : vector<1x256xf32>
    %676 = vector.extract_strided_slice %5 {offsets = [0, 19], sizes = [2, 237], strides = [1, 1]} : vector<2x256xf32> to vector<2x237xf32>
    %677 = vector.extract_strided_slice %5 {offsets = [0, 0], sizes = [2, 19], strides = [1, 1]} : vector<2x256xf32> to vector<2x19xf32>
    %678 = tpu.concatenate %676, %677 in 1 : vector<2x237xf32>, vector<2x19xf32> -> vector<2x256xf32>
    %679 = vector.extract_strided_slice %678 {offsets = [0, 0], sizes = [1, 256], strides = [1, 1]} : vector<2x256xf32> to vector<1x256xf32>
    %c34 = arith.constant 34 : index
    %680 = memref.load %arg2[%c34] : memref<98xf32, #tpu.memory_space<smem>>
    %681 = vector.broadcast %680 : f32 to vector<1x256xf32>
    %682 = arith.mulf %679, %681 : vector<1x256xf32>
    %683 = vector.extract_strided_slice %678 {offsets = [1, 0], sizes = [1, 256], strides = [1, 1]} : vector<2x256xf32> to vector<1x256xf32>
    %c83 = arith.constant 83 : index
    %684 = memref.load %arg2[%c83] : memref<98xf32, #tpu.memory_space<smem>>
    %685 = vector.broadcast %684 : f32 to vector<1x256xf32>
    %686 = arith.mulf %683, %685 : vector<1x256xf32>
    %687 = arith.addf %682, %686 : vector<1x256xf32>
    %688 = arith.andi %52, %133 : vector<1x256xi1>
    %cst_92 = arith.constant 0.000000e+00 : f32
    %689 = vector.broadcast %cst_92 : f32 to vector<1x256xf32>
    %690 = arith.select %688, %687, %689 : vector<1x256xi1>, vector<1x256xf32>
    %691 = arith.addf %675, %690 : vector<1x256xf32>
    %692 = vector.extract_strided_slice %5 {offsets = [0, 29], sizes = [2, 227], strides = [1, 1]} : vector<2x256xf32> to vector<2x227xf32>
    %693 = vector.extract_strided_slice %5 {offsets = [0, 0], sizes = [2, 29], strides = [1, 1]} : vector<2x256xf32> to vector<2x29xf32>
    %694 = tpu.concatenate %692, %693 in 1 : vector<2x227xf32>, vector<2x29xf32> -> vector<2x256xf32>
    %695 = vector.extract_strided_slice %694 {offsets = [0, 0], sizes = [1, 256], strides = [1, 1]} : vector<2x256xf32> to vector<1x256xf32>
    %c35 = arith.constant 35 : index
    %696 = memref.load %arg2[%c35] : memref<98xf32, #tpu.memory_space<smem>>
    %697 = vector.broadcast %696 : f32 to vector<1x256xf32>
    %698 = arith.mulf %695, %697 : vector<1x256xf32>
    %699 = vector.extract_strided_slice %694 {offsets = [1, 0], sizes = [1, 256], strides = [1, 1]} : vector<2x256xf32> to vector<1x256xf32>
    %c84 = arith.constant 84 : index
    %700 = memref.load %arg2[%c84] : memref<98xf32, #tpu.memory_space<smem>>
    %701 = vector.broadcast %700 : f32 to vector<1x256xf32>
    %702 = arith.mulf %699, %701 : vector<1x256xf32>
    %703 = arith.addf %698, %702 : vector<1x256xf32>
    %704 = arith.andi %61, %79 : vector<1x256xi1>
    %cst_93 = arith.constant 0.000000e+00 : f32
    %705 = vector.broadcast %cst_93 : f32 to vector<1x256xf32>
    %706 = arith.select %704, %703, %705 : vector<1x256xi1>, vector<1x256xf32>
    %707 = arith.addf %691, %706 : vector<1x256xf32>
    %708 = vector.extract_strided_slice %5 {offsets = [0, 30], sizes = [2, 226], strides = [1, 1]} : vector<2x256xf32> to vector<2x226xf32>
    %709 = vector.extract_strided_slice %5 {offsets = [0, 0], sizes = [2, 30], strides = [1, 1]} : vector<2x256xf32> to vector<2x30xf32>
    %710 = tpu.concatenate %708, %709 in 1 : vector<2x226xf32>, vector<2x30xf32> -> vector<2x256xf32>
    %711 = vector.extract_strided_slice %710 {offsets = [0, 0], sizes = [1, 256], strides = [1, 1]} : vector<2x256xf32> to vector<1x256xf32>
    %c36 = arith.constant 36 : index
    %712 = memref.load %arg2[%c36] : memref<98xf32, #tpu.memory_space<smem>>
    %713 = vector.broadcast %712 : f32 to vector<1x256xf32>
    %714 = arith.mulf %711, %713 : vector<1x256xf32>
    %715 = vector.extract_strided_slice %710 {offsets = [1, 0], sizes = [1, 256], strides = [1, 1]} : vector<2x256xf32> to vector<1x256xf32>
    %c85 = arith.constant 85 : index
    %716 = memref.load %arg2[%c85] : memref<98xf32, #tpu.memory_space<smem>>
    %717 = vector.broadcast %716 : f32 to vector<1x256xf32>
    %718 = arith.mulf %715, %717 : vector<1x256xf32>
    %719 = arith.addf %714, %718 : vector<1x256xf32>
    %720 = arith.andi %61, %88 : vector<1x256xi1>
    %cst_94 = arith.constant 0.000000e+00 : f32
    %721 = vector.broadcast %cst_94 : f32 to vector<1x256xf32>
    %722 = arith.select %720, %719, %721 : vector<1x256xi1>, vector<1x256xf32>
    %723 = arith.addf %707, %722 : vector<1x256xf32>
    %724 = vector.extract_strided_slice %5 {offsets = [0, 31], sizes = [2, 225], strides = [1, 1]} : vector<2x256xf32> to vector<2x225xf32>
    %725 = vector.extract_strided_slice %5 {offsets = [0, 0], sizes = [2, 31], strides = [1, 1]} : vector<2x256xf32> to vector<2x31xf32>
    %726 = tpu.concatenate %724, %725 in 1 : vector<2x225xf32>, vector<2x31xf32> -> vector<2x256xf32>
    %727 = vector.extract_strided_slice %726 {offsets = [0, 0], sizes = [1, 256], strides = [1, 1]} : vector<2x256xf32> to vector<1x256xf32>
    %c37 = arith.constant 37 : index
    %728 = memref.load %arg2[%c37] : memref<98xf32, #tpu.memory_space<smem>>
    %729 = vector.broadcast %728 : f32 to vector<1x256xf32>
    %730 = arith.mulf %727, %729 : vector<1x256xf32>
    %731 = vector.extract_strided_slice %726 {offsets = [1, 0], sizes = [1, 256], strides = [1, 1]} : vector<2x256xf32> to vector<1x256xf32>
    %c86 = arith.constant 86 : index
    %732 = memref.load %arg2[%c86] : memref<98xf32, #tpu.memory_space<smem>>
    %733 = vector.broadcast %732 : f32 to vector<1x256xf32>
    %734 = arith.mulf %731, %733 : vector<1x256xf32>
    %735 = arith.addf %730, %734 : vector<1x256xf32>
    %736 = arith.andi %61, %97 : vector<1x256xi1>
    %cst_95 = arith.constant 0.000000e+00 : f32
    %737 = vector.broadcast %cst_95 : f32 to vector<1x256xf32>
    %738 = arith.select %736, %735, %737 : vector<1x256xi1>, vector<1x256xf32>
    %739 = arith.addf %723, %738 : vector<1x256xf32>
    %740 = vector.extract_strided_slice %5 {offsets = [0, 32], sizes = [2, 224], strides = [1, 1]} : vector<2x256xf32> to vector<2x224xf32>
    %741 = vector.extract_strided_slice %5 {offsets = [0, 0], sizes = [2, 32], strides = [1, 1]} : vector<2x256xf32> to vector<2x32xf32>
    %742 = tpu.concatenate %740, %741 in 1 : vector<2x224xf32>, vector<2x32xf32> -> vector<2x256xf32>
    %743 = vector.extract_strided_slice %742 {offsets = [0, 0], sizes = [1, 256], strides = [1, 1]} : vector<2x256xf32> to vector<1x256xf32>
    %c38 = arith.constant 38 : index
    %744 = memref.load %arg2[%c38] : memref<98xf32, #tpu.memory_space<smem>>
    %745 = vector.broadcast %744 : f32 to vector<1x256xf32>
    %746 = arith.mulf %743, %745 : vector<1x256xf32>
    %747 = vector.extract_strided_slice %742 {offsets = [1, 0], sizes = [1, 256], strides = [1, 1]} : vector<2x256xf32> to vector<1x256xf32>
    %c87 = arith.constant 87 : index
    %748 = memref.load %arg2[%c87] : memref<98xf32, #tpu.memory_space<smem>>
    %749 = vector.broadcast %748 : f32 to vector<1x256xf32>
    %750 = arith.mulf %747, %749 : vector<1x256xf32>
    %751 = arith.addf %746, %750 : vector<1x256xf32>
    %752 = arith.andi %61, %106 : vector<1x256xi1>
    %cst_96 = arith.constant 0.000000e+00 : f32
    %753 = vector.broadcast %cst_96 : f32 to vector<1x256xf32>
    %754 = arith.select %752, %751, %753 : vector<1x256xi1>, vector<1x256xf32>
    %755 = arith.addf %739, %754 : vector<1x256xf32>
    %756 = vector.extract_strided_slice %5 {offsets = [0, 33], sizes = [2, 223], strides = [1, 1]} : vector<2x256xf32> to vector<2x223xf32>
    %757 = vector.extract_strided_slice %5 {offsets = [0, 0], sizes = [2, 33], strides = [1, 1]} : vector<2x256xf32> to vector<2x33xf32>
    %758 = tpu.concatenate %756, %757 in 1 : vector<2x223xf32>, vector<2x33xf32> -> vector<2x256xf32>
    %759 = vector.extract_strided_slice %758 {offsets = [0, 0], sizes = [1, 256], strides = [1, 1]} : vector<2x256xf32> to vector<1x256xf32>
    %c39 = arith.constant 39 : index
    %760 = memref.load %arg2[%c39] : memref<98xf32, #tpu.memory_space<smem>>
    %761 = vector.broadcast %760 : f32 to vector<1x256xf32>
    %762 = arith.mulf %759, %761 : vector<1x256xf32>
    %763 = vector.extract_strided_slice %758 {offsets = [1, 0], sizes = [1, 256], strides = [1, 1]} : vector<2x256xf32> to vector<1x256xf32>
    %c88 = arith.constant 88 : index
    %764 = memref.load %arg2[%c88] : memref<98xf32, #tpu.memory_space<smem>>
    %765 = vector.broadcast %764 : f32 to vector<1x256xf32>
    %766 = arith.mulf %763, %765 : vector<1x256xf32>
    %767 = arith.addf %762, %766 : vector<1x256xf32>
    %768 = arith.andi %61, %115 : vector<1x256xi1>
    %cst_97 = arith.constant 0.000000e+00 : f32
    %769 = vector.broadcast %cst_97 : f32 to vector<1x256xf32>
    %770 = arith.select %768, %767, %769 : vector<1x256xi1>, vector<1x256xf32>
    %771 = arith.addf %755, %770 : vector<1x256xf32>
    %772 = vector.extract_strided_slice %5 {offsets = [0, 34], sizes = [2, 222], strides = [1, 1]} : vector<2x256xf32> to vector<2x222xf32>
    %773 = vector.extract_strided_slice %5 {offsets = [0, 0], sizes = [2, 34], strides = [1, 1]} : vector<2x256xf32> to vector<2x34xf32>
    %774 = tpu.concatenate %772, %773 in 1 : vector<2x222xf32>, vector<2x34xf32> -> vector<2x256xf32>
    %775 = vector.extract_strided_slice %774 {offsets = [0, 0], sizes = [1, 256], strides = [1, 1]} : vector<2x256xf32> to vector<1x256xf32>
    %c40 = arith.constant 40 : index
    %776 = memref.load %arg2[%c40] : memref<98xf32, #tpu.memory_space<smem>>
    %777 = vector.broadcast %776 : f32 to vector<1x256xf32>
    %778 = arith.mulf %775, %777 : vector<1x256xf32>
    %779 = vector.extract_strided_slice %774 {offsets = [1, 0], sizes = [1, 256], strides = [1, 1]} : vector<2x256xf32> to vector<1x256xf32>
    %c89 = arith.constant 89 : index
    %780 = memref.load %arg2[%c89] : memref<98xf32, #tpu.memory_space<smem>>
    %781 = vector.broadcast %780 : f32 to vector<1x256xf32>
    %782 = arith.mulf %779, %781 : vector<1x256xf32>
    %783 = arith.addf %778, %782 : vector<1x256xf32>
    %784 = arith.andi %61, %124 : vector<1x256xi1>
    %cst_98 = arith.constant 0.000000e+00 : f32
    %785 = vector.broadcast %cst_98 : f32 to vector<1x256xf32>
    %786 = arith.select %784, %783, %785 : vector<1x256xi1>, vector<1x256xf32>
    %787 = arith.addf %771, %786 : vector<1x256xf32>
    %788 = vector.extract_strided_slice %5 {offsets = [0, 35], sizes = [2, 221], strides = [1, 1]} : vector<2x256xf32> to vector<2x221xf32>
    %789 = vector.extract_strided_slice %5 {offsets = [0, 0], sizes = [2, 35], strides = [1, 1]} : vector<2x256xf32> to vector<2x35xf32>
    %790 = tpu.concatenate %788, %789 in 1 : vector<2x221xf32>, vector<2x35xf32> -> vector<2x256xf32>
    %791 = vector.extract_strided_slice %790 {offsets = [0, 0], sizes = [1, 256], strides = [1, 1]} : vector<2x256xf32> to vector<1x256xf32>
    %c41 = arith.constant 41 : index
    %792 = memref.load %arg2[%c41] : memref<98xf32, #tpu.memory_space<smem>>
    %793 = vector.broadcast %792 : f32 to vector<1x256xf32>
    %794 = arith.mulf %791, %793 : vector<1x256xf32>
    %795 = vector.extract_strided_slice %790 {offsets = [1, 0], sizes = [1, 256], strides = [1, 1]} : vector<2x256xf32> to vector<1x256xf32>
    %c90 = arith.constant 90 : index
    %796 = memref.load %arg2[%c90] : memref<98xf32, #tpu.memory_space<smem>>
    %797 = vector.broadcast %796 : f32 to vector<1x256xf32>
    %798 = arith.mulf %795, %797 : vector<1x256xf32>
    %799 = arith.addf %794, %798 : vector<1x256xf32>
    %800 = arith.andi %61, %133 : vector<1x256xi1>
    %cst_99 = arith.constant 0.000000e+00 : f32
    %801 = vector.broadcast %cst_99 : f32 to vector<1x256xf32>
    %802 = arith.select %800, %799, %801 : vector<1x256xi1>, vector<1x256xf32>
    %803 = arith.addf %787, %802 : vector<1x256xf32>
    %804 = vector.extract_strided_slice %5 {offsets = [0, 45], sizes = [2, 211], strides = [1, 1]} : vector<2x256xf32> to vector<2x211xf32>
    %805 = vector.extract_strided_slice %5 {offsets = [0, 0], sizes = [2, 45], strides = [1, 1]} : vector<2x256xf32> to vector<2x45xf32>
    %806 = tpu.concatenate %804, %805 in 1 : vector<2x211xf32>, vector<2x45xf32> -> vector<2x256xf32>
    %807 = vector.extract_strided_slice %806 {offsets = [0, 0], sizes = [1, 256], strides = [1, 1]} : vector<2x256xf32> to vector<1x256xf32>
    %c42 = arith.constant 42 : index
    %808 = memref.load %arg2[%c42] : memref<98xf32, #tpu.memory_space<smem>>
    %809 = vector.broadcast %808 : f32 to vector<1x256xf32>
    %810 = arith.mulf %807, %809 : vector<1x256xf32>
    %811 = vector.extract_strided_slice %806 {offsets = [1, 0], sizes = [1, 256], strides = [1, 1]} : vector<2x256xf32> to vector<1x256xf32>
    %c91 = arith.constant 91 : index
    %812 = memref.load %arg2[%c91] : memref<98xf32, #tpu.memory_space<smem>>
    %813 = vector.broadcast %812 : f32 to vector<1x256xf32>
    %814 = arith.mulf %811, %813 : vector<1x256xf32>
    %815 = arith.addf %810, %814 : vector<1x256xf32>
    %816 = arith.andi %70, %79 : vector<1x256xi1>
    %cst_100 = arith.constant 0.000000e+00 : f32
    %817 = vector.broadcast %cst_100 : f32 to vector<1x256xf32>
    %818 = arith.select %816, %815, %817 : vector<1x256xi1>, vector<1x256xf32>
    %819 = arith.addf %803, %818 : vector<1x256xf32>
    %820 = vector.extract_strided_slice %5 {offsets = [0, 46], sizes = [2, 210], strides = [1, 1]} : vector<2x256xf32> to vector<2x210xf32>
    %821 = vector.extract_strided_slice %5 {offsets = [0, 0], sizes = [2, 46], strides = [1, 1]} : vector<2x256xf32> to vector<2x46xf32>
    %822 = tpu.concatenate %820, %821 in 1 : vector<2x210xf32>, vector<2x46xf32> -> vector<2x256xf32>
    %823 = vector.extract_strided_slice %822 {offsets = [0, 0], sizes = [1, 256], strides = [1, 1]} : vector<2x256xf32> to vector<1x256xf32>
    %c43 = arith.constant 43 : index
    %824 = memref.load %arg2[%c43] : memref<98xf32, #tpu.memory_space<smem>>
    %825 = vector.broadcast %824 : f32 to vector<1x256xf32>
    %826 = arith.mulf %823, %825 : vector<1x256xf32>
    %827 = vector.extract_strided_slice %822 {offsets = [1, 0], sizes = [1, 256], strides = [1, 1]} : vector<2x256xf32> to vector<1x256xf32>
    %c92 = arith.constant 92 : index
    %828 = memref.load %arg2[%c92] : memref<98xf32, #tpu.memory_space<smem>>
    %829 = vector.broadcast %828 : f32 to vector<1x256xf32>
    %830 = arith.mulf %827, %829 : vector<1x256xf32>
    %831 = arith.addf %826, %830 : vector<1x256xf32>
    %832 = arith.andi %70, %88 : vector<1x256xi1>
    %cst_101 = arith.constant 0.000000e+00 : f32
    %833 = vector.broadcast %cst_101 : f32 to vector<1x256xf32>
    %834 = arith.select %832, %831, %833 : vector<1x256xi1>, vector<1x256xf32>
    %835 = arith.addf %819, %834 : vector<1x256xf32>
    %836 = vector.extract_strided_slice %5 {offsets = [0, 47], sizes = [2, 209], strides = [1, 1]} : vector<2x256xf32> to vector<2x209xf32>
    %837 = vector.extract_strided_slice %5 {offsets = [0, 0], sizes = [2, 47], strides = [1, 1]} : vector<2x256xf32> to vector<2x47xf32>
    %838 = tpu.concatenate %836, %837 in 1 : vector<2x209xf32>, vector<2x47xf32> -> vector<2x256xf32>
    %839 = vector.extract_strided_slice %838 {offsets = [0, 0], sizes = [1, 256], strides = [1, 1]} : vector<2x256xf32> to vector<1x256xf32>
    %c44 = arith.constant 44 : index
    %840 = memref.load %arg2[%c44] : memref<98xf32, #tpu.memory_space<smem>>
    %841 = vector.broadcast %840 : f32 to vector<1x256xf32>
    %842 = arith.mulf %839, %841 : vector<1x256xf32>
    %843 = vector.extract_strided_slice %838 {offsets = [1, 0], sizes = [1, 256], strides = [1, 1]} : vector<2x256xf32> to vector<1x256xf32>
    %c93 = arith.constant 93 : index
    %844 = memref.load %arg2[%c93] : memref<98xf32, #tpu.memory_space<smem>>
    %845 = vector.broadcast %844 : f32 to vector<1x256xf32>
    %846 = arith.mulf %843, %845 : vector<1x256xf32>
    %847 = arith.addf %842, %846 : vector<1x256xf32>
    %848 = arith.andi %70, %97 : vector<1x256xi1>
    %cst_102 = arith.constant 0.000000e+00 : f32
    %849 = vector.broadcast %cst_102 : f32 to vector<1x256xf32>
    %850 = arith.select %848, %847, %849 : vector<1x256xi1>, vector<1x256xf32>
    %851 = arith.addf %835, %850 : vector<1x256xf32>
    %852 = vector.extract_strided_slice %5 {offsets = [0, 48], sizes = [2, 208], strides = [1, 1]} : vector<2x256xf32> to vector<2x208xf32>
    %853 = vector.extract_strided_slice %5 {offsets = [0, 0], sizes = [2, 48], strides = [1, 1]} : vector<2x256xf32> to vector<2x48xf32>
    %854 = tpu.concatenate %852, %853 in 1 : vector<2x208xf32>, vector<2x48xf32> -> vector<2x256xf32>
    %855 = vector.extract_strided_slice %854 {offsets = [0, 0], sizes = [1, 256], strides = [1, 1]} : vector<2x256xf32> to vector<1x256xf32>
    %c45 = arith.constant 45 : index
    %856 = memref.load %arg2[%c45] : memref<98xf32, #tpu.memory_space<smem>>
    %857 = vector.broadcast %856 : f32 to vector<1x256xf32>
    %858 = arith.mulf %855, %857 : vector<1x256xf32>
    %859 = vector.extract_strided_slice %854 {offsets = [1, 0], sizes = [1, 256], strides = [1, 1]} : vector<2x256xf32> to vector<1x256xf32>
    %c94 = arith.constant 94 : index
    %860 = memref.load %arg2[%c94] : memref<98xf32, #tpu.memory_space<smem>>
    %861 = vector.broadcast %860 : f32 to vector<1x256xf32>
    %862 = arith.mulf %859, %861 : vector<1x256xf32>
    %863 = arith.addf %858, %862 : vector<1x256xf32>
    %864 = arith.andi %70, %106 : vector<1x256xi1>
    %cst_103 = arith.constant 0.000000e+00 : f32
    %865 = vector.broadcast %cst_103 : f32 to vector<1x256xf32>
    %866 = arith.select %864, %863, %865 : vector<1x256xi1>, vector<1x256xf32>
    %867 = arith.addf %851, %866 : vector<1x256xf32>
    %868 = vector.extract_strided_slice %5 {offsets = [0, 49], sizes = [2, 207], strides = [1, 1]} : vector<2x256xf32> to vector<2x207xf32>
    %869 = vector.extract_strided_slice %5 {offsets = [0, 0], sizes = [2, 49], strides = [1, 1]} : vector<2x256xf32> to vector<2x49xf32>
    %870 = tpu.concatenate %868, %869 in 1 : vector<2x207xf32>, vector<2x49xf32> -> vector<2x256xf32>
    %871 = vector.extract_strided_slice %870 {offsets = [0, 0], sizes = [1, 256], strides = [1, 1]} : vector<2x256xf32> to vector<1x256xf32>
    %c46 = arith.constant 46 : index
    %872 = memref.load %arg2[%c46] : memref<98xf32, #tpu.memory_space<smem>>
    %873 = vector.broadcast %872 : f32 to vector<1x256xf32>
    %874 = arith.mulf %871, %873 : vector<1x256xf32>
    %875 = vector.extract_strided_slice %870 {offsets = [1, 0], sizes = [1, 256], strides = [1, 1]} : vector<2x256xf32> to vector<1x256xf32>
    %c95 = arith.constant 95 : index
    %876 = memref.load %arg2[%c95] : memref<98xf32, #tpu.memory_space<smem>>
    %877 = vector.broadcast %876 : f32 to vector<1x256xf32>
    %878 = arith.mulf %875, %877 : vector<1x256xf32>
    %879 = arith.addf %874, %878 : vector<1x256xf32>
    %880 = arith.andi %70, %115 : vector<1x256xi1>
    %cst_104 = arith.constant 0.000000e+00 : f32
    %881 = vector.broadcast %cst_104 : f32 to vector<1x256xf32>
    %882 = arith.select %880, %879, %881 : vector<1x256xi1>, vector<1x256xf32>
    %883 = arith.addf %867, %882 : vector<1x256xf32>
    %884 = vector.extract_strided_slice %5 {offsets = [0, 50], sizes = [2, 206], strides = [1, 1]} : vector<2x256xf32> to vector<2x206xf32>
    %885 = vector.extract_strided_slice %5 {offsets = [0, 0], sizes = [2, 50], strides = [1, 1]} : vector<2x256xf32> to vector<2x50xf32>
    %886 = tpu.concatenate %884, %885 in 1 : vector<2x206xf32>, vector<2x50xf32> -> vector<2x256xf32>
    %887 = vector.extract_strided_slice %886 {offsets = [0, 0], sizes = [1, 256], strides = [1, 1]} : vector<2x256xf32> to vector<1x256xf32>
    %c47 = arith.constant 47 : index
    %888 = memref.load %arg2[%c47] : memref<98xf32, #tpu.memory_space<smem>>
    %889 = vector.broadcast %888 : f32 to vector<1x256xf32>
    %890 = arith.mulf %887, %889 : vector<1x256xf32>
    %891 = vector.extract_strided_slice %886 {offsets = [1, 0], sizes = [1, 256], strides = [1, 1]} : vector<2x256xf32> to vector<1x256xf32>
    %c96 = arith.constant 96 : index
    %892 = memref.load %arg2[%c96] : memref<98xf32, #tpu.memory_space<smem>>
    %893 = vector.broadcast %892 : f32 to vector<1x256xf32>
    %894 = arith.mulf %891, %893 : vector<1x256xf32>
    %895 = arith.addf %890, %894 : vector<1x256xf32>
    %896 = arith.andi %70, %124 : vector<1x256xi1>
    %cst_105 = arith.constant 0.000000e+00 : f32
    %897 = vector.broadcast %cst_105 : f32 to vector<1x256xf32>
    %898 = arith.select %896, %895, %897 : vector<1x256xi1>, vector<1x256xf32>
    %899 = arith.addf %883, %898 : vector<1x256xf32>
    %900 = vector.extract_strided_slice %5 {offsets = [0, 51], sizes = [2, 205], strides = [1, 1]} : vector<2x256xf32> to vector<2x205xf32>
    %901 = vector.extract_strided_slice %5 {offsets = [0, 0], sizes = [2, 51], strides = [1, 1]} : vector<2x256xf32> to vector<2x51xf32>
    %902 = tpu.concatenate %900, %901 in 1 : vector<2x205xf32>, vector<2x51xf32> -> vector<2x256xf32>
    %903 = vector.extract_strided_slice %902 {offsets = [0, 0], sizes = [1, 256], strides = [1, 1]} : vector<2x256xf32> to vector<1x256xf32>
    %c48 = arith.constant 48 : index
    %904 = memref.load %arg2[%c48] : memref<98xf32, #tpu.memory_space<smem>>
    %905 = vector.broadcast %904 : f32 to vector<1x256xf32>
    %906 = arith.mulf %903, %905 : vector<1x256xf32>
    %907 = vector.extract_strided_slice %902 {offsets = [1, 0], sizes = [1, 256], strides = [1, 1]} : vector<2x256xf32> to vector<1x256xf32>
    %c97 = arith.constant 97 : index
    %908 = memref.load %arg2[%c97] : memref<98xf32, #tpu.memory_space<smem>>
    %909 = vector.broadcast %908 : f32 to vector<1x256xf32>
    %910 = arith.mulf %907, %909 : vector<1x256xf32>
    %911 = arith.addf %906, %910 : vector<1x256xf32>
    %912 = arith.andi %70, %133 : vector<1x256xi1>
    %cst_106 = arith.constant 0.000000e+00 : f32
    %913 = vector.broadcast %cst_106 : f32 to vector<1x256xf32>
    %914 = arith.select %912, %911, %913 : vector<1x256xi1>, vector<1x256xf32>
    %915 = arith.addf %899, %914 : vector<1x256xf32>
    %c0_107 = arith.constant 0 : index
    %916 = memref.load %arg1[%c0_107] : memref<2xf32, #tpu.memory_space<smem>>
    %917 = vector.broadcast %916 : f32 to vector<1x256xf32>
    %918 = arith.mulf %915, %917 : vector<1x256xf32>
    %c1_108 = arith.constant 1 : index
    %919 = memref.load %arg1[%c1_108] : memref<2xf32, #tpu.memory_space<smem>>
    %920 = vector.broadcast %919 : f32 to vector<1x256xf32>
    %921 = arith.addf %918, %920 : vector<1x256xf32>
    %922 = arith.negf %921 : vector<1x256xf32>
    %923 = math.exp %922 : vector<1x256xf32>
    %cst_109 = arith.constant 1.000000e+00 : f32
    %924 = vector.broadcast %cst_109 : f32 to vector<1x256xf32>
    %925 = arith.addf %924, %923 : vector<1x256xf32>
    %926 = arith.divf %924, %925 : vector<1x256xf32>
    %927 = vector.shape_cast %926 : vector<1x256xf32> to vector<1x1x256xf32>
    %928 = vector.broadcast %927 : vector<1x1x256xf32> to vector<1x4x256xf32>
    %929 = arith.mulf %0, %928 : vector<1x4x256xf32>
    %c0_110 = arith.constant 0 : index
    %c0_111 = arith.constant 0 : index
    %c0_112 = arith.constant 0 : index
    %930 = vector.load %arg5[%c0_110, %c0_111, %c0_112] : memref<1x4x256xf32, #tpu.memory_space<vmem>>, vector<1x4x256xf32>
    tpu.vector_store %arg5[%c0_110, %c0_111, %c0_112], %929 {strides = array<i32>} : memref<1x4x256xf32, #tpu.memory_space<vmem>>, vector<1x4x256xf32>,
    return
  }
  func.func @transform_0(%arg0: i32) -> i32 {
    %c0_i32 = arith.constant 0 : i32
    %c0_i32_0 = arith.constant 0 : i32
    return %c0_i32 : i32
  }
  func.func @transform_1(%arg0: i32) -> i32 {
    %c0_i32 = arith.constant 0 : i32
    %c0_i32_0 = arith.constant 0 : i32
    return %c0_i32 : i32
  }
  func.func @transform_2(%arg0: i32) -> (i32, i32) {
    %c0_i32 = arith.constant 0 : i32
    %c0_i32_0 = arith.constant 0 : i32
    %c0_i32_1 = arith.constant 0 : i32
    return %c0_i32, %c0_i32_0 : i32, i32
  }
  func.func @transform_3(%arg0: i32) -> (i32, i32, i32) {
    %c0_i32 = arith.constant 0 : i32
    %c0_i32_0 = arith.constant 0 : i32
    %c0_i32_1 = arith.constant 0 : i32
    return %arg0, %c0_i32, %c0_i32_0 : i32, i32, i32
  }
  func.func @transform_4(%arg0: i32) -> (i32, i32, i32) {
    %c0_i32 = arith.constant 0 : i32
    %c0_i32_0 = arith.constant 0 : i32
    %c0_i32_1 = arith.constant 0 : i32
    return %arg0, %c0_i32, %c0_i32_0 : i32, i32, i32
  }
}

</mosaic_0001>

<bundles_post_ra>
// kernel: tpu_custom_call.1
= control target key start
LH: loop header
LB: loop body
LE: loop exit
PB: predicated region body
PF: predicated region fallthrough
CT: control target
= control target key end

     0   :  { %9 = vsyncpa [#allocation5], 0  ;;  %s3973_s0 = inlined_call_operand.hbm [shape: f32[2], index: 0, kind: input, shape index: {}]   ;;  %s3974_s1 = inlined_call_operand.hbm [shape: f32[98], index: 1, kind: input, shape index: {}]   ;;  %s3975_s2 = inlined_call_operand.hbm [shape: s32[2,256], index: 2, kind: input, shape index: {}]   ;;  %s3976_s3 = inlined_call_operand.hbm [shape: f32[2,4,256], index: 3, kind: input, shape index: {}]   ;;  %s3977_s4 = inlined_call_operand.hbm [shape: f32[2,4,256], index: 4, kind: output, shape index: {}]  }
   0x1   :  { %10 = vsyncpa [#allocation7], 0 }
   0x2   :  { %11 = vsyncpa [#allocation3], 0 }
   0x3   :  { %12 = vsyncpa [#allocation10], 0 }
   0x4   :  { %14 = vsyncpa [#allocation10 + $0x1], 0 }
   0x5   :  { %15 = vsyncpa [#allocation4], 0 }
   0x6   :  { %17 = vsyncpa [#allocation4 + $0x1], 0  ;;  %s2681_s15 = smov 0   ;;  %s2683_s16 = smov 0  }
   0x7   :  { %s2685_s17 = smov 0   ;;  %s2687_s18 = smov 0  }
   0x8 LB: > { %s2702_s19 = sadd.s32 4294967295, %s2602_s18   ;;  %s2180_s20 = sadd.s32 4294967294, %s2602_s18   ;;  %s2602_s18 = sphi %s2687_s18, %s4021_s18   ;;  %s2598_s17 = sphi %s2685_s17, %s4020_s17   ;;  %s2594_s16 = sphi %s2683_s16, %s4019_s16   ;;  %s2590_s15 = sphi %s2681_s15, %s4018_s15  }
   0x9   : > { %p106_p0 = scmp.ne.s32.totalorder %s2594_s16, %s2590_s15  ;;  %p107_p1 = scmp.eq.s32.totalorder %s2702_s19, 0 }
   0xa   : > { %p130_p2 = scmp.eq.s32.totalorder %s2702_s19, 1  ;;  %p136_p3 = scmp.eq.s32.totalorder %s2180_s20, 1 }
   0xb   : > { %p2711_p4 = por %p107_p1, %p106_p0  ;;  %p2181_p5 = scmp.ge.s32.totalorder %s2602_s18, 1 }
   0xc   : > { %p2716_p6 = por %p136_p3, %p106_p0  ;;  %p143_p7 = scmp.lt.s32.totalorder %s2602_s18, 3 }
   0xd   : > { %s155_s25 = sshll.u32 %s3973_s0, 4  ;;  %s165_s29 = sshll.u32 %s3974_s1, 4  ;;  %s156_s25 = int_to_ptr.hbm [resolvable:$true] %s155_s25  ;;  %s166_s29 = int_to_ptr.hbm [resolvable:$true] %s165_s29 }
   0xe   : > { %p2724_p8 = pnand %p2181_p5, %p143_p7  ;;  %s175_s6 = sshll.u32 %s3975_s2, 4  ;;  %s176_s6 = int_to_ptr.hbm [resolvable:$true] %s175_s6 }
   0xf   : > { %s2604_s7 = smov [#allocation8]   ;;  %s2605_s9 = smov [#allocation2]  }
  0x10   : > { %p2317_p10 = pneg %p2724_p8  ;;  %s177_s8 = sshll.u32 %s2604_s7, 4  ;;  %s178_s8 = int_to_ptr.vmem [resolvable:$true] %s177_s8 }
  0x11   : > { %s2606_s10 = smov [#allocation6]   ;;  %s2740_s11 = sadd.s32 1, %s2602_s18  }
  0x12   : > { %p2318_p11 = pnand %p2317_p10, %p107_p1  ;;  %s90_s12 = ssub.s32 %s2602_s18, %s2740_s11 }
  0x13   : > { %s93_s13 = sadd.s32 1, %s2598_s17  ;;  %p91_p12 = scmp.eq.s32.totalorder %s90_s12, 0 }
  0x14   : > { %2320 = dma.hbm_to_smem (!%p2318_p11), %s156_s25, 16, %s2605_s9, [#allocation5]  }
  0x15   : > { %2323 = dma.hbm_to_smem (!%p2318_p11), %s166_s29, 16, %s2606_s10, [#allocation7]  }
  0x16   : > { %2326 = dma.hbm_to_vmem [thread:$0]  (!%p2318_p11), %s176_s6, 64, %s178_s8, [#allocation3]  }
  0x17   : > { %p100_p13 = scmp.ne.s32.totalorder %s2598_s17, %s2594_s16  ;;  %p101_p0 = scmp.eq.s32.totalorder %s2602_s18, 0 }
  0x18   : > { %s2749_s14 = scalar_select %p91_p12, %s2598_s17, %s93_s13  }
  0x19   : > { %p2753_p3 = por %p130_p2, %p100_p13  ;;  %p2338_p5 = scmp.lt.s32.totalorder %s2602_s18, 2 }
  0x1a   : > { %s188_s23 = sand.u32 1, %s2598_s17   ;;  %s2299_s24 = sshll.u32 %s2602_s18, 3 }
  0x1b   : > { %p102_p7 = por %p101_p0, %p100_p13  ;;  %s2186_s25 = sshll.u32 %s188_s23, 3 }
  0x1c   : > { %s197_s29 = scalar_lea.hbm %s3976_s3, %s2299_s24  ;;  %s192_s5 = scalar_lea.vmem [#allocation9], %s2186_s25 }
  0x1d   : > { %s199_s30 = sshll.u32 %s197_s29, 4  ;;  %s201_s6 = sshll.u32 %s192_s5, 4  ;;  %s200_s30 = int_to_ptr.hbm [resolvable:$true] %s199_s30  ;;  %s202_s6 = int_to_ptr.vmem [resolvable:$true] %s201_s6 }
  0x1e   : > { %p2763_p10 = pnand %p2338_p5, %p102_p7  ;;  %s189_s8 = scalar_lea.sflag [#allocation10], %s188_s23 }
  0x1f   : > { %s2494_s9 = sshra.s32 %s200_s30, 4  ;;  %s2501_s24 = scalar_lea.hbm %s3976_s3, 16  ;;  %s2495_s9 = int_to_ptr.hbm [resolvable:$true] %s2494_s9 }
  0x20   : > { %s2496_s10 = scalar_lea.hbm %s2495_s9, 8  ;;  %p2498_p11 = pneg %p2763_p10 }
  0x21   : > { %p2497_p2 = scmp.ne.s32.totalorder %s2495_s9, %s2496_s10  ;;  %p2502_p0 = scmp.lt.s32.totalorder %s2495_s9, %s3976_s3 }
  0x22   : > { %p2503_p5 = scmp.lt.s32.totalorder %s2501_s24, %s2496_s10 }
  0x23   : > { %p2499_p12 = pnand %p2498_p11, %p2497_p2 }
  0x24   : > { %p2504_p7 = por %p2503_p5, %p2502_p0 }
  0x25   : > { %p2500_p13 = pneg %p2499_p12 }
  0x27   : > { %p2505_p9 = pnand %p2504_p7, %p2500_p13 }
  0x29   : > { %2508 = shalt.err (!%p2505_p9)
}
  0x2a   : > { %2330 = dma.hbm_to_vmem [thread:$0]  (!%p2763_p10), %s200_s30, 128, %s202_s6, %s189_s8  }
  0x2b   : > { %210 = sbr.rel (%p2724_p8) target bundleno = 513 (0x201), region = 36 }
  0x30   : > { %2569 = dma.done.wait (%p107_p1), [#allocation5], 16  }
  0x31   : > { %2571 = vsyncadd (%p107_p1), [#allocation5], 4294967280 }
  0x32   : > { %2573 = dma.done.wait (%p107_p1), [#allocation7], 16  }
  0x33   : > { %2575 = vsyncadd (%p107_p1), [#allocation7], 4294967280 }
  0x34   : > { %2577 = dma.done.wait (%p107_p1), [#allocation3], 64  }
  0x35   : > { %2579 = vsyncadd (%p107_p1), [#allocation3], 4294967232  ;;  %s2792_s26 = sand.u32 1, %s2594_s16  }
  0x36   : > { %s2193_s23 = sshll.u32 %s2792_s26, 3  ;;  %s228_s28 = scalar_lea.sflag [#allocation10], %s2792_s26 }
  0x37   : > { %s231_s29 = scalar_lea.vmem [#allocation9], %s2193_s23 }
  0x38   : > { %2581 = dma.done.wait (%p2711_p4), %s228_s28, 128  }
  0x39   : > { %2583 = vsyncadd (%p2711_p4), %s228_s28, 4294967168 }
  0x3a   : > { %237 = sfence }
  0x3b   : > { %v2802_v0 = vld [vmem:[%s231_s29] sm:$0xff]  ;;  %v2607_v1 = vmov 4.0   ;;  %vm3978_vm0 = vcmask 1043456   ;;  %vm308_vm2 = vcmask 1040384   ;;  %s2608_s21 = smov 50   ;;  %s2609_s30 = smov 51  }
  0x3c   : > { %260 = vst [vmem:[#allocation1] ss:$2 sm:$0xff] %v2802_v0  ;;  %2427 = vrcp.f32 %v2607_v1  ;;  %s2610_s5 = smov 49   ;;  %s2611_s6 = smov 48   ;;  %vm443_vm3 = vcmask 400384   ;;  %vm409_vm4 = vcmask 408576  }
  0x3d   : > { %s2612_s7 = smov 47   ;;  %s2613_s8 = smov 46   ;;  %v2870_v61 = vld [vmem:[#allocation8] ss:$2 sm:$0x3]  ;;  %vm375_vm5 = vcmask 416768  }
  0x3e   : > { %s2614_s9 = smov 45   ;;  %s2615_s10 = smov 35   ;;  %v2874_v1 = vld [vmem:[#allocation8 + $0x1] ss:$2 sm:$0x3] }
  0x3f   : > { %s2616_s12 = smov 34   ;;  %s2617_s13 = smov 33  }
  0x40   : > { %s2618_s24 = smov 32   ;;  %s2619_s25 = smov 31  }
  0x41   : > { %s2620_s27 = smov 30   ;;  %s2621_s28 = smov 29  }
  0x42   : > { %v2428_v2 = vpop.eup %2427  ;;  %s2622_s29 = smov 19  }
  0x43   : > { %v261_v3 = vld.sshfl [vmem:[#allocation1] sm:$0xff pattern:$0x75316420]  ;;  %v262_v4 = vld.sshfl [vmem:[#allocation1 + $0x8] sm:$0xff pattern:$0x75316420]  ;;  %vm304_vm1 = vweird.f32 %v2428_v2 }
  0x44   : > { %v273_v5 = vsel %vm3978_vm0, %v262_v4, -inf  ;;  %280 = vst [vmem:[#allocation1] ss:$2 sm:$0xff] %v2802_v0  ;;  %v300_v7 = vmul.f32 4.0, %v2428_v2  ;;  %v266_v8 = vsel %vm3978_vm0, %v261_v3, -inf  ;;  %v314_v3 = vadd.s32 4294967293, %v2870_v61 }
  0x45   : > { %v274_v6 = vrot.slane %v273_v5, 4  ;;  %v267_v10 = vrot.slane %v266_v8, 4  ;;  %v349_v4 = vadd.s32 4294967295, %v2874_v1 }
  0x46   : > { %v301_v12 = vsub.f32 1.0, %v300_v7  ;;  %vm315_vm6 = vcmp.ge.s32.totalorder %v314_v3, 0  ;;  %vm316_vm7 = vcmp.lt.s32.totalorder %v314_v3, 16  ;;  %v341_v7 = vadd.s32 4294967293, %v2874_v1 }
  0x47   : > { %v275_v9 = vmax.f32 %v273_v5, %v274_v6  ;;  %v268_v18 = vmax.f32 %v266_v8, %v267_v10  ;;  %v345_v5 = vadd.s32 4294967294, %v2874_v1  ;;  %vm350_vm8 = vcmp.ge.s32.totalorder %v349_v4, 0  ;;  %vm2901_vm13 = vmand %vm315_vm6, %vm316_vm7 }
  0x48   : > { %v302_v20 = vmul.f32 %v2428_v2, %v301_v12  ;;  %vm342_vm11 = vcmp.ge.s32.totalorder %v341_v7, 0  ;;  %vm343_vm12 = vcmp.lt.s32.totalorder %v341_v7, 16  ;;  %vm351_vm14 = vcmp.lt.s32.totalorder %v349_v4, 16 }
  0x49   : > { %v276_v11 = vrot.slane %v275_v9, 2  ;;  %v269_v25 = vrot.slane %v268_v18, 2  ;;  %vm346_vm9 = vcmp.ge.s32.totalorder %v345_v5, 0  ;;  %vm347_vm10 = vcmp.lt.s32.totalorder %v345_v5, 16 }
  0x4a   : > { %v303_v27 = vadd.f32 %v2428_v2, %v302_v20  ;;  %vm2906_vm15 = vmand %vm346_vm9, %vm347_vm10  ;;  %vm353_vm7 = vcmp.ge.s32.totalorder %v2874_v1, 0  ;;  %vm354_vm9 = vcmp.lt.s32.totalorder %v2874_v1, 16  ;;  %vm545_vm10 = vcmask 375808  }
  0x4b   : > { %v282_v13 = vld.sshfl [vmem:[#allocation1 + $0x8] sm:$0xff pattern:$0x75316420]  ;;  %v281_v14 = vld.sshfl [vmem:[#allocation1] sm:$0xff pattern:$0x75316420]  ;;  %v277_v21 = vmax.f32 %v275_v9, %v276_v11  ;;  %v270_v32 = vmax.f32 %v268_v18, %v269_v25 }
  0x4c   : > { %v292_v15 = vsel %vm3978_vm0, %v282_v13, 0.0  ;;  %v285_v16 = vsel %vm3978_vm0, %v281_v14, 0.0  ;;  %v305_v34 = vsel %vm304_vm1, %v2428_v2, %v303_v27  ;;  %vm2914_vm1 = vmand %vm342_vm11, %vm343_vm12  ;;  %vm511_vm11 = vcmask 384000  }
  0x4d   : > { %v293_v17 = vrot.slane %v292_v15, 4  ;;  %v286_v19 = vrot.slane %v285_v16, 4  ;;  %v278_v28 = vrot.slane %v277_v21, 1  ;;  %v271_v38 = vrot.slane %v270_v32, 1  ;;  %vm396_vm6 = vmand %vm2901_vm13, %vm2914_vm1 }
  0x4e   : > { %vm2967_vm12 = vmand %vm353_vm7, %vm354_vm9  ;;  %vm579_vm9 = vcmask 367616  }
  0x4f   : > { %v294_v22 = vadd.f32 %v293_v17, %v292_v15  ;;  %v287_v23 = vadd.f32 %v286_v19, %v285_v16  ;;  %v279_v35 = vmax.f32 %v277_v21, %v278_v28  ;;  %v272_v41 = vmax.f32 %v270_v32, %v271_v38 }
  0x51   : > { %v295_v24 = vrot.slane %v294_v22, 2  ;;  %v288_v26 = vrot.slane %v287_v23, 2 }
  0x53   : > { %v296_v29 = vadd.f32 %v295_v24, %v294_v22  ;;  %v289_v30 = vadd.f32 %v288_v26, %v287_v23 }
  0x55   : > { %v297_v31 = vrot.slane %v296_v29, 1  ;;  %v290_v33 = vrot.slane %v289_v30, 1 }
  0x57   : > { %v298_v36 = vadd.f32 %v297_v31, %v296_v29  ;;  %v291_v39 = vadd.f32 %v290_v33, %v289_v30 }
  0x59   : > { %v307_v37 = vmul.f32 %v305_v34, %v298_v36  ;;  %v306_v42 = vmul.f32 %v305_v34, %v291_v39 }
  0x5b   : > { %v2811_v40 = vsel %vm308_vm2, %v279_v35, %v307_v37  ;;  %v2817_v43 = vsel %vm308_vm2, %v272_v41, %v306_v42 }
  0x5c   : > { %404 = vrot.lane.b32.xlu1 %v2811_v40, %s2608_s21  ;;  %369 = vrot.lane.b32.xlu0 %v2811_v40, %s2609_s30 }
  0x5d   : > { %438 = vrot.lane.b32.xlu2 %v2811_v40, %s2610_s5 }
  0x64   : > { %407 = vrot.lane.b32.xlu1 %v2817_v43, %s2608_s21  ;;  %373 = vrot.lane.b32.xlu0 %v2817_v43, %s2609_s30  ;;  %s2623_s21 = smov 18   ;;  %s2624_s30 = smov 17  }
  0x65   : > { %441 = vrot.lane.b32.xlu2 %v2817_v43, %s2610_s5  ;;  %s2625_s5 = smov 16  }
  0x6c   : > { %475 = vrot.lane.b32.xlu1 %v2817_v43, %s2611_s6  ;;  %472 = vrot.lane.b32.xlu0 %v2811_v40, %s2611_s6  ;;  %s2198_s6 = sld [smem:[#allocation6 + $0x2]] }
  0x6d   : > { %506 = vrot.lane.b32.xlu2 %v2811_v40, %s2612_s7 }
  0x72   : > { %v449_v45 = vstv %s2198_s6  ;;  %s2632_s6 = smov 127  }
  0x74   : > { %540 = vrot.lane.b32.xlu1 %v2811_v40, %s2613_s8  ;;  %509 = vrot.lane.b32.xlu0 %v2817_v43, %s2612_s7  ;;  %s2199_s7 = sld [smem:[#allocation6 + $0x33]] }
  0x75   : > { %543 = vrot.lane.b32.xlu2 %v2817_v43, %s2613_s8  ;;  %s2626_s8 = smov 15  }
  0x7a   : > { %v453_v46 = vstv %s2199_s7  ;;  %s2920_s7 = sld [smem:[#allocation6 + $0x4]] }
  0x7c   : > { %577 = vrot.lane.b32.xlu1 %v2817_v43, %s2614_s9  ;;  %574 = vrot.lane.b32.xlu0 %v2811_v40, %s2614_s9  ;;  %s2627_s9 = smov 14  }
  0x7d   : > { %608 = vrot.lane.b32.xlu2 %v2811_v40, %s2615_s10 }
  0x84   : > { %642 = vrot.lane.b32.xlu1 %v2811_v40, %s2616_s12  ;;  %611 = vrot.lane.b32.xlu0 %v2817_v43, %s2615_s10  ;;  %s2628_s10 = smov 13  }
  0x85   : > { %645 = vrot.lane.b32.xlu2 %v2817_v43, %s2616_s12  ;;  %s2629_s12 = smov 3  }
  0x8c   : > { %679 = vrot.lane.b32.xlu1 %v2817_v43, %s2617_s13  ;;  %676 = vrot.lane.b32.xlu0 %v2811_v40, %s2617_s13  ;;  %s2865_s13 = sld [smem:[#allocation6 + $0x1]] }
  0x8d   : > { %710 = vrot.lane.b32.xlu2 %v2811_v40, %s2618_s24 }
  0x92   : > { %v415_v8 = vstv %s2865_s13  ;;  %s2976_s13 = sld [smem:[#allocation6 + $0x37]] }
  0x94   : > { %744 = vrot.lane.b32.xlu1 %v2811_v40, %s2619_s25  ;;  %713 = vrot.lane.b32.xlu0 %v2817_v43, %s2618_s24  ;;  %s2867_s24 = sld [smem:[#allocation6 + $0x32]] }
  0x95   : > { %747 = vrot.lane.b32.xlu2 %v2817_v43, %s2619_s25  ;;  %s2630_s25 = smov 2  }
  0x9a   : > { %v419_v6 = vstv %s2867_s24  ;;  %s2996_s24 = sld [smem:[#allocation6 + $0x6]] }
  0x9c   : > { %781 = vrot.lane.b32.xlu1 %v2817_v43, %s2620_s27  ;;  %778 = vrot.lane.b32.xlu0 %v2811_v40, %s2620_s27  ;;  %s2872_s27 = sld [smem:[#allocation6 + $0x31]] }
  0x9d   : > { %812 = vrot.lane.b32.xlu2 %v2811_v40, %s2621_s28 }
  0xa2   : > { %v385_v10 = vstv %s2872_s27  ;;  %s2635_s27 = smov 115  }
  0xa4   : > { %846 = vrot.lane.b32.xlu1 %v2811_v40, %s2622_s29  ;;  %815 = vrot.lane.b32.xlu0 %v2817_v43, %s2621_s28  ;;  %s2878_s28 = sld [smem:[#allocation6]] }
  0xa5   : > { %849 = vrot.lane.b32.xlu2 %v2817_v43, %s2622_s29  ;;  %s2631_s29 = smov 1  }
  0xaa   : > { %v381_v19 = vstv %s2878_s28  ;;  %s3011_s28 = sld [smem:[#allocation6 + $0x7]] }
  0xac   : > { %883 = vrot.lane.b32.xlu1 %v2817_v43, %s2623_s21  ;;  %880 = vrot.lane.b32.xlu0 %v2811_v40, %s2623_s21  ;;  %s2887_s21 = sld [smem:[#allocation6 + $0x34]] }
  0xad   : > { %914 = vrot.lane.b32.xlu2 %v2811_v40, %s2624_s30 }
  0xb2   : > { %v487_v36 = vstv %s2887_s21  ;;  %s2636_s21 = smov 114  }
  0xb4   : > { %948 = vrot.lane.b32.xlu1 %v2811_v40, %s2625_s5  ;;  %917 = vrot.lane.b32.xlu0 %v2817_v43, %s2624_s30  ;;  %s2897_s30 = sld [smem:[#allocation6 + $0x3]] }
  0xb5   : > { %951 = vrot.lane.b32.xlu2 %v2817_v43, %s2625_s5  ;;  %s2910_s5 = sld [smem:[#allocation6 + $0x36]] }
  0xb7   : > { %v439_v44 = vpop.permute.xlu2 %438 }
  0xbb   : > { %v555_v5 = vstv %s2910_s5  ;;  %s2637_s5 = smov 113  }
  0xbc   : > { %985 = vrot.lane.b32.xlu1 %v2817_v43, %s2626_s8  ;;  %982 = vrot.lane.b32.xlu0 %v2811_v40, %s2626_s8  ;;  %s2929_s8 = sld [smem:[#allocation6 + $0x5]] }
  0xbd   : > { %1016 = vrot.lane.b32.xlu2 %v2811_v40, %s2627_s9 }
  0xbf   : > { %v442_v47 = vpop.permute.xlu2 %441 }
  0xc0   : > { %v444_v48 = vsel %vm443_vm3, %v442_v47, %v439_v44  ;;  %v447_v49 = vsel %vm443_vm3, %v439_v44, %v442_v47  ;;  %vm477_vm3 = vcmask 392192  }
  0xc1   : > { %v450_v50 = vmul.f32 %v449_v45, %v447_v49  ;;  %v451_v51 = vmul.f32 %v449_v45, %v444_v48  ;;  %v454_v52 = vmul.f32 %v453_v46, %v447_v49  ;;  %v455_v53 = vmul.f32 %v453_v46, %v444_v48 }
  0xc2   : > { %v483_v49 = vstv %s2897_s30  ;;  %s3026_s30 = sld [smem:[#allocation6 + $0x38]] }
  0xc3   : > { %v458_v54 = vrot.slane %v454_v52, 1  ;;  %v459_v55 = vrot.slane %v455_v53, 1 }
  0xc4   : > { %1050 = vrot.lane.b32.xlu1 %v2811_v40, %s2628_s10  ;;  %1019 = vrot.lane.b32.xlu0 %v2817_v43, %s2627_s9  ;;  %s2633_s9 = smov 126  }
  0xc5   : > { %v462_v56 = vadd.f32 %v458_v54, %v450_v50  ;;  %v463_v57 = vadd.f32 %v459_v55, %v451_v51  ;;  %1053 = vrot.lane.b32.xlu2 %v2817_v43, %s2628_s10  ;;  %s2937_s10 = sld [smem:[#allocation6 + $0x35]] }
  0xc7   : > { %v467_v58 = vrot.slane %v463_v57, 7  ;;  %v2858_v59 = vpop.permute.xlu2 %506 }
  0xc9   : > { %v2861_v60 = vsel %vm308_vm2, %v462_v56, %v467_v58  ;;  %v2962_v56 = vadd.s32 2, %v2874_v1 }
  0xcc   : > { %1087 = vrot.lane.b32.xlu1 %v2817_v43, %s2629_s12  ;;  %1084 = vrot.lane.b32.xlu0 %v2811_v40, %s2629_s12  ;;  %s2634_s12 = smov 125  }
  0xcd   : > { %1118 = vrot.lane.b32.xlu2 %v2811_v40, %s2630_s25 }
  0xce   : > { %v405_v62 = vpop.permute.xlu1 %404  ;;  %v370_v63 = vpop.permute.xlu0 %369 }
  0xcf   : > { %v2876_v2 = vpop.permute.xlu2 %543 }
  0xd4   : > { %1152 = vrot.lane.b32.xlu1 %v2811_v40, %s2631_s29  ;;  %1121 = vrot.lane.b32.xlu0 %v2817_v43, %s2630_s25  ;;  %s3001_s25 = sld [smem:[#allocation6 + $0x39]] }
  0xd5   : > { %1155 = vrot.lane.b32.xlu2 %v2817_v43, %s2631_s29  ;;  %s3014_s29 = sld [smem:[#allocation6 + $0x8]] }
  0xd6   : > { %v408_v9 = vpop.permute.xlu1 %407  ;;  %v374_v11 = vpop.permute.xlu0 %373 }
  0xd7   : > { %v410_v12 = vsel %vm409_vm4, %v408_v9, %v405_v62  ;;  %v413_v13 = vsel %vm409_vm4, %v405_v62, %v408_v9  ;;  %v376_v14 = vsel %vm375_vm5, %v374_v11, %v370_v63  ;;  %v379_v15 = vsel %vm375_vm5, %v370_v63, %v374_v11  ;;  %v2894_v16 = vpop.permute.xlu2 %608  ;;  %vm2924_vm4 = vmand %vm350_vm8, %vm351_vm14 }
  0xd8   : > { %v420_v17 = vmul.f32 %v419_v6, %v413_v13  ;;  %v421_v18 = vmul.f32 %v419_v6, %v410_v12  ;;  %v386_v20 = vmul.f32 %v385_v10, %v379_v15  ;;  %v387_v21 = vmul.f32 %v385_v10, %v376_v14  ;;  %vm430_vm5 = vmand %vm2901_vm13, %vm2906_vm15 }
  0xd9   : > { %v417_v23 = vmul.f32 %v415_v8, %v410_v12  ;;  %v383_v27 = vmul.f32 %v381_v19, %v376_v14  ;;  %v416_v30 = vmul.f32 %v415_v8, %v413_v13  ;;  %v382_v34 = vmul.f32 %v381_v19, %v379_v15  ;;  %vm464_vm8 = vmand %vm2901_vm13, %vm2924_vm4 }
  0xda   : > { %v424_v24 = vrot.slane %v420_v17, 1  ;;  %v425_v25 = vrot.slane %v421_v18, 1  ;;  %v390_v28 = vrot.slane %v386_v20, 1  ;;  %v391_v29 = vrot.slane %v387_v21, 1 }
  0xdb   : > { %v470_v63 = vsel %vm464_vm8, %v2861_v60, 0.0  ;;  %v356_v6 = vadd.s32 1, %v2874_v1  ;;  %v551_v8 = vstv %s2929_s8  ;;  %v517_v9 = vstv %s2920_s7  ;;  %s3070_s7 = sld [smem:[#allocation6 + $0x9]]  ;;  %s2638_s8 = smov 112  }
  0xdc   : > { %v429_v31 = vadd.f32 %v425_v25, %v417_v23  ;;  %1212 = vrot.lane.b32.xlu1 %v2811_v40, %s2632_s6  ;;  %1210 = vrot.lane.b32.xlu0 %v2817_v43, %s2632_s6  ;;  %v395_v35 = vadd.f32 %v391_v29, %v383_v27  ;;  %v428_v37 = vadd.f32 %v424_v24, %v416_v30  ;;  %vm361_vm14 = vcmp.ge.s32.totalorder %v2962_v56, 0  ;;  %s3053_s6 = sld [smem:[#allocation6 + $0x3a]] }
  0xdd   : > { %1244 = vrot.lane.b32.xlu2 %v2817_v43, %s2633_s9  ;;  %v394_v42 = vadd.f32 %v390_v28, %v382_v34  ;;  %v521_v12 = vstv %s2937_s10  ;;  %vm358_vm7 = vcmp.lt.s32.totalorder %v356_v6, 16  ;;  %s3085_s10 = sld [smem:[#allocation6 + $0xb]] }
  0xde   : > { %v433_v38 = vrot.slane %v429_v31, 7  ;;  %v476_v39 = vpop.permute.xlu1 %475  ;;  %v473_v41 = vpop.permute.xlu0 %472  ;;  %v399_v44 = vrot.slane %v395_v35, 7 }
  0xdf   : > { %v478_v45 = vsel %vm477_vm3, %v476_v39, %v473_v41  ;;  %v481_v46 = vsel %vm477_vm3, %v473_v41, %v476_v39  ;;  %v2945_v47 = vpop.permute.xlu2 %645  ;;  %vm362_vm3 = vcmp.lt.s32.totalorder %v2962_v56, 16  ;;  %v585_v56 = vstv %s2996_s24  ;;  %s3100_s24 = sld [smem:[#allocation6 + $0xa]] }
  0xe0   : > { %v434_v48 = vsel %vm308_vm2, %v428_v37, %v433_v38  ;;  %v488_v50 = vmul.f32 %v487_v36, %v481_v46  ;;  %v400_v52 = vsel %vm308_vm2, %v394_v42, %v399_v44  ;;  %v489_v53 = vmul.f32 %v487_v36, %v478_v45 }
  0xe1   : > { %v436_v51 = vsel %vm430_vm5, %v434_v48, 0.0  ;;  %v402_v54 = vsel %vm396_vm6, %v400_v52, 0.0  ;;  %v485_v58 = vmul.f32 %v483_v49, %v478_v45  ;;  %v484_v4 = vmul.f32 %v483_v49, %v481_v46  ;;  %vm498_vm5 = vmand %vm2901_vm13, %vm2967_vm12 }
  0xe2   : > { %v492_v55 = vrot.slane %v488_v50, 1  ;;  %v437_v57 = vadd.f32 %v436_v51, %v402_v54  ;;  %v493_v62 = vrot.slane %v489_v53, 1  ;;  %vm357_vm6 = vcmp.ge.s32.totalorder %v356_v6, 0 }
  0xe3   : > { %vm3004_vm8 = vmand %vm357_vm6, %vm358_vm7  ;;  %v364_v44 = vadd.s32 3, %v2874_v1  ;;  %vm647_vm6 = vcmask 277504  }
  0xe4   : > { %1278 = vrot.lane.b32.xlu1 %v2817_v43, %s2634_s12  ;;  %1246 = vrot.lane.b32.xlu0 %v2811_v40, %s2633_s9  ;;  %v471_v60 = vadd.f32 %v470_v63, %v437_v57  ;;  %v497_v7 = vadd.f32 %v493_v62, %v485_v58  ;;  %v496_v10 = vadd.f32 %v492_v55, %v484_v4  ;;  %s3082_s9 = sld [smem:[#allocation6 + $0x3c]] }
  0xe5   : > { %1280 = vrot.lane.b32.xlu2 %v2811_v40, %s2634_s12  ;;  %s2639_s12 = smov 111  }
  0xe6   : > { %v541_v11 = vpop.permute.xlu1 %540  ;;  %v510_v13 = vpop.permute.xlu0 %509  ;;  %v501_v14 = vrot.slane %v497_v7, 7 }
  0xe7   : > { %v546_v15 = vsel %vm545_vm10, %v2876_v2, %v541_v11  ;;  %v549_v17 = vsel %vm545_vm10, %v541_v11, %v2876_v2  ;;  %v512_v18 = vsel %vm511_vm11, %v510_v13, %v2858_v59  ;;  %v2994_v19 = vpop.permute.xlu2 %710  ;;  %v515_v25 = vsel %vm511_vm11, %v2858_v59, %v510_v13  ;;  %vm3022_vm10 = vmand %vm361_vm14, %vm362_vm3 }
  0xe8   : > { %v553_v20 = vmul.f32 %v551_v8, %v546_v15  ;;  %v556_v21 = vmul.f32 %v555_v5, %v549_v17  ;;  %v557_v23 = vmul.f32 %v555_v5, %v546_v15  ;;  %v502_v24 = vsel %vm308_vm2, %v496_v10, %v501_v14  ;;  %vm532_vm11 = vmand %vm2901_vm13, %vm3004_vm8 }
  0xe9   : > { %v523_v27 = vmul.f32 %v521_v12, %v512_v18  ;;  %v504_v2 = vsel %vm498_vm5, %v502_v24, 0.0  ;;  %v552_v28 = vmul.f32 %v551_v8, %v549_v17  ;;  %v519_v34 = vmul.f32 %v517_v9, %v512_v18  ;;  %vm566_vm14 = vmand %vm2901_vm13, %vm3022_vm10 }
  0xea   : > { %v560_v29 = vrot.slane %v556_v21, 1  ;;  %v561_v30 = vrot.slane %v557_v23, 1  ;;  %v505_v31 = vadd.f32 %v504_v2, %v471_v60  ;;  %v522_v35 = vmul.f32 %v521_v12, %v515_v25 }
  0xeb   : > { %v527_v36 = vrot.slane %v523_v27, 1  ;;  %v589_v59 = vstv %s2976_s13  ;;  %v518_v39 = vmul.f32 %v517_v9, %v515_v25  ;;  %vm365_vm3 = vcmp.ge.s32.totalorder %v364_v44, 0  ;;  %s3088_s13 = sld [smem:[#allocation6 + $0x3b]] }
  0xec   : > { %v565_v37 = vadd.f32 %v561_v30, %v553_v20  ;;  %1314 = vrot.lane.b32.xlu1 %v2811_v40, %s2635_s27  ;;  %1312 = vrot.lane.b32.xlu0 %v2817_v43, %s2635_s27  ;;  %v526_v41 = vrot.slane %v522_v35, 1  ;;  %v564_v46 = vadd.f32 %v560_v29, %v552_v28  ;;  %vm366_vm5 = vcmp.lt.s32.totalorder %v364_v44, 16  ;;  %s3111_s27 = sld [smem:[#allocation6 + $0x3d]] }
  0xed   : > { %v531_v42 = vadd.f32 %v527_v36, %v519_v34  ;;  %1346 = vrot.lane.b32.xlu2 %v2817_v43, %s2636_s21  ;;  %vm3043_vm7 = vmand %vm365_vm3, %vm366_vm5  ;;  %v318_v10 = vadd.s32 4294967294, %v2870_v61  ;;  %v653_v13 = vstv %s3014_s29  ;;  %v657_v14 = vstv %s3001_s25  ;;  %s2640_s25 = smov 110   ;;  %s2641_s29 = smov 109  }
  0xee   : > { %v569_v48 = vrot.slane %v565_v37, 7  ;;  %v578_v49 = vpop.permute.xlu1 %577  ;;  %v575_v50 = vpop.permute.xlu0 %574  ;;  %v530_v1 = vadd.f32 %v526_v41, %v518_v39  ;;  %v619_v18 = vstv %s3011_s28  ;;  %v623_v20 = vstv %s3026_s30  ;;  %s3126_s28 = sld [smem:[#allocation6 + $0xc]] }
  0xef   : > { %v535_v51 = vrot.slane %v531_v42, 7  ;;  %v580_v52 = vsel %vm579_vm9, %v578_v49, %v575_v50  ;;  %v583_v53 = vsel %vm579_vm9, %v575_v50, %v578_v49  ;;  %v3034_v54 = vpop.permute.xlu2 %747  ;;  %vm613_vm9 = vcmask 285696   ;;  %s3136_s30 = sld [smem:[#allocation6 + $0xe]] }
  0xf0   : > { %v570_v55 = vsel %vm308_vm2, %v564_v46, %v569_v48  ;;  %v590_v57 = vmul.f32 %v589_v59, %v583_v53  ;;  %v591_v62 = vmul.f32 %v589_v59, %v580_v52  ;;  %v587_v6 = vmul.f32 %v585_v56, %v580_v52 }
  0xf1   : > { %v536_v58 = vsel %vm308_vm2, %v530_v1, %v535_v51  ;;  %v572_v7 = vsel %vm566_vm14, %v570_v55, 0.0  ;;  %v586_v9 = vmul.f32 %v585_v56, %v583_v53  ;;  %vm319_vm14 = vcmp.ge.s32.totalorder %v318_v10, 0 }
  0xf2   : > { %v538_v63 = vsel %vm532_vm11, %v536_v58, 0.0  ;;  %v594_v4 = vrot.slane %v590_v57, 1  ;;  %v595_v60 = vrot.slane %v591_v62, 1  ;;  %vm600_vm11 = vmand %vm2901_vm13, %vm3043_vm7  ;;  %vm320_vm13 = vcmp.lt.s32.totalorder %v318_v10, 16 }
  0xf3   : > { %v539_v5 = vadd.f32 %v538_v63, %v505_v31  ;;  %vm3076_vm3 = vmand %vm319_vm14, %vm320_vm13  ;;  %vm681_vm5 = vcmask 269312   ;;  %v691_v50 = vstv %s3053_s6  ;;  %vm715_vm14 = vcmask 261120   ;;  %s3140_s6 = sld [smem:[#allocation6 + $0x3e]] }
  0xf4   : > { %1380 = vrot.lane.b32.xlu1 %v2817_v43, %s2637_s5  ;;  %1348 = vrot.lane.b32.xlu0 %v2811_v40, %s2636_s21  ;;  %v599_v12 = vadd.f32 %v595_v60, %v587_v6  ;;  %v598_v15 = vadd.f32 %v594_v4, %v586_v9  ;;  %v687_v4 = vstv %s3070_s7  ;;  %vm702_vm13 = vmand %vm3076_vm3, %vm2924_vm4  ;;  %s3133_s21 = sld [smem:[#allocation6 + $0x3f]] }
  0xf5   : > { %v573_v11 = vadd.f32 %v572_v7, %v539_v5  ;;  %1382 = vrot.lane.b32.xlu2 %v2811_v40, %s2637_s5  ;;  %s2642_s5 = smov 99   ;;  %s3152_s7 = sld [smem:[#allocation6 + $0xd]] }
  0xf6   : > { %v643_v17 = vpop.permute.xlu1 %642  ;;  %v612_v21 = vpop.permute.xlu0 %611  ;;  %v603_v23 = vrot.slane %v599_v12, 7 }
  0xf7   : > { %v648_v24 = vsel %vm647_vm6, %v2945_v47, %v643_v17  ;;  %v651_v25 = vsel %vm647_vm6, %v643_v17, %v2945_v47  ;;  %v614_v27 = vsel %vm613_vm9, %v612_v21, %v2894_v16  ;;  %v3068_v2 = vpop.permute.xlu2 %812  ;;  %v617_v31 = vsel %vm613_vm9, %v2894_v16, %v612_v21  ;;  %vm634_vm6 = vmand %vm3076_vm3, %vm2914_vm1 }
  0xf8   : > { %v655_v28 = vmul.f32 %v653_v13, %v648_v24  ;;  %v658_v29 = vmul.f32 %v657_v14, %v651_v25  ;;  %v659_v30 = vmul.f32 %v657_v14, %v648_v24  ;;  %v604_v22 = vsel %vm308_vm2, %v598_v15, %v603_v23  ;;  %vm668_vm9 = vmand %vm3076_vm3, %vm2906_vm15 }
  0xf9   : > { %v625_v34 = vmul.f32 %v623_v20, %v614_v27  ;;  %v606_v35 = vsel %vm600_vm11, %v604_v22, 0.0  ;;  %v654_v47 = vmul.f32 %v653_v13, %v651_v25  ;;  %v621_v39 = vmul.f32 %v619_v18, %v614_v27 }
  0xfa   : > { %v662_v36 = vrot.slane %v658_v29, 1  ;;  %v663_v37 = vrot.slane %v659_v30, 1  ;;  %v607_v59 = vadd.f32 %v606_v35, %v573_v11  ;;  %v624_v41 = vmul.f32 %v623_v20, %v617_v31 }
  0xfb   : > { %v629_v42 = vrot.slane %v625_v34, 1  ;;  %v620_v16 = vmul.f32 %v619_v18, %v617_v31  ;;  %vm749_vm11 = vcmask 252928   ;;  %v755_v18 = vstv %s3085_s10  ;;  %s3182_s10 = sld [smem:[#allocation6 + $0xf]] }
  0xfc   : > { %v667_v46 = vadd.f32 %v663_v37, %v655_v28  ;;  %1416 = vrot.lane.b32.xlu1 %v2811_v40, %s2638_s8  ;;  %1414 = vrot.lane.b32.xlu0 %v2817_v43, %s2638_s8  ;;  %v628_v48 = vrot.slane %v624_v41, 1  ;;  %v666_v1 = vadd.f32 %v662_v36, %v654_v47  ;;  %v759_v20 = vstv %s3082_s9  ;;  %s2643_s8 = smov 98   ;;  %s3165_s9 = sld [smem:[#allocation6 + $0x40]] }
  0xfd   : > { %v633_v49 = vadd.f32 %v629_v42, %v621_v39  ;;  %1448 = vrot.lane.b32.xlu2 %v2817_v43, %s2639_s12  ;;  %v725_v24 = vstv %s3088_s13  ;;  %v721_v47 = vstv %s3100_s24  ;;  %s3189_s13 = sld [smem:[#allocation6 + $0x42]] }
  0xfe   : > { %v671_v51 = vrot.slane %v667_v46, 7  ;;  %v680_v52 = vpop.permute.xlu1 %679  ;;  %v677_v53 = vpop.permute.xlu0 %676  ;;  %v632_v55 = vadd.f32 %v628_v48, %v620_v16  ;;  %s3192_s24 = sld [smem:[#allocation6 + $0x11]] }
  0xff   : > { %v637_v56 = vrot.slane %v633_v49, 7  ;;  %v682_v57 = vsel %vm681_vm5, %v680_v52, %v677_v53  ;;  %v685_v58 = vsel %vm681_vm5, %v677_v53, %v680_v52  ;;  %v3096_v62 = vpop.permute.xlu2 %849  ;;  %vm783_vm5 = vcmask 244736  }
 0x100   : > { %v672_v63 = vsel %vm308_vm2, %v666_v1, %v671_v51  ;;  %v692_v5 = vmul.f32 %v691_v50, %v685_v58  ;;  %v693_v60 = vmul.f32 %v691_v50, %v682_v57  ;;  %v689_v11 = vmul.f32 %v687_v4, %v682_v57 }
 0x101   : > { %v638_v6 = vsel %vm308_vm2, %v632_v55, %v637_v56  ;;  %v674_v13 = vsel %vm668_vm9, %v672_v63, 0.0  ;;  %v688_v14 = vmul.f32 %v687_v4, %v685_v58  ;;  %v793_v52 = vstv %s3111_s27  ;;  %vm770_vm9 = vmand %vm3076_vm3, %vm3004_vm8  ;;  %s3202_s27 = sld [smem:[#allocation6 + $0x41]] }
 0x102   : > { %v640_v7 = vsel %vm634_vm6, %v638_v6, 0.0  ;;  %v696_v9 = vrot.slane %v692_v5, 1  ;;  %v697_v12 = vrot.slane %v693_v60, 1  ;;  %vm736_vm6 = vmand %vm3076_vm3, %vm2967_vm12 }
 0x103   : > { %v641_v10 = vadd.f32 %v640_v7, %v607_v59  ;;  %v789_v7 = vstv %s3126_s28  ;;  %s3214_s28 = sld [smem:[#allocation6 + $0x10]] }
 0x104   : > { %1482 = vrot.lane.b32.xlu1 %v2817_v43, %s2640_s25  ;;  %1450 = vrot.lane.b32.xlu0 %v2811_v40, %s2639_s12  ;;  %v701_v17 = vadd.f32 %v697_v12, %v689_v11  ;;  %v700_v21 = vadd.f32 %v696_v9, %v688_v14  ;;  %v322_v14 = vadd.s32 4294967295, %v2870_v61  ;;  %s2644_s12 = smov 97  }
 0x105   : > { %v675_v15 = vadd.f32 %v674_v13, %v641_v10  ;;  %1484 = vrot.lane.b32.xlu2 %v2811_v40, %s2640_s25  ;;  %s2645_s25 = smov 96  }
 0x106   : > { %v745_v23 = vpop.permute.xlu1 %744  ;;  %v714_v25 = vpop.permute.xlu0 %713  ;;  %v705_v27 = vrot.slane %v701_v17, 7 }
 0x107   : > { %v750_v28 = vsel %vm749_vm11, %v3034_v54, %v745_v23  ;;  %v753_v29 = vsel %vm749_vm11, %v745_v23, %v3034_v54  ;;  %v716_v30 = vsel %vm715_vm14, %v714_v25, %v2994_v19  ;;  %v3123_v22 = vpop.permute.xlu2 %914  ;;  %v719_v37 = vsel %vm715_vm14, %v2994_v19, %v714_v25 }
 0x108   : > { %v757_v31 = vmul.f32 %v755_v18, %v750_v28  ;;  %v760_v34 = vmul.f32 %v759_v20, %v753_v29  ;;  %v761_v35 = vmul.f32 %v759_v20, %v750_v28  ;;  %v706_v36 = vsel %vm308_vm2, %v700_v21, %v705_v27 }
 0x109   : > { %v727_v59 = vmul.f32 %v725_v24, %v716_v30  ;;  %v708_v39 = vsel %vm702_vm13, %v706_v36, 0.0  ;;  %v756_v41 = vmul.f32 %v755_v18, %v753_v29  ;;  %v723_v16 = vmul.f32 %v721_v47, %v716_v30 }
 0x10a   : > { %v764_v54 = vrot.slane %v760_v34, 1  ;;  %v765_v42 = vrot.slane %v761_v35, 1  ;;  %v709_v46 = vadd.f32 %v708_v39, %v675_v15  ;;  %v726_v48 = vmul.f32 %v725_v24, %v719_v37 }
 0x10b   : > { %v731_v49 = vrot.slane %v727_v59, 1  ;;  %v722_v19 = vmul.f32 %v721_v47, %v719_v37  ;;  %vm851_vm11 = vcmask 154624   ;;  %vm817_vm14 = vcmask 236544  }
 0x10c   : > { %v769_v50 = vadd.f32 %v765_v42, %v757_v31  ;;  %1518 = vrot.lane.b32.xlu1 %v2811_v40, %s2641_s29  ;;  %1516 = vrot.lane.b32.xlu0 %v2817_v43, %s2641_s29  ;;  %v730_v1 = vrot.slane %v726_v48, 1  ;;  %v768_v53 = vadd.f32 %v764_v54, %v756_v41  ;;  %v857_v25 = vstv %s3136_s30  ;;  %s2646_s29 = smov 95   ;;  %s3241_s30 = sld [smem:[#allocation6 + $0x12]] }
 0x10d   : > { %v735_v51 = vadd.f32 %v731_v49, %v723_v16  ;;  %1550 = vrot.lane.b32.xlu2 %v2817_v43, %s2642_s5  ;;  %v861_v27 = vstv %s3133_s21  ;;  %vm323_vm13 = vcmp.ge.s32.totalorder %v322_v14, 0  ;;  %v827_v29 = vstv %s3140_s6  ;;  %s3226_s21 = sld [smem:[#allocation6 + $0x43]] }
 0x10e   : > { %v773_v55 = vrot.slane %v769_v50, 7  ;;  %v782_v56 = vpop.permute.xlu1 %781  ;;  %v779_v57 = vpop.permute.xlu0 %778  ;;  %v734_v58 = vadd.f32 %v730_v1, %v722_v19  ;;  %v823_v41 = vstv %s3152_s7  ;;  %s3248_s6 = sld [smem:[#allocation6 + $0x45]] }
 0x10f   : > { %v739_v63 = vrot.slane %v735_v51, 7  ;;  %v784_v4 = vsel %vm783_vm5, %v782_v56, %v779_v57  ;;  %v787_v5 = vsel %vm783_vm5, %v779_v57, %v782_v56  ;;  %v3148_v6 = vpop.permute.xlu2 %951  ;;  %vm804_vm5 = vmand %vm3076_vm3, %vm3022_vm10  ;;  %v895_v56 = vstv %s3165_s9  ;;  %s3251_s7 = sld [smem:[#allocation6 + $0x14]] }
 0x110   : > { %v774_v60 = vsel %vm308_vm2, %v768_v53, %v773_v55  ;;  %v794_v9 = vmul.f32 %v793_v52, %v787_v5  ;;  %v795_v11 = vmul.f32 %v793_v52, %v784_v4  ;;  %v791_v17 = vmul.f32 %v789_v7, %v784_v4  ;;  %s3254_s9 = sld [smem:[#allocation6 + $0x44]] }
 0x111   : > { %v740_v10 = vsel %vm308_vm2, %v734_v58, %v739_v63  ;;  %v776_v20 = vsel %vm770_vm9, %v774_v60, 0.0  ;;  %v790_v21 = vmul.f32 %v789_v7, %v787_v5  ;;  %vm885_vm9 = vcmask 146432  }
 0x112   : > { %v742_v12 = vsel %vm736_vm6, %v740_v10, 0.0  ;;  %v798_v13 = vrot.slane %v794_v9, 1  ;;  %v799_v18 = vrot.slane %v795_v11, 1  ;;  %vm324_vm6 = vcmp.lt.s32.totalorder %v322_v14, 16 }
 0x113   : > { %v743_v15 = vadd.f32 %v742_v12, %v709_v46 }
 0x114   : > { %1584 = vrot.lane.b32.xlu1 %v2817_v43, %s2643_s8  ;;  %1552 = vrot.lane.b32.xlu0 %v2811_v40, %s2642_s5  ;;  %v803_v24 = vadd.f32 %v799_v18, %v791_v17  ;;  %v802_v61 = vadd.f32 %v798_v13, %v790_v21  ;;  %v891_v13 = vstv %s3182_s10  ;;  %s2647_s5 = smov 94   ;;  %s3266_s10 = sld [smem:[#allocation6 + $0x13]] }
 0x115   : > { %v777_v23 = vadd.f32 %v776_v20, %v743_v15  ;;  %1586 = vrot.lane.b32.xlu2 %v2811_v40, %s2643_s8  ;;  %s2648_s8 = smov 93  }
 0x116   : > { %v847_v28 = vpop.permute.xlu1 %846  ;;  %v816_v30 = vpop.permute.xlu0 %815  ;;  %v807_v31 = vrot.slane %v803_v24, 7 }
 0x117   : > { %v852_v34 = vsel %vm851_vm11, %v3096_v62, %v847_v28  ;;  %v855_v35 = vsel %vm851_vm11, %v847_v28, %v3096_v62  ;;  %v818_v47 = vsel %vm817_vm14, %v816_v30, %v3068_v2  ;;  %v3179_v36 = vpop.permute.xlu2 %1016  ;;  %v821_v42 = vsel %vm817_vm14, %v3068_v2, %v816_v30  ;;  %vm3198_vm11 = vmand %vm323_vm13, %vm324_vm6 }
 0x118   : > { %v859_v37 = vmul.f32 %v857_v25, %v852_v34  ;;  %v862_v59 = vmul.f32 %v861_v27, %v855_v35  ;;  %v863_v39 = vmul.f32 %v861_v27, %v852_v34  ;;  %v808_v54 = vsel %vm308_vm2, %v802_v61, %v807_v31  ;;  %vm838_vm14 = vmand %vm3076_vm3, %vm3043_vm7 }
 0x119   : > { %v829_v46 = vmul.f32 %v827_v29, %v818_v47  ;;  %v810_v16 = vsel %vm804_vm5, %v808_v54, 0.0  ;;  %v858_v62 = vmul.f32 %v857_v25, %v855_v35  ;;  %v825_v19 = vmul.f32 %v823_v41, %v818_v47  ;;  %vm872_vm13 = vmand %vm3198_vm11, %vm2914_vm1 }
 0x11a   : > { %v866_v48 = vrot.slane %v862_v59, 1  ;;  %v867_v49 = vrot.slane %v863_v39, 1  ;;  %v811_v50 = vadd.f32 %v810_v16, %v777_v23  ;;  %v828_v1 = vmul.f32 %v827_v29, %v821_v42  ;;  %vm906_vm6 = vmand %vm3198_vm11, %vm2906_vm15 }
 0x11b   : > { %v833_v51 = vrot.slane %v829_v46, 1  ;;  %v824_v2 = vmul.f32 %v823_v41, %v821_v42  ;;  %vm953_vm3 = vcmask 130048   ;;  %vm919_vm5 = vcmask 138240  }
 0x11c   : > { %v871_v52 = vadd.f32 %v867_v49, %v859_v37  ;;  %1620 = vrot.lane.b32.xlu1 %v2811_v40, %s2644_s12  ;;  %1618 = vrot.lane.b32.xlu0 %v2817_v43, %s2644_s12  ;;  %v832_v53 = vrot.slane %v828_v1, 1  ;;  %v870_v58 = vadd.f32 %v866_v48, %v858_v62  ;;  %v959_v28 = vstv %s3192_s24  ;;  %s2649_s12 = smov 83   ;;  %s3280_s24 = sld [smem:[#allocation6 + $0x49]] }
 0x11d   : > { %v837_v55 = vadd.f32 %v833_v51, %v825_v19  ;;  %1652 = vrot.lane.b32.xlu2 %v2817_v43, %s2645_s25  ;;  %v963_v29 = vstv %s3189_s13  ;;  %v929_v34 = vstv %s3202_s27  ;;  %v925_v16 = vstv %s3214_s28  ;;  %s3275_s13 = sld [smem:[#allocation6 + $0x46]] }
 0x11e   : > { %v875_v63 = vrot.slane %v871_v52, 7  ;;  %v884_v4 = vpop.permute.xlu1 %883  ;;  %v881_v5 = vpop.permute.xlu0 %880  ;;  %v836_v60 = vadd.f32 %v832_v53, %v824_v2  ;;  %s3301_s27 = sld [smem:[#allocation6 + $0x18]] }
 0x11f   : > { %v841_v7 = vrot.slane %v837_v55, 7  ;;  %v886_v9 = vsel %vm885_vm9, %v884_v4, %v881_v5  ;;  %v889_v10 = vsel %vm885_vm9, %v881_v5, %v884_v4  ;;  %v3210_v11 = vpop.permute.xlu2 %1053  ;;  %vm987_vm9 = vcmask 121856   ;;  %s3303_s28 = sld [smem:[#allocation6 + $0x17]] }
 0x120   : > { %v876_v12 = vsel %vm308_vm2, %v870_v58, %v875_v63  ;;  %v896_v14 = vmul.f32 %v895_v56, %v889_v10  ;;  %v897_v15 = vmul.f32 %v895_v56, %v886_v9  ;;  %v893_v21 = vmul.f32 %v891_v13, %v886_v9 }
 0x121   : > { %v842_v44 = vsel %vm308_vm2, %v836_v60, %v841_v7  ;;  %v878_v24 = vsel %vm872_vm13, %v876_v12, 0.0  ;;  %v892_v25 = vmul.f32 %v891_v13, %v889_v10  ;;  %v997_v63 = vstv %s3226_s21  ;;  %vm974_vm13 = vmand %vm3198_vm11, %vm2967_vm12  ;;  %s3308_s21 = sld [smem:[#allocation6 + $0x48]] }
 0x122   : > { %v844_v17 = vsel %vm838_vm14, %v842_v44, 0.0  ;;  %v900_v18 = vrot.slane %v896_v14, 1  ;;  %v901_v23 = vrot.slane %v897_v15, 1  ;;  %vm940_vm14 = vmand %vm3198_vm11, %vm2924_vm4  ;;  %v993_v15 = vstv %s3241_s30  ;;  %s3310_s30 = sld [smem:[#allocation6 + $0x16]] }
 0x123   : > { %v845_v20 = vadd.f32 %v844_v17, %v811_v50 }
 0x124   : > { %1686 = vrot.lane.b32.xlu1 %v2817_v43, %s2646_s29  ;;  %1654 = vrot.lane.b32.xlu0 %v2811_v40, %s2645_s25  ;;  %v905_v61 = vadd.f32 %v901_v23, %v893_v21  ;;  %v904_v30 = vadd.f32 %v900_v18, %v892_v25  ;;  %s3283_s25 = sld [smem:[#allocation6 + $0x15]] }
 0x125   : > { %v879_v27 = vadd.f32 %v878_v24, %v845_v20  ;;  %1688 = vrot.lane.b32.xlu2 %v2811_v40, %s2646_s29  ;;  %s2650_s29 = smov 82  }
 0x126   : > { %v949_v31 = vpop.permute.xlu1 %948  ;;  %v918_v35 = vpop.permute.xlu0 %917  ;;  %v909_v47 = vrot.slane %v905_v61, 7 }
 0x127   : > { %v954_v37 = vsel %vm953_vm3, %v3148_v6, %v949_v31  ;;  %v957_v59 = vsel %vm953_vm3, %v949_v31, %v3148_v6  ;;  %v920_v39 = vsel %vm919_vm5, %v918_v35, %v3123_v22  ;;  %v3238_v41 = vpop.permute.xlu2 %1118  ;;  %v923_v48 = vsel %vm919_vm5, %v3123_v22, %v918_v35 }
 0x128   : > { %v961_v54 = vmul.f32 %v959_v28, %v954_v37  ;;  %v964_v42 = vmul.f32 %v963_v29, %v957_v59  ;;  %v965_v46 = vmul.f32 %v963_v29, %v954_v37  ;;  %v910_v62 = vsel %vm308_vm2, %v904_v30, %v909_v47 }
 0x129   : > { %v931_v49 = vmul.f32 %v929_v34, %v920_v39  ;;  %v912_v50 = vsel %vm906_vm6, %v910_v62, 0.0  ;;  %v960_v19 = vmul.f32 %v959_v28, %v957_v59  ;;  %v927_v52 = vmul.f32 %v925_v16, %v920_v39  ;;  %vm1008_vm6 = vmand %vm3198_vm11, %vm3004_vm8 }
 0x12a   : > { %v968_v6 = vrot.slane %v964_v42, 1  ;;  %v969_v1 = vrot.slane %v965_v46, 1  ;;  %v913_v51 = vadd.f32 %v912_v50, %v879_v27  ;;  %v930_v2 = vmul.f32 %v929_v34, %v923_v48 }
 0x12b   : > { %v935_v53 = vrot.slane %v931_v49, 1  ;;  %v926_v22 = vmul.f32 %v925_v16, %v923_v48  ;;  %vm1055_vm3 = vcmask 105472   ;;  %vm1021_vm5 = vcmask 113664  }
 0x12c   : > { %v973_v55 = vadd.f32 %v969_v1, %v961_v54  ;;  %1722 = vrot.lane.b32.xlu1 %v2811_v40, %s2647_s5  ;;  %1720 = vrot.lane.b32.xlu0 %v2817_v43, %s2647_s5  ;;  %v934_v56 = vrot.slane %v930_v2, 1  ;;  %v972_v4 = vadd.f32 %v968_v6, %v960_v19  ;;  %v1061_v31 = vstv %s3251_s7  ;;  %s2651_s5 = smov 81   ;;  %s2652_s7 = smov 80  }
 0x12d   : > { %v939_v58 = vadd.f32 %v935_v53, %v927_v52  ;;  %1754 = vrot.lane.b32.xlu2 %v2817_v43, %s2648_s8  ;;  %v1065_v34 = vstv %s3248_s6  ;;  %v1031_v37 = vstv %s3254_s9  ;;  %v1027_v50 = vstv %s3266_s10  ;;  %s3316_s6 = sld [smem:[#allocation6 + $0x47]]  ;;  %s2653_s10 = smov 79  }
 0x12e   : > { %v977_v5 = vrot.slane %v973_v55, 7  ;;  %v986_v60 = vpop.permute.xlu1 %985  ;;  %v983_v7 = vpop.permute.xlu0 %982  ;;  %v938_v9 = vadd.f32 %v934_v56, %v926_v22  ;;  %s3374_s9 = sld [smem:[#allocation6 + $0x19]] }
 0x12f   : > { %v943_v10 = vrot.slane %v939_v58, 7  ;;  %v988_v12 = vsel %vm987_vm9, %v986_v60, %v983_v7  ;;  %v991_v13 = vsel %vm987_vm9, %v983_v7, %v986_v60  ;;  %v3262_v14 = vpop.permute.xlu2 %1155  ;;  %vm1089_vm9 = vcmask 23552  }
 0x130   : > { %v978_v44 = vsel %vm308_vm2, %v972_v4, %v977_v5  ;;  %v998_v17 = vmul.f32 %v997_v63, %v991_v13  ;;  %v999_v20 = vmul.f32 %v997_v63, %v988_v12  ;;  %v995_v25 = vmul.f32 %v993_v15, %v988_v12 }
 0x131   : > { %v944_v18 = vsel %vm308_vm2, %v938_v9, %v943_v10  ;;  %v980_v61 = vsel %vm974_vm13, %v978_v44, 0.0  ;;  %v994_v28 = vmul.f32 %v993_v15, %v991_v13  ;;  %v1191_v60 = vstv %s3280_s24  ;;  %s2654_s24 = smov 78  }
 0x132   : > { %v946_v21 = vsel %vm940_vm14, %v944_v18, 0.0  ;;  %v1002_v23 = vrot.slane %v998_v17, 1  ;;  %v1003_v27 = vrot.slane %v999_v20, 1  ;;  %v1095_v12 = vstv %s3283_s25  ;;  %vm1042_vm14 = vmand %vm3198_vm11, %vm3022_vm10  ;;  %s3388_s25 = sld [smem:[#allocation6 + $0x1a]] }
 0x133   : > { %v947_v24 = vadd.f32 %v946_v21, %v913_v51 }
 0x134   : > { %1788 = vrot.lane.b32.xlu1 %v2817_v43, %s2649_s12  ;;  %1756 = vrot.lane.b32.xlu0 %v2811_v40, %s2648_s8  ;;  %v1007_v30 = vadd.f32 %v1003_v27, %v995_v25  ;;  %v1006_v35 = vadd.f32 %v1002_v23, %v994_v28  ;;  %v3327_v23 = vld [vmem:[#allocation8] ss:$2 sm:$0x3]  ;;  %v1193_v25 = vmul.f32 %v1191_v60, %v2811_v40  ;;  %v1187_v28 = vstv %s3301_s27  ;;  %s3355_s8 = sld [smem:[#allocation6 + $0x4a]] }
 0x135   : > { %v981_v29 = vadd.f32 %v980_v61, %v947_v24  ;;  %1790 = vrot.lane.b32.xlu2 %v2811_v40, %s2649_s12  ;;  %vm326_vm13 = vcmp.ge.s32.totalorder %v3327_v23, 0  ;;  %s3381_s12 = sld [smem:[#allocation6 + $0x1b]] }
 0x136   : > { %v1051_v47 = vpop.permute.xlu1 %1050  ;;  %v1020_v59 = vpop.permute.xlu0 %1019  ;;  %v1011_v39 = vrot.slane %v1007_v30, 7  ;;  %s3400_s27 = sld [smem:[#allocation6 + $0x4b]] }
 0x137   : > { %v1056_v54 = vsel %vm1055_vm3, %v3210_v11, %v1051_v47  ;;  %v1059_v42 = vsel %vm1055_vm3, %v1051_v47, %v3210_v11  ;;  %v1022_v46 = vsel %vm1021_vm5, %v1020_v59, %v3179_v36  ;;  %v3295_v16 = vpop.permute.xlu2 %1244  ;;  %v1025_v6 = vsel %vm1021_vm5, %v3179_v36, %v1020_v59  ;;  %vm1076_vm3 = vmand %vm3198_vm11, %vm3043_vm7 }
 0x138   : > { %v1063_v62 = vmul.f32 %v1061_v31, %v1056_v54  ;;  %v1066_v48 = vmul.f32 %v1065_v34, %v1059_v42  ;;  %v1067_v49 = vmul.f32 %v1065_v34, %v1056_v54  ;;  %v1012_v19 = vsel %vm308_vm2, %v1006_v35, %v1011_v39 }
 0x139   : > { %v1033_v1 = vmul.f32 %v1031_v37, %v1022_v46  ;;  %v1014_v51 = vsel %vm1008_vm6, %v1012_v19, 0.0  ;;  %v1062_v11 = vmul.f32 %v1061_v31, %v1059_v42  ;;  %v1029_v55 = vmul.f32 %v1027_v50, %v1022_v46 }
 0x13a   : > { %v1070_v52 = vrot.slane %v1066_v48, 1  ;;  %v1071_v2 = vrot.slane %v1067_v49, 1  ;;  %v1015_v53 = vadd.f32 %v1014_v51, %v981_v29  ;;  %v1032_v22 = vmul.f32 %v1031_v37, %v1025_v6 }
 0x13b   : > { %v1037_v56 = vrot.slane %v1033_v1, 1  ;;  %v1099_v36 = vstv %s3275_s13  ;;  %v1028_v63 = vmul.f32 %v1027_v50, %v1025_v6  ;;  %vm327_vm5 = vcmp.lt.s32.totalorder %v3327_v23, 16  ;;  %s3384_s13 = sld [smem:[#allocation6 + $0x4c]] }
 0x13c   : > { %v1075_v58 = vadd.f32 %v1071_v2, %v1063_v62  ;;  %1824 = vrot.lane.b32.xlu1 %v2811_v40, %s2650_s29  ;;  %1822 = vrot.lane.b32.xlu0 %v2817_v43, %s2650_s29  ;;  %v1036_v4 = vrot.slane %v1032_v22, 1  ;;  %v1074_v7 = vadd.f32 %v1070_v52, %v1062_v11  ;;  %vm1157_vm6 = vcmask 7168   ;;  %vm3346_vm0 = vmand %vm326_vm13, %vm327_vm5  ;;  %s3417_s29 = sld [smem:[#allocation6 + $0x4d]] }
 0x13d   : > { %v1041_v5 = vadd.f32 %v1037_v56, %v1029_v55  ;;  %1856 = vrot.lane.b32.xlu2 %v2817_v43, %s2651_s5  ;;  %v1163_v31 = vstv %s3303_s28  ;;  %v1189_v39 = vmul.f32 %v1187_v28, %v2811_v40  ;;  %v1197_v54 = vrot.slane %v1193_v25, 1  ;;  %vm1110_vm11 = vmand %vm3346_vm0, %vm2914_vm1  ;;  %s2655_s28 = smov 77  }
 0x13e   : > { %v1079_v9 = vrot.slane %v1075_v58, 7  ;;  %v1088_v10 = vpop.permute.xlu1 %1087  ;;  %v1085_v13 = vpop.permute.xlu0 %1084  ;;  %v1040_v44 = vadd.f32 %v1036_v4, %v1028_v63  ;;  %v1167_v62 = vstv %s3308_s21  ;;  %v1192_v48 = vmul.f32 %v1191_v60, %v2817_v43  ;;  %vm1144_vm13 = vmand %vm3346_vm0, %vm2906_vm15  ;;  %s3437_s21 = sld [smem:[#allocation6 + $0x1c]] }
 0x13f   : > { %v1045_v15 = vrot.slane %v1041_v5, 7  ;;  %v1090_v17 = vsel %vm1089_vm9, %v1088_v10, %v1085_v13  ;;  %v1093_v18 = vsel %vm1089_vm9, %v1085_v13, %v1088_v10  ;;  %v3324_v20 = vpop.permute.xlu2 %1280  ;;  %vm1123_vm9 = vcmask 15360   ;;  %vm1202_vm5 = vmand %vm3346_vm0, %vm2967_vm12 }
 0x140   : > { %v1080_v21 = vsel %vm308_vm2, %v1074_v7, %v1079_v9  ;;  %v1100_v24 = vmul.f32 %v1099_v36, %v1093_v18  ;;  %v1101_v61 = vmul.f32 %v1099_v36, %v1090_v17  ;;  %v1097_v35 = vmul.f32 %v1095_v12, %v1090_v17 }
 0x141   : > { %v1046_v27 = vsel %vm308_vm2, %v1040_v44, %v1045_v15  ;;  %v1082_v37 = vsel %vm1076_vm3, %v1080_v21, 0.0  ;;  %v1096_v57 = vmul.f32 %v1095_v12, %v1093_v18  ;;  %v1129_v19 = vstv %s3310_s30  ;;  %vm1178_vm3 = vmand %vm3346_vm0, %vm2924_vm4  ;;  %s3450_s30 = sld [smem:[#allocation6 + $0x4e]] }
 0x142   : > { %v1048_v29 = vsel %vm1042_vm14, %v1046_v27, 0.0  ;;  %v1104_v30 = vrot.slane %v1100_v24, 1  ;;  %v1105_v47 = vrot.slane %v1101_v61, 1  ;;  %v1133_v6 = vstv %s3316_s6  ;;  %s3479_s6 = sld [smem:[#allocation6 + $0x4f]] }
 0x143   : > { %v1049_v34 = vadd.f32 %v1048_v29, %v1015_v53  ;;  %v1188_v51 = vmul.f32 %v1187_v28, %v2817_v43  ;;  %v1201_v36 = vadd.f32 %v1197_v54, %v1189_v39  ;;  %v1196_v60 = vrot.slane %v1192_v48, 1 }
 0x144   : > { %1890 = vrot.lane.b32.xlu1 %v2817_v43, %s2652_s7  ;;  %1858 = vrot.lane.b32.xlu0 %v2811_v40, %s2651_s5  ;;  %v1109_v46 = vadd.f32 %v1105_v47, %v1097_v35  ;;  %v1108_v49 = vadd.f32 %v1104_v30, %v1096_v57  ;;  %vm1214_vm14 = vcmask 1039360   ;;  %v1225_v24 = vstv %s3355_s8  ;;  %s3456_s5 = sld [smem:[#allocation6 + $0x1d]] }
 0x145   : > { %v1083_v42 = vadd.f32 %v1082_v37, %v1049_v34  ;;  %1892 = vrot.lane.b32.xlu2 %v2811_v40, %s2652_s7  ;;  %v1205_v28 = vrot.slane %v1201_v36, 7  ;;  %v1200_v30 = vadd.f32 %v1196_v60, %v1188_v51  ;;  %v1221_v39 = vstv %s3374_s9  ;;  %s3486_s7 = sld [smem:[#allocation6 + $0x50]] }
 0x146   : > { %v1153_v50 = vpop.permute.xlu1 %1152  ;;  %v1122_v1 = vpop.permute.xlu0 %1121  ;;  %v1113_v11 = vrot.slane %v1109_v46, 7  ;;  %v1289_v51 = vstv %s3381_s12  ;;  %s3490_s8 = sld [smem:[#allocation6 + $0x1e]] }
 0x147   : > { %v1158_v52 = vsel %vm1157_vm6, %v3262_v14, %v1153_v50  ;;  %v1161_v2 = vsel %vm1157_vm6, %v1153_v50, %v3262_v14  ;;  %v1124_v53 = vsel %vm1123_vm9, %v1122_v1, %v3238_v41  ;;  %v3372_v55 = vpop.permute.xlu2 %1346  ;;  %v1127_v4 = vsel %vm1123_vm9, %v3238_v41, %v1122_v1  ;;  %s3496_s9 = sld [smem:[#allocation6 + $0x1f]] }
 0x148   : > { %v1165_v22 = vmul.f32 %v1163_v31, %v1158_v52  ;;  %v1168_v56 = vmul.f32 %v1167_v62, %v1161_v2  ;;  %v1169_v58 = vmul.f32 %v1167_v62, %v1158_v52  ;;  %v1114_v63 = vsel %vm308_vm2, %v1108_v49, %v1113_v11  ;;  %s3503_s12 = sld [smem:[#allocation6 + $0x52]] }
 0x149   : > { %v1135_v5 = vmul.f32 %v1133_v6, %v1124_v53  ;;  %v1116_v7 = vsel %vm1110_vm11, %v1114_v63, 0.0  ;;  %v1164_v14 = vmul.f32 %v1163_v31, %v1161_v2  ;;  %v1131_v13 = vmul.f32 %v1129_v19, %v1124_v53  ;;  %vm1236_vm11 = vmand %vm3346_vm0, %vm3004_vm8 }
 0x14a   : > { %v1172_v9 = vrot.slane %v1168_v56, 1  ;;  %v1173_v10 = vrot.slane %v1169_v58, 1  ;;  %v1117_v12 = vadd.f32 %v1116_v7, %v1083_v42  ;;  %v1134_v44 = vmul.f32 %v1133_v6, %v1127_v4 }
 0x14b   : > { %v1139_v15 = vrot.slane %v1135_v5, 1  ;;  %v1130_v41 = vmul.f32 %v1129_v19, %v1127_v4  ;;  %v1206_v48 = vsel %vm308_vm2, %v1200_v30, %v1205_v28  ;;  %vm1282_vm6 = vcmask 1022976  }
 0x14c   : > { %v1177_v17 = vadd.f32 %v1173_v10, %v1165_v22  ;;  %1926 = vrot.lane.b32.xlu1 %v2811_v40, %s2653_s10  ;;  %1924 = vrot.lane.b32.xlu0 %v2817_v43, %s2653_s10  ;;  %v1138_v18 = vrot.slane %v1134_v44, 1  ;;  %v1176_v25 = vadd.f32 %v1172_v9, %v1164_v14  ;;  %v1293_v53 = vstv %s3384_s13  ;;  %s3500_s10 = sld [smem:[#allocation6 + $0x51]] }
 0x14d   : > { %v1143_v21 = vadd.f32 %v1139_v15, %v1131_v13  ;;  %1958 = vrot.lane.b32.xlu2 %v2817_v43, %s2654_s24  ;;  %vm1248_vm9 = vcmask 1031168   ;;  %v1255_v56 = vstv %s3388_s25  ;;  %v1259_v9 = vstv %s3400_s27  ;;  %s3508_s13 = sld [smem:[#allocation6 + $0x20]] }
 0x14e   : > { %v1181_v27 = vrot.slane %v1177_v17, 7  ;;  %v1213_v61 = vpop.permute.xlu1 %1212  ;;  %v1211_v29 = vpop.permute.xlu0 %1210  ;;  %v1142_v31 = vadd.f32 %v1138_v18, %v1130_v41  ;;  %v1327_v30 = vstv %s3417_s29  ;;  %s3516_s25 = sld [smem:[#allocation6 + $0x53]] }
 0x14f   : > { %v1147_v34 = vrot.slane %v1143_v21, 7  ;;  %v1215_v35 = vsel %vm1214_vm14, %v1211_v29, %v1213_v61  ;;  %v1219_v47 = vsel %vm1214_vm14, %v1213_v61, %v1211_v29  ;;  %v3396_v37 = vpop.permute.xlu2 %1382  ;;  %vm1316_vm14 = vcmask 941056   ;;  %s3523_s27 = sld [smem:[#allocation6 + $0x22]] }
 0x150   : > { %v1182_v57 = vsel %vm308_vm2, %v1176_v25, %v1181_v27  ;;  %v1226_v54 = vmul.f32 %v1225_v24, %v1215_v35  ;;  %v1227_v46 = vmul.f32 %v1225_v24, %v1219_v47  ;;  %v1223_v50 = vmul.f32 %v1221_v39, %v1219_v47  ;;  %s3530_s29 = sld [smem:[#allocation6 + $0x24]] }
 0x151   : > { %v1148_v42 = vsel %vm308_vm2, %v1142_v31, %v1147_v34  ;;  %v1184_v1 = vsel %vm1178_vm3, %v1182_v57, 0.0  ;;  %v1222_v52 = vmul.f32 %v1221_v39, %v1215_v35  ;;  %v329_v27 = vadd.s32 1, %v3327_v23  ;;  %vm1270_vm3 = vmand %vm3346_vm0, %vm3022_vm10 }
 0x152   : > { %v1150_v62 = vsel %vm1144_vm13, %v1148_v42, 0.0  ;;  %v1230_v19 = vrot.slane %v1226_v54, 1  ;;  %v1231_v6 = vrot.slane %v1227_v46, 1 }
 0x153   : > { %v1151_v49 = vadd.f32 %v1150_v62, %v1117_v12  ;;  %vm330_vm13 = vcmp.ge.s32.totalorder %v329_v27, 0  ;;  %v1323_v62 = vstv %s3437_s21  ;;  %s3536_s21 = sld [smem:[#allocation6 + $0x54]] }
 0x154   : > { %1992 = vrot.lane.b32.xlu1 %v2817_v43, %s2655_s28  ;;  %1960 = vrot.lane.b32.xlu0 %v2811_v40, %s2654_s24  ;;  %v1235_v2 = vadd.f32 %v1231_v6, %v1223_v50  ;;  %v1208_v43 = vsel %vm1202_vm5, %v1206_v48, 0.0  ;;  %v1234_v36 = vadd.f32 %v1230_v19, %v1222_v52  ;;  %vm331_vm5 = vcmp.lt.s32.totalorder %v329_v27, 16  ;;  %s3514_s24 = sld [smem:[#allocation6 + $0x21]] }
 0x155   : > { %v1185_v11 = vadd.f32 %v1184_v1, %v1151_v49  ;;  %1994 = vrot.lane.b32.xlu2 %v2811_v40, %s2655_s28  ;;  %s3526_s28 = sld [smem:[#allocation6 + $0x55]] }
 0x156   : > { %v1279_v22 = vpop.permute.xlu1 %1278  ;;  %v1247_v58 = vpop.permute.xlu0 %1246  ;;  %v1239_v63 = vrot.slane %v1235_v2, 7 }
 0x157   : > { %v1283_v40 = vsel %vm1282_vm6, %v1279_v22, %v3324_v20  ;;  %v1287_v4 = vsel %vm1282_vm6, %v3324_v20, %v1279_v22  ;;  %v3434_v5 = vpop.permute.xlu2 %1448  ;;  %v1209_v10 = vadd.f32 %v1208_v43, %v1185_v11  ;;  %v1249_v13 = vsel %vm1248_vm9, %v3295_v16, %v1247_v58  ;;  %vm1304_vm6 = vmand %vm3346_vm0, %vm3043_vm7 }
 0x158   : > { %v1291_v60 = vmul.f32 %v1289_v51, %v1287_v4  ;;  %v1294_v7 = vmul.f32 %v1293_v53, %v1283_v40  ;;  %v1295_v14 = vmul.f32 %v1293_v53, %v1287_v4  ;;  %v1240_v12 = vsel %vm308_vm2, %v1234_v36, %v1239_v63 }
 0x159   : > { %v1253_v44 = vsel %vm1248_vm9, %v1247_v58, %v3295_v16  ;;  %v1242_v15 = vsel %vm1236_vm11, %v1240_v12, 0.0  ;;  %v1290_v20 = vmul.f32 %v1289_v51, %v1283_v40  ;;  %v1260_v21 = vmul.f32 %v1259_v9, %v1249_v13  ;;  %vm3464_vm9 = vmand %vm330_vm13, %vm331_vm5 }
 0x15a   : > { %v1298_v17 = vrot.slane %v1294_v7, 1  ;;  %v1299_v41 = vrot.slane %v1295_v14, 1  ;;  %v1243_v18 = vadd.f32 %v1242_v15, %v1209_v10  ;;  %v1261_v24 = vmul.f32 %v1259_v9, %v1253_v44  ;;  %vm1338_vm0 = vmand %vm3464_vm9, %vm2914_vm1 }
 0x15b   : > { %v1257_v61 = vmul.f32 %v1255_v56, %v1253_v44  ;;  %v1264_v28 = vrot.slane %v1260_v21, 1  ;;  %v1256_v47 = vmul.f32 %v1255_v56, %v1249_v13  ;;  %vm1350_vm11 = vcmask 932864  }
 0x15c   : > { %v1303_v25 = vadd.f32 %v1299_v41, %v1291_v60  ;;  %v1265_v29 = vrot.slane %v1261_v24, 1  ;;  %v1302_v31 = vadd.f32 %v1298_v17, %v1290_v20  ;;  %v1361_v4 = vstv %s3450_s30  ;;  %s3552_s30 = sld [smem:[#allocation6 + $0x23]] }
 0x15d   : > { %v1268_v49 = vadd.f32 %v1264_v28, %v1256_v47  ;;  %v1357_v12 = vstv %s3456_s5  ;;  %vm1384_vm13 = vcmask 924672   ;;  %vm1452_vm5 = vcmask 908288   ;;  %s3558_s5 = sld [smem:[#allocation6 + $0x25]] }
 0x15e   : > { %v1307_v34 = vrot.slane %v1303_v25, 7  ;;  %v1315_v35 = vpop.permute.xlu1 %1314  ;;  %v1313_v16 = vpop.permute.xlu0 %1312  ;;  %v1269_v57 = vadd.f32 %v1265_v29, %v1257_v61 }
 0x15f   : > { %v1317_v39 = vsel %vm1316_vm14, %v1313_v16, %v1315_v35  ;;  %v1321_v54 = vsel %vm1316_vm14, %v1315_v35, %v1313_v16  ;;  %v3446_v42 = vpop.permute.xlu2 %1484  ;;  %vm1372_vm14 = vmand %vm3464_vm9, %vm2906_vm15  ;;  %v1395_v35 = vstv %s3479_s6  ;;  %s3560_s6 = sld [smem:[#allocation6 + $0x56]] }
 0x160   : > { %v1308_v46 = vsel %vm308_vm2, %v1302_v31, %v1307_v34  ;;  %v1328_v48 = vmul.f32 %v1327_v30, %v1317_v39  ;;  %v1273_v50 = vrot.slane %v1269_v57, 7  ;;  %v1329_v19 = vmul.f32 %v1327_v30, %v1321_v54 }
 0x161   : > { %v1325_v1 = vmul.f32 %v1323_v62, %v1321_v54  ;;  %v1324_v43 = vmul.f32 %v1323_v62, %v1317_v39  ;;  %v1310_v56 = vsel %vm1304_vm6, %v1308_v46, 0.0  ;;  %v1429_v57 = vstv %s3486_s7  ;;  %s3585_s7 = sld [smem:[#allocation6 + $0x27]] }
 0x162   : > { %v1274_v6 = vsel %vm308_vm2, %v1268_v49, %v1273_v50  ;;  %v1332_v51 = vrot.slane %v1328_v48, 1  ;;  %v1333_v11 = vrot.slane %v1329_v19, 1  ;;  %v1391_v54 = vstv %s3490_s8  ;;  %s3598_s8 = sld [smem:[#allocation6 + $0x58]] }
 0x163   : > { %v1276_v52 = vsel %vm1270_vm3, %v1274_v6, 0.0  ;;  %vm1418_vm3 = vcmask 916480   ;;  %vm1486_vm6 = vcmask 900096  }
 0x164   : > { %v1277_v53 = vadd.f32 %v1276_v52, %v1243_v18  ;;  %v1337_v22 = vadd.f32 %v1333_v11, %v1325_v1  ;;  %v1336_v63 = vadd.f32 %v1332_v51, %v1324_v43  ;;  %v1425_v51 = vstv %s3496_s9  ;;  %s3604_s9 = sld [smem:[#allocation6 + $0x26]] }
 0x166   : > { %v1381_v58 = vpop.permute.xlu1 %1380  ;;  %v1349_v59 = vpop.permute.xlu0 %1348  ;;  %v1311_v36 = vadd.f32 %v1310_v56, %v1277_v53  ;;  %v1341_v40 = vrot.slane %v1337_v22, 7  ;;  %v1463_v53 = vstv %s3500_s10  ;;  %s3608_s10 = sld [smem:[#allocation6 + $0x57]] }
 0x167   : > { %v1351_v7 = vsel %vm1350_vm11, %v3372_v55, %v1349_v59  ;;  %v1355_v14 = vsel %vm1350_vm11, %v1349_v59, %v3372_v55  ;;  %v3476_v9 = vpop.permute.xlu2 %1550  ;;  %v1389_v16 = vsel %vm1384_vm13, %v3396_v37, %v1381_v58  ;;  %v1385_v62 = vsel %vm1384_vm13, %v1381_v58, %v3396_v37 }
 0x168   : > { %v1342_v60 = vsel %vm308_vm2, %v1336_v63, %v1341_v40  ;;  %v1362_v44 = vmul.f32 %v1361_v4, %v1351_v7  ;;  %v1363_v15 = vmul.f32 %v1361_v4, %v1355_v14  ;;  %v1359_v20 = vmul.f32 %v1357_v12, %v1355_v14 }
 0x169   : > { %v1344_v10 = vsel %vm1338_vm0, %v1342_v60, 0.0  ;;  %v1358_v24 = vmul.f32 %v1357_v12, %v1351_v7  ;;  %v1397_v47 = vmul.f32 %v1395_v35, %v1389_v16  ;;  %v1393_v19 = vmul.f32 %v1391_v54, %v1389_v16 }
 0x16a   : > { %v1345_v13 = vadd.f32 %v1344_v10, %v1311_v36  ;;  %v1366_v17 = vrot.slane %v1362_v44, 1  ;;  %v1367_v41 = vrot.slane %v1363_v15, 1  ;;  %v1396_v1 = vmul.f32 %v1395_v35, %v1385_v62 }
 0x16b   : > { %v1401_v6 = vrot.slane %v1397_v47, 1  ;;  %v1392_v58 = vmul.f32 %v1391_v54, %v1385_v62  ;;  %v1497_v36 = vstv %s3503_s12  ;;  %vm1520_vm11 = vcmask 891904   ;;  %s3614_s12 = sld [smem:[#allocation6 + $0x28]] }
 0x16c   : > { %v1371_v25 = vadd.f32 %v1367_v41, %v1359_v20  ;;  %v1370_v55 = vadd.f32 %v1366_v17, %v1358_v24  ;;  %v1400_v59 = vrot.slane %v1396_v1, 1  ;;  %v1459_v44 = vstv %s3508_s13  ;;  %s3628_s13 = sld [smem:[#allocation6 + $0x59]] }
 0x16d   : > { %v1405_v52 = vadd.f32 %v1401_v6, %v1393_v19  ;;  %v1531_v15 = vstv %s3516_s25  ;;  %vm1588_vm0 = vcmask 801792   ;;  %vm1554_vm13 = vcmask 809984   ;;  %s3667_s25 = sld [smem:[#allocation6 + $0x5b]] }
 0x16e   : > { %v1417_v18 = vpop.permute.xlu1 %1416  ;;  %v1415_v21 = vpop.permute.xlu0 %1414  ;;  %v1375_v27 = vrot.slane %v1371_v25, 7  ;;  %v1404_v20 = vadd.f32 %v1400_v59, %v1392_v58  ;;  %v1595_v54 = vstv %s3530_s29  ;;  %v1599_v1 = vstv %s3526_s28  ;;  %s3694_s28 = sld [smem:[#allocation6 + $0x5a]] }
 0x16f   : > { %v3488_v28 = vpop.permute.xlu2 %1586  ;;  %v1423_v39 = vsel %vm1418_vm3, %v1417_v18, %v1415_v21  ;;  %v1419_v37 = vsel %vm1418_vm3, %v1415_v21, %v1417_v18  ;;  %v1409_v14 = vrot.slane %v1405_v52, 7  ;;  %vm1440_vm3 = vmand %vm3464_vm9, %vm2967_vm12  ;;  %s3716_s29 = sld [smem:[#allocation6 + $0x2b]] }
 0x170   : > { %v1376_v61 = vsel %vm308_vm2, %v1370_v55, %v1375_v27  ;;  %v1431_v48 = vmul.f32 %v1429_v57, %v1423_v39  ;;  %v1427_v22 = vmul.f32 %v1425_v51, %v1423_v39  ;;  %v1430_v56 = vmul.f32 %v1429_v57, %v1419_v37 }
 0x171   : > { %v1378_v29 = vsel %vm1372_vm14, %v1376_v61, 0.0  ;;  %v1426_v21 = vmul.f32 %v1425_v51, %v1419_v37  ;;  %v1410_v27 = vsel %vm308_vm2, %v1404_v20, %v1409_v14  ;;  %v1527_v61 = vstv %s3523_s27  ;;  %vm1406_vm14 = vmand %vm3464_vm9, %vm2924_vm4  ;;  %s3673_s27 = sld [smem:[#allocation6 + $0x29]] }
 0x172   : > { %v3492_v30 = vadd.f32 %v1378_v29, %v1345_v13  ;;  %v1435_v11 = vrot.slane %v1431_v48, 1  ;;  %v1434_v12 = vrot.slane %v1430_v56, 1  ;;  %v1493_v13 = vstv %s3514_s24  ;;  %s3654_s24 = sld [smem:[#allocation6 + $0x2a]] }
 0x173   : > { %v3568_v39 = vadd.s32 2, %v3327_v23  ;;  %v1412_v19 = vsel %vm1406_vm14, %v1410_v27, 0.0  ;;  %v1565_v51 = vstv %s3536_s21  ;;  %vm1724_vm14 = vcmask 769024   ;;  %s3725_s21 = sld [smem:[#allocation6 + $0x5c]] }
 0x174   : > { %v1439_v63 = vadd.f32 %v1435_v11, %v1427_v22 }
 0x176   : > { %v1483_v31 = vpop.permute.xlu1 %1482  ;;  %v1451_v34 = vpop.permute.xlu0 %1450  ;;  %v1443_v24 = vrot.slane %v1439_v63, 7 }
 0x177   : > { %v3505_v46 = vpop.permute.xlu2 %1652  ;;  %v1457_v43 = vsel %vm1452_vm5, %v1451_v34, %v3434_v5  ;;  %v1491_v40 = vsel %vm1486_vm6, %v3446_v42, %v1483_v31  ;;  %v1453_v41 = vsel %vm1452_vm5, %v3434_v5, %v1451_v34  ;;  %v1487_v25 = vsel %vm1486_vm6, %v1483_v31, %v3446_v42 }
 0x178   : > { %v1465_v4 = vmul.f32 %v1463_v53, %v1457_v43  ;;  %v1499_v17 = vmul.f32 %v1497_v36, %v1491_v40  ;;  %v1438_v5 = vadd.f32 %v1434_v12, %v1426_v21  ;;  %v1461_v29 = vmul.f32 %v1459_v44, %v1457_v43 }
 0x179   : > { %v1464_v34 = vmul.f32 %v1463_v53, %v1453_v41  ;;  %v1495_v42 = vmul.f32 %v1493_v13, %v1491_v40  ;;  %v1498_v31 = vmul.f32 %v1497_v36, %v1487_v25  ;;  %v1494_v37 = vmul.f32 %v1493_v13, %v1487_v25 }
 0x17a   : > { %v1469_v55 = vrot.slane %v1465_v4, 1  ;;  %v1503_v16 = vrot.slane %v1499_v17, 1  ;;  %v1444_v47 = vsel %vm308_vm2, %v1438_v5, %v1443_v24  ;;  %v1460_v58 = vmul.f32 %v1459_v44, %v1453_v41 }
 0x17b   : > { %v1468_v11 = vrot.slane %v1464_v34, 1  ;;  %v1446_v43 = vsel %vm1440_vm3, %v1444_v47, 0.0  ;;  %v1413_v40 = vadd.f32 %v1412_v19, %v3492_v30  ;;  %v1561_v4 = vstv %s3552_s30  ;;  %vm1474_vm3 = vmand %vm3464_vm9, %vm3004_vm8  ;;  %s3750_s30 = sld [smem:[#allocation6 + $0x2d]] }
 0x17c   : > { %v1473_v57 = vadd.f32 %v1469_v55, %v1461_v29  ;;  %vm1622_vm5 = vcmask 793600   ;;  %v1629_v17 = vstv %s3558_s5  ;;  %vm334_vm6 = vcmp.ge.s32.totalorder %v3568_v39, 0  ;;  %s3755_s5 = sld [smem:[#allocation6 + $0x5e]] }
 0x17d   : > { %v1472_v12 = vadd.f32 %v1468_v11, %v1460_v58  ;;  %v1447_v44 = vadd.f32 %v1446_v43, %v1413_v40  ;;  %v1697_v34 = vstv %s3585_s7  ;;  %v1667_v11 = vstv %s3608_s10  ;;  %s3771_s7 = sld [smem:[#allocation6 + $0x5d]] }
 0x17e   : > { %v3510_v49 = vpop.permute.xlu1 %1518  ;;  %v3512_v50 = vpop.permute.xlu0 %1516  ;;  %v1477_v59 = vrot.slane %v1473_v57, 7  ;;  %v1701_v57 = vstv %s3598_s8  ;;  %s3793_s8 = sld [smem:[#allocation6 + $0x5f]] }
 0x17f   : > { %v3538_v10 = vpop.permute.xlu2 %1688  ;;  %v1525_v18 = vsel %vm1520_vm11, %v3510_v49, %v3512_v50  ;;  %v1521_v6 = vsel %vm1520_vm11, %v3512_v50, %v3510_v49  ;;  %v1502_v49 = vrot.slane %v1498_v31, 1  ;;  %v1507_v50 = vadd.f32 %v1503_v16, %v1495_v42  ;;  %s3852_s10 = sld [smem:[#allocation6 + $0x61]] }
 0x180   : > { %v1533_v35 = vmul.f32 %v1531_v15, %v1525_v18  ;;  %v1529_v36 = vmul.f32 %v1527_v61, %v1525_v18  ;;  %v1532_v63 = vmul.f32 %v1531_v15, %v1521_v6  ;;  %vm335_vm11 = vcmp.lt.s32.totalorder %v3568_v39, 16 }
 0x181   : > { %v1511_v41 = vrot.slane %v1507_v50, 7  ;;  %v1633_v15 = vstv %s3560_s6  ;;  %v1506_v30 = vadd.f32 %v1502_v49, %v1494_v37  ;;  %v1478_v18 = vsel %vm308_vm2, %v1472_v12, %v1477_v59  ;;  %s3763_s6 = sld [smem:[#allocation6 + $0x2c]] }
 0x182   : > { %v1537_v52 = vrot.slane %v1533_v35, 1  ;;  %v1536_v21 = vrot.slane %v1532_v63, 1  ;;  %v1528_v27 = vmul.f32 %v1527_v61, %v1521_v6  ;;  %v1663_v37 = vstv %s3604_s9  ;;  %s3837_s9 = sld [smem:[#allocation6 + $0x2e]] }
 0x183   : > { %v1735_v63 = vstv %s3628_s13  ;;  %s3860_s13 = sld [smem:[#allocation6 + $0x60]] }
 0x184   : > { %v1541_v13 = vadd.f32 %v1537_v52, %v1529_v36  ;;  %v1540_v16 = vadd.f32 %v1536_v21, %v1528_v27  ;;  %v3702_v27 = vadd.s32 3, %v3327_v23 }
 0x186   : > { %v3532_v60 = vpop.permute.xlu1 %1584  ;;  %v3534_v7 = vpop.permute.xlu0 %1552  ;;  %v1545_v35 = vrot.slane %v1541_v13, 7 }
 0x187   : > { %v1559_v53 = vsel %vm1554_vm13, %v3534_v7, %v3476_v9  ;;  %v1593_v22 = vsel %vm1588_vm0, %v3488_v28, %v3532_v60  ;;  %v3600_v56 = vpop.permute.xlu2 %1754  ;;  %v1555_v24 = vsel %vm1554_vm13, %v3476_v9, %v3534_v7  ;;  %v1589_v5 = vsel %vm1588_vm0, %v3532_v60, %v3488_v28  ;;  %vm1508_vm13 = vmand %vm3464_vm9, %vm3022_vm10 }
 0x188   : > { %v1567_v14 = vmul.f32 %v1565_v51, %v1559_v53  ;;  %v1601_v20 = vmul.f32 %v1599_v1, %v1593_v22  ;;  %v1597_v9 = vmul.f32 %v1595_v54, %v1593_v22  ;;  %v1512_v28 = vsel %vm308_vm2, %v1506_v30, %v1511_v41 }
 0x189   : > { %v1480_v60 = vsel %vm1474_vm3, %v1478_v18, 0.0  ;;  %v1563_v61 = vmul.f32 %v1561_v4, %v1559_v53  ;;  %v1566_v31 = vmul.f32 %v1565_v51, %v1555_v24  ;;  %v1600_v47 = vmul.f32 %v1599_v1, %v1589_v5  ;;  %vm1542_vm3 = vmand %vm3464_vm9, %vm3043_vm7 }
 0x18a   : > { %v1571_v29 = vrot.slane %v1567_v14, 1  ;;  %v1605_v7 = vrot.slane %v1601_v20, 1  ;;  %vm1656_vm0 = vcmask 785408   ;;  %v1514_v43 = vsel %vm1508_vm13, %v1512_v28, 0.0  ;;  %vm3687_vm9 = vmand %vm334_vm6, %vm335_vm11 }
 0x18b   : > { %v1481_v49 = vadd.f32 %v1480_v60, %v1447_v44  ;;  %v1546_v1 = vsel %vm308_vm2, %v1540_v16, %v1545_v35  ;;  %v1570_v53 = vrot.slane %v1566_v31, 1  ;;  %v1731_v22 = vstv %s3614_s12  ;;  %vm1576_vm6 = vmand %vm3687_vm9, %vm2914_vm1  ;;  %s3854_s12 = sld [smem:[#allocation6 + $0x30]] }
 0x18c   : > { %v1575_v19 = vadd.f32 %v1571_v29, %v1563_v61  ;;  %v1609_v51 = vadd.f32 %v1605_v7, %v1597_v9  ;;  %v1596_v58 = vmul.f32 %v1595_v54, %v1589_v5  ;;  %v1604_v59 = vrot.slane %v1600_v47, 1 }
 0x18d   : > { %v1548_v14 = vsel %vm1542_vm3, %v1546_v1, 0.0  ;;  %v1562_v12 = vmul.f32 %v1561_v4, %v1555_v24  ;;  %v1515_v44 = vadd.f32 %v1514_v43, %v1481_v49  ;;  %v1799_v5 = vstv %s3654_s24  ;;  %s3890_s24 = sld [smem:[#allocation6 + $0x2f]] }
 0x18e   : > { %v3571_v62 = vpop.permute.xlu1 %1620  ;;  %v3573_v48 = vpop.permute.xlu0 %1618  ;;  %v1579_v13 = vrot.slane %v1575_v19, 7  ;;  %v1608_v24 = vadd.f32 %v1604_v59, %v1596_v58  ;;  %vm1792_vm11 = vcmask 678912   ;;  %vm1758_vm13 = vcmask 760832  }
 0x18f   : > { %v1627_v42 = vsel %vm1622_vm5, %v3571_v62, %v3573_v48  ;;  %v3660_v52 = vpop.permute.xlu2 %1790  ;;  %v1623_v2 = vsel %vm1622_vm5, %v3573_v48, %v3571_v62  ;;  %v1613_v62 = vrot.slane %v1609_v51, 7  ;;  %vm4010_vm5 = vcmask 777216  }
 0x190   : > { %v1635_v6 = vmul.f32 %v1633_v15, %v1627_v42  ;;  %v1574_v4 = vadd.f32 %v1570_v53, %v1562_v12  ;;  %v1631_v30 = vmul.f32 %v1629_v17, %v1627_v42  ;;  %v1634_v18 = vmul.f32 %v1633_v15, %v1623_v2  ;;  %vm4011_vm3 = vmmov %vm4010_vm5 }
 0x191   : > { %v1549_v21 = vadd.f32 %v1548_v14, %v1515_v44  ;;  %v1803_v42 = vstv %s3667_s25  ;;  %v1614_v28 = vsel %vm308_vm2, %v1608_v24, %v1613_v62  ;;  %v1765_v31 = vstv %s3673_s27  ;;  %s2026_s25 = sld [smem:[#allocation2]] }
 0x192   : > { %v1639_v20 = vrot.slane %v1635_v6, 1  ;;  %v1580_v29 = vsel %vm308_vm2, %v1574_v4, %v1579_v13  ;;  %v1638_v60 = vrot.slane %v1634_v18, 1  ;;  %v1769_v59 = vstv %s3694_s28  ;;  %s2292_s27 = sld [smem:[#allocation2 + $0x1]]  ;;  %s2300_s28 = sshll.u32 %s2702_s19, 3 }
 0x193   : > { %v1833_v4 = vstv %s3716_s29  ;;  %v1973_v26 = vstv %s3860_s13  ;;  %s2060_s19 = scalar_lea.sflag [#allocation4], %s2792_s26 }
 0x194   : > { %v1643_v35 = vadd.f32 %v1639_v20, %v1631_v30  ;;  %v1837_v30 = vstv %s3725_s21 }
 0x196   : > { %v3624_v25 = vpop.permute.xlu1 %1686  ;;  %v3626_v55 = vpop.permute.xlu0 %1654  ;;  %v1647_v6 = vrot.slane %v1643_v35, 7 }
 0x197   : > { %v1661_v50 = vsel %vm1656_vm0, %v3626_v55, %v3505_v46  ;;  %v1695_v48 = vsel %vm4010_vm5, %v3538_v10, %v3624_v25  ;;  %v1657_v15 = vsel %vm1656_vm0, %v3505_v46, %v3626_v55  ;;  %v1691_v61 = vsel %vm4011_vm3, %v3624_v25, %v3538_v10  ;;  %v3723_v16 = vpop.permute.xlu2 %1856  ;;  %vm1610_vm0 = vmand %vm3687_vm9, %vm2906_vm15 }
 0x198   : > { %v1669_v41 = vmul.f32 %v1667_v11, %v1661_v50  ;;  %v1703_v9 = vmul.f32 %v1701_v57, %v1695_v48  ;;  %v1582_v46 = vsel %vm1576_vm6, %v1580_v29, 0.0  ;;  %v1630_v55 = vmul.f32 %v1629_v17, %v1623_v2  ;;  %vm1712_vm3 = vmand %vm3687_vm9, %vm3004_vm8 }
 0x199   : > { %v1665_v10 = vmul.f32 %v1663_v37, %v1661_v50  ;;  %v1668_v25 = vmul.f32 %v1667_v11, %v1657_v15  ;;  %v1699_v43 = vmul.f32 %v1697_v34, %v1695_v48  ;;  %v1702_v51 = vmul.f32 %v1701_v57, %v1691_v61 }
 0x19a   : > { %v1673_v23 = vrot.slane %v1669_v41, 1  ;;  %v1707_v49 = vrot.slane %v1703_v9, 1  ;;  %v1616_v14 = vsel %vm1610_vm0, %v1614_v28, 0.0  ;;  %v1583_v17 = vadd.f32 %v1582_v46, %v1549_v21 }
 0x19b   : > { %v1642_v50 = vadd.f32 %v1638_v60, %v1630_v55  ;;  %v1672_v2 = vrot.slane %v1668_v25, 1  ;;  %vm1826_vm5 = vcmask 670720   ;;  %v1706_v44 = vrot.slane %v1702_v51, 1 }
 0x19c   : > { %v1677_v53 = vadd.f32 %v1673_v23, %v1665_v10  ;;  %v1617_v41 = vadd.f32 %v1616_v14, %v1583_v17  ;;  %vm338_vm0 = vcmp.ge.s32.totalorder %v3702_v27, 0  ;;  %vm1860_vm6 = vcmask 662528  }
 0x19d   : > { %v1648_v57 = vsel %vm308_vm2, %v1642_v50, %v1647_v6 }
 0x19e   : > { %v1723_v36 = vpop.permute.xlu1 %1722  ;;  %v1721_v40 = vpop.permute.xlu0 %1720  ;;  %v1681_v62 = vrot.slane %v1677_v53, 7  ;;  %v1867_v53 = vstv %s3763_s6 }
 0x19f   : > { %v1729_v39 = vsel %vm1724_vm14, %v1723_v36, %v1721_v40  ;;  %v1725_v1 = vsel %vm1724_vm14, %v1721_v40, %v1723_v36  ;;  %v1698_v36 = vmul.f32 %v1697_v34, %v1691_v61  ;;  %v1711_v40 = vadd.f32 %v1707_v49, %v1699_v43  ;;  %vm1644_vm14 = vmand %vm3687_vm9, %vm2924_vm4  ;;  %v1893_v60 = vpop.permute.xlu2 %1892 }
 0x1a0   : > { %v1737_v7 = vmul.f32 %v1735_v63, %v1729_v39  ;;  %v1733_v12 = vmul.f32 %v1731_v22, %v1729_v39  ;;  %v1736_v13 = vmul.f32 %v1735_v63, %v1725_v1  ;;  %v1664_v63 = vmul.f32 %v1663_v37, %v1657_v15 }
 0x1a1   : > { %v1650_v29 = vsel %vm1644_vm14, %v1648_v57, 0.0  ;;  %v1715_v35 = vrot.slane %v1711_v40, 7  ;;  %v1710_v23 = vadd.f32 %v1706_v44, %v1698_v36  ;;  %v1901_v43 = vstv %s3750_s30  ;;  %s2071_s30 = scalar_lea.hbm %s3977_s4, %s2300_s28 }
 0x1a2   : > { %v1741_v58 = vrot.slane %v1737_v7, 1  ;;  %v1676_v34 = vadd.f32 %v1672_v2, %v1664_v63  ;;  %v1740_v18 = vrot.slane %v1736_v13, 1  ;;  %v1732_v7 = vmul.f32 %v1731_v22, %v1725_v1 }
 0x1a3   : > { %v1651_v25 = vadd.f32 %v1650_v29, %v1617_v41  ;;  %v1905_v49 = vstv %s3755_s5  ;;  %vm339_vm14 = vcmp.lt.s32.totalorder %v3702_v27, 16  ;;  %v1871_v13 = vstv %s3771_s7  ;;  %s257_s5 = scalar_lea.vmem [#allocation11], %s2193_s23  ;;  %s2075_s7 = sshll.u32 %s2071_s30, 4  ;;  %s2076_s7 = int_to_ptr.hbm [resolvable:$true] %s2075_s7 }
 0x1a4   : > { %v1745_v48 = vadd.f32 %v1741_v58, %v1733_v12  ;;  %s2073_s6 = sshll.u32 %s257_s5, 4  ;;  %s2544_s23 = scalar_lea.hbm %s3977_s4, 16  ;;  %s2074_s6 = int_to_ptr.vmem [resolvable:$true] %s2073_s6 }
 0x1a6   : > { %v1789_v47 = vpop.permute.xlu1 %1788  ;;  %v1757_v19 = vpop.permute.xlu0 %1756  ;;  %v1749_v28 = vrot.slane %v1745_v48, 7 }
 0x1a7   : > { %v1763_v11 = vsel %vm1758_vm13, %v1757_v19, %v3600_v56  ;;  %v1797_v39 = vsel %vm1792_vm11, %v3660_v52, %v1789_v47  ;;  %v1759_v21 = vsel %vm1758_vm13, %v3600_v56, %v1757_v19  ;;  %vm1678_vm13 = vmand %vm3687_vm9, %vm2967_vm12  ;;  %v1682_v56 = vsel %vm308_vm2, %v1676_v34, %v1681_v62 }
 0x1a8   : > { %v1771_v20 = vmul.f32 %v1769_v59, %v1763_v11  ;;  %v1793_v61 = vsel %vm1792_vm11, %v1789_v47, %v3660_v52  ;;  %v1805_v46 = vmul.f32 %v1803_v42, %v1797_v39  ;;  %v1767_v55 = vmul.f32 %v1765_v31, %v1763_v11  ;;  %vm1746_vm11 = vmand %vm3687_vm9, %vm3022_vm10 }
 0x1a9   : > { %v1770_v10 = vmul.f32 %v1769_v59, %v1759_v21  ;;  %v1744_v19 = vadd.f32 %v1740_v18, %v1732_v7  ;;  %v1716_v52 = vsel %vm308_vm2, %v1710_v23, %v1715_v35  ;;  %v1684_v22 = vsel %vm1678_vm13, %v1682_v56, 0.0 }
 0x1aa   : > { %v1775_v9 = vrot.slane %v1771_v20, 1  ;;  %v1804_v51 = vmul.f32 %v1803_v42, %v1793_v61  ;;  %v1801_v58 = vmul.f32 %v1799_v5, %v1797_v39  ;;  %v1809_v59 = vrot.slane %v1805_v46, 1 }
 0x1ab   : > { %v1750_v1 = vsel %vm308_vm2, %v1744_v19, %v1749_v28  ;;  %v1774_v14 = vrot.slane %v1770_v10, 1  ;;  %v1718_v50 = vsel %vm1712_vm3, %v1716_v52, 0.0  ;;  %v1685_v11 = vadd.f32 %v1684_v22, %v1651_v25  ;;  %vm1780_vm3 = vmand %vm3687_vm9, %vm3043_vm7 }
 0x1ac   : > { %v1779_v47 = vadd.f32 %v1775_v9, %v1767_v55  ;;  %v1752_v57 = vsel %vm1746_vm11, %v1750_v1, 0.0  ;;  %v1800_v36 = vmul.f32 %v1799_v5, %v1793_v61  ;;  %v1766_v40 = vmul.f32 %v1765_v31, %v1759_v21  ;;  %v3843_v31 = vpop.permute.xlu2 %1958 }
 0x1ad   : > { %v1808_v44 = vrot.slane %v1804_v51, 1  ;;  %v1813_v41 = vadd.f32 %v1809_v59, %v1801_v58  ;;  %v1719_v39 = vadd.f32 %v1718_v50, %v1685_v11  ;;  %vm1928_vm13 = vcmask 646144  }
 0x1ae   : > { %v1825_v37 = vpop.permute.xlu1 %1824  ;;  %v1823_v24 = vpop.permute.xlu0 %1822  ;;  %v1783_v20 = vrot.slane %v1779_v47, 7  ;;  %v1778_v34 = vadd.f32 %v1774_v14, %v1766_v40  ;;  %v2007_v40 = vstv %s3852_s10 }
 0x1af   : > { %v1831_v15 = vsel %vm1826_vm5, %v1825_v37, %v1823_v24  ;;  %v1827_v17 = vsel %vm1826_vm5, %v1823_v24, %v1825_v37  ;;  %vm4012_vm5 = vcmask 654336   ;;  %v1753_v35 = vadd.f32 %v1752_v57, %v1719_v39 }
 0x1b0   : > { %v1839_v6 = vmul.f32 %v1837_v30, %v1831_v15  ;;  %v1835_v63 = vmul.f32 %v1833_v4, %v1831_v15  ;;  %v1838_v62 = vmul.f32 %v1837_v30, %v1827_v17  ;;  %v1939_v30 = vstv %s3793_s8  ;;  %vm4013_vm11 = vmmov %vm4012_vm5  ;;  %s2538_s8 = sshra.s32 %s2076_s7, 4  ;;  %s2539_s8 = int_to_ptr.hbm [resolvable:$true] %s2538_s8 }
 0x1b1   : > { %v1784_v21 = vsel %vm308_vm2, %v1778_v34, %v1783_v20  ;;  %v1812_v9 = vadd.f32 %v1808_v44, %v1800_v36  ;;  %v1817_v56 = vrot.slane %v1813_v41, 7  ;;  %v1834_v7 = vmul.f32 %v1833_v4, %v1827_v17  ;;  %p2545_p9 = scmp.lt.s32.totalorder %s2539_s8, %s3977_s4 }
 0x1b2   : > { %v1843_v2 = vrot.slane %v1839_v6, 1  ;;  %v1842_v15 = vrot.slane %v1838_v62, 1  ;;  %v2003_v36 = vstv %s3854_s12 }
 0x1b3   : > { %v1818_v51 = vsel %vm308_vm2, %v1812_v9, %v1817_v56  ;;  %v1969_v56 = vstv %s3890_s24 }
 0x1b4   : > { %v1847_v37 = vadd.f32 %v1843_v2, %v1835_v63  ;;  %v1846_v47 = vadd.f32 %v1842_v15, %v1834_v7  ;;  %v1995_v57 = vpop.permute.xlu2 %1994 }
 0x1b6   : > { %v1891_v12 = vpop.permute.xlu1 %1890  ;;  %v1859_v42 = vpop.permute.xlu0 %1858  ;;  %v1851_v46 = vrot.slane %v1847_v37, 7 }
 0x1b7   : > { %v1899_v48 = vsel %vm4012_vm5, %v1893_v60, %v1891_v12  ;;  %v1861_v18 = vsel %vm1860_vm6, %v3723_v16, %v1859_v42  ;;  %v1865_v5 = vsel %vm1860_vm6, %v1859_v42, %v3723_v16  ;;  %v1895_v24 = vsel %vm4013_vm11, %v1891_v12, %v1893_v60  ;;  %vm3873_vm6 = vmand %vm338_vm0, %vm339_vm14 }
 0x1b8   : > { %v1907_v29 = vmul.f32 %v1905_v49, %v1899_v48  ;;  %v1873_v16 = vmul.f32 %v1871_v13, %v1865_v5  ;;  %v1872_v23 = vmul.f32 %v1871_v13, %v1861_v18  ;;  %v1869_v28 = vmul.f32 %v1867_v53, %v1865_v5  ;;  %vm1814_vm9 = vmand %vm3873_vm6, %vm2914_vm1 }
 0x1b9   : > { %v1786_v60 = vsel %vm1780_vm3, %v1784_v21, 0.0  ;;  %v1903_v55 = vmul.f32 %v1901_v43, %v1899_v48  ;;  %v1906_v10 = vmul.f32 %v1905_v49, %v1895_v24  ;;  %v1935_v49 = vstv %s3837_s9  ;;  %vm1848_vm0 = vmand %vm3873_vm6, %vm2906_vm15  ;;  %s2540_s9 = scalar_lea.hbm %s2539_s8, 8 }
 0x1ba   : > { %v1877_v61 = vrot.slane %v1873_v16, 1  ;;  %v1911_v54 = vrot.slane %v1907_v29, 1  ;;  %v1876_v1 = vrot.slane %v1872_v23, 1  ;;  %v1787_v58 = vadd.f32 %v1786_v60, %v1753_v35  ;;  %vm1882_vm15 = vmand %vm3873_vm6, %vm2924_vm4  ;;  %p2541_p1 = scmp.ne.s32.totalorder %s2539_s8, %s2540_s9  ;;  %p2546_p10 = scmp.lt.s32.totalorder %s2544_s23, %s2540_s9 }
 0x1bb   : > { %v1902_v59 = vmul.f32 %v1901_v43, %v1895_v24  ;;  %v1852_v14 = vsel %vm308_vm2, %v1846_v47, %v1851_v46  ;;  %v1868_v17 = vmul.f32 %v1867_v53, %v1861_v18  ;;  %v1910_v43 = vrot.slane %v1906_v10, 1  ;;  %vm1916_vm1 = vmand %vm3873_vm6, %vm2967_vm12 }
 0x1bc   : > { %v1881_v6 = vadd.f32 %v1877_v61, %v1869_v28  ;;  %v1915_v2 = vadd.f32 %v1911_v54, %v1903_v55  ;;  %vm1996_vm14 = vcmask 629760   ;;  %v1820_v53 = vsel %vm1814_vm9, %v1818_v51, 0.0  ;;  %vm1950_vm4 = vmand %vm3873_vm6, %vm3004_vm8  ;;  %p2542_p4 = pnand %p2541_p1, %p2753_p3  ;;  %p2547_p2 = por %p2546_p10, %p2545_p9 }
 0x1bd   : > { %v1880_v42 = vadd.f32 %v1876_v1, %v1868_v17  ;;  %vm1962_vm5 = vcmask 637952   ;;  %v1821_v44 = vadd.f32 %v1820_v53, %v1787_v58  ;;  %v1854_v63 = vsel %vm1848_vm0, %v1852_v14, 0.0  ;;  %vm1984_vm12 = vmand %vm3873_vm6, %vm3022_vm10 }
 0x1be   : > { %v1927_v25 = vpop.permute.xlu1 %1926  ;;  %v1925_v4 = vpop.permute.xlu0 %1924  ;;  %v1885_v50 = vrot.slane %v1881_v6, 7  ;;  %v1914_v18 = vadd.f32 %v1910_v43, %v1902_v59  ;;  %v1919_v32 = vrot.slane %v1915_v2, 7  ;;  %vm2018_vm8 = vmand %vm3873_vm6, %vm3043_vm7  ;;  %v2030_v43 = vstv %s2292_s27  ;;  %p2543_p8 = pneg %p2542_p4 }
 0x1bf   : > { %v1929_v52 = vsel %vm1928_vm13, %v1925_v4, %v1927_v25  ;;  %v1933_v22 = vsel %vm1928_vm13, %v1927_v25, %v1925_v4  ;;  %v1855_v9 = vadd.f32 %v1854_v63, %v1821_v44  ;;  %vm4016_vm3 = vcmask 1043456  }
 0x1c0   : > { %v1941_v27 = vmul.f32 %v1939_v30, %v1933_v22  ;;  %v1940_v11 = vmul.f32 %v1939_v30, %v1929_v52  ;;  %v1937_v12 = vmul.f32 %v1935_v49, %v1933_v22  ;;  %v1886_v62 = vsel %vm308_vm2, %v1880_v42, %v1885_v50  ;;  %p2548_p11 = pnand %p2547_p2, %p2543_p8 }
 0x1c1   : > { %v1936_v37 = vmul.f32 %v1935_v49, %v1929_v52  ;;  %v1888_v33 = vsel %vm1882_vm15, %v1886_v62, 0.0  ;;  %v1920_v7 = vsel %vm308_vm2, %v1914_v18, %v1919_v32 }
 0x1c2   : > { %v1945_v13 = vrot.slane %v1941_v27, 1  ;;  %v1944_v48 = vrot.slane %v1940_v11, 1  ;;  %v1889_v60 = vadd.f32 %v1888_v33, %v1855_v9  ;;  %v1922_v22 = vsel %vm1916_vm1, %v1920_v7, 0.0 }
 0x1c3   : > { %v2027_v11 = vstv %s2026_s25 }
 0x1c4   : > { %v1949_v20 = vadd.f32 %v1945_v13, %v1937_v12  ;;  %v1948_v15 = vadd.f32 %v1944_v48, %v1936_v37  ;;  %v1923_v1 = vadd.f32 %v1922_v22, %v1889_v60 }
 0x1c6   : > { %v1993_v41 = vpop.permute.xlu1 %1992  ;;  %v1961_v34 = vpop.permute.xlu0 %1960  ;;  %v1953_v30 = vrot.slane %v1949_v20, 7 }
 0x1c7   : > { %v1997_v5 = vsel %vm1996_vm14, %v1993_v41, %v1995_v57  ;;  %v2001_v39 = vsel %vm1996_vm14, %v1995_v57, %v1993_v41  ;;  %v1963_v16 = vsel %vm1962_vm5, %v3843_v31, %v1961_v34  ;;  %v1967_v35 = vsel %vm1962_vm5, %v1961_v34, %v3843_v31 }
 0x1c8   : > { %v2005_v21 = vmul.f32 %v2003_v36, %v2001_v39  ;;  %v2009_v24 = vmul.f32 %v2007_v40, %v2001_v39  ;;  %v2008_v29 = vmul.f32 %v2007_v40, %v1997_v5  ;;  %v1974_v28 = vmul.f32 %v1973_v26, %v1963_v16 }
 0x1c9   : > { %v1975_v61 = vmul.f32 %v1973_v26, %v1967_v35  ;;  %v1954_v46 = vsel %vm308_vm2, %v1948_v15, %v1953_v30  ;;  %v2004_v55 = vmul.f32 %v2003_v36, %v1997_v5  ;;  %v1971_v25 = vmul.f32 %v1969_v56, %v1967_v35 }
 0x1ca   : > { %v2013_v23 = vrot.slane %v2009_v24, 1  ;;  %v2012_v31 = vrot.slane %v2008_v29, 1  ;;  %v1978_v4 = vrot.slane %v1974_v28, 1  ;;  %v1970_v3 = vmul.f32 %v1969_v56, %v1963_v16 }
 0x1cb   : > { %v1979_v54 = vrot.slane %v1975_v61, 1  ;;  %v1956_v47 = vsel %vm1950_vm4, %v1954_v46, 0.0 }
 0x1cc   : > { %v2017_v10 = vadd.f32 %v2013_v23, %v2005_v21  ;;  %v2016_v49 = vadd.f32 %v2012_v31, %v2004_v55  ;;  %v1982_v38 = vadd.f32 %v1978_v4, %v1970_v3  ;;  %v1957_v58 = vadd.f32 %v1956_v47, %v1923_v1 }
 0x1cd   : > { %v1983_v52 = vadd.f32 %v1979_v54, %v1971_v25 }
 0x1ce   : > { %v2021_v6 = vrot.slane %v2017_v10, 7 }
 0x1cf   : > { %v1987_v51 = vrot.slane %v1983_v52, 7 }
 0x1d0   : > { %v2022_v59 = vsel %vm308_vm2, %v2016_v49, %v2021_v6 }
 0x1d1   : > { %v1988_v27 = vsel %vm308_vm2, %v1982_v38, %v1987_v51  ;;  %v2024_v50 = vsel %vm2018_vm8, %v2022_v59, 0.0 }
 0x1d2   : > { %v1990_v14 = vsel %vm1984_vm12, %v1988_v27, 0.0 }
 0x1d3   : > { %v1991_v17 = vadd.f32 %v1990_v14, %v1957_v58 }
 0x1d5   : > { %v2025_v45 = vadd.f32 %v2024_v50, %v1991_v17 }
 0x1d7   : > { %v2028_v2 = vmul.f32 %v2027_v11, %v2025_v45 }
 0x1d9   : > { %v2031_v12 = vadd.f32 %v2030_v43, %v2028_v2 }
 0x1db   : > { %v2293_v13 = vmul.f32 -1.442695, %v2031_v12 }
 0x1dd   : > { %2429 = vpow2.f32 %v2293_v13 }
 0x1e3   : > { %v2430_v42 = vpop.eup %2429 }
 0x1e4   : > { %v2035_v8 = vadd.f32 1.0, %v2430_v42 }
 0x1e6   : > { %2431 = vrcp.f32 %v2035_v8  ;;  %v2047_v40 = vand.u32 2147483648, %v2035_v8  ;;  %v2045_v20 = vand.u32 2147483647, %v2035_v8  ;;  %vm2041_vm10 = vweird.f32 %v2035_v8 }
 0x1e8   : > { %v2048_v44 = vor.u32 1.1754944e-38, %v2047_v40  ;;  %vm2046_vm13 = vcmp.eq.f32.partialorder %v2045_v20, 8.507059e+37 }
 0x1ec   : > { %v2432_v19 = vpop.eup %2431 }
 0x1ed   : > { %v2037_v57 = vmul.f32 %v2432_v19, %v2035_v8  ;;  %vm2042_vm2 = vweird.f32 %v2432_v19 }
 0x1ee   : > { %vm2043_vm7 = vmor %vm2041_vm10, %vm2042_vm2 }
 0x1ef   : > { %v2038_v36 = vsub.f32 1.0, %v2037_v57 }
 0x1f1   : > { %v2039_v53 = vmul.f32 %v2432_v19, %v2038_v36 }
 0x1f3   : > { %v2040_v26 = vadd.f32 %v2432_v19, %v2039_v53 }
 0x1f5   : > { %v2044_v63 = vsel %vm2043_vm7, %v2432_v19, %v2040_v26 }
 0x1f6   : > { %v2049_v62 = vsel %vm2046_vm13, %v2048_v44, %v2044_v63 }
 0x1f7   : > { %v2053_v48 = vperm.slane %v2049_v62, 1  ;;  %v2052_v41 = vperm.slane %v2049_v62, 0 }
 0x1f9   : > { %v2054_v34 = vrot.slane %v2053_v48, 4 }
 0x1fb   : > { %v2055_v18 = vsel %vm4016_vm3, %v2052_v41, %v2054_v34 }
 0x1fc   : > { %v2057_v32 = vmul.f32 %v2055_v18, %v2802_v0 }
 0x1fe   : > { %2058 = vst [vmem:[%s257_s5] sm:$0xff] %v2057_v32 }
 0x1ff   : > { %2551 = shalt.err (!%p2548_p11)
}
 0x200   : > { %2315 = dma.vmem_to_hbm [thread:$0]  (%p2753_p3), %s2074_s6, 128, %s2076_s7, %s2060_s19  }
 0x201 PF: > { %s2087_s26 = sand.u32 1, %s2590_s15   ;;  %p4017_p12 = scmp.ge.s32.totalorder %s2602_s18, 2 }
 0x202   : > { %s2088_s25 = scalar_lea.sflag [#allocation4], %s2087_s26 }
 0x203   : > { %p2332_p13 = pnand %p4017_p12, %p2716_p6 }
 0x205   : > { %p2333_p0 = pneg %p2332_p13 }
 0x207   : > { %2585 = dma.done.wait (%p2333_p0), %s2088_s25, 128  }
 0x208   : > { %2587 = vsyncadd (%p2333_p0), %s2088_s25, 4294967168  ;;  %p20_p5 = scmp.ge.s32.totalorder %s2740_s11, 4   ;;  %s4018_s15 = smov %s2594_s16 }
 0x209   : > { %s4019_s16 = smov %s2598_s17  ;;  %s4020_s17 = smov %s2749_s14 }
 0x20a   : > { %s4021_s18 = smov %s2740_s11  ;;  %22 = sbr.rel (!%p20_p5) target bundleno = 8 (0x8), region = 96 }
 0x20f   :  { %2094 = vsyncpa [#allocation3], 1 }
 0x210   :  { %2096 = vsyncpa [#allocation3 + $0x1], 1 }
 0x211   :  { %2097 = vsyncpa [#allocation10], 1 }
 0x212   :  { %2099 = vsyncpa [#allocation10 + $0x1], 1 }
 0x213   :  { %2100 = vsyncpa [#allocation4], 1 }
 0x214   :  { %2102 = vsyncpa [#allocation4 + $0x1], 1 }
 0x215   :  { %2103 = vsyncpa [#allocation5], 1 }
 0x216   :  { %2105 = vsyncpa [#allocation5 + $0x1], 1 }
 0x217   :  { %2106 = vsyncpa [#allocation7], 1 }

</bundles_post_ra>
